<compile_context>
chip_gen: v7x
topology: tpu7x:2x2x1
jax: 0.10.0
libtpu: 0.0.40
codegen_flags: <defaults>
</compile_context>

<pallas_src>
import functools
import math

import jax
import jax.numpy as jnp
from jax.experimental import pallas as pl
from jax.experimental.pallas import tpu as pltpu  # noqa: F401  (TPU backend)

# ----------------------------- model config ---------------------------------
INPUT_DIM = 3
NUM_CLASSES = 8
D_MODEL = 32
NHEAD = 4
DEPTH = 2
MAX_SEQ_LEN = 8
FF_MULT = 4
EPS = 1e-5


# ----------------------------- fused Pallas kernel ---------------------------
def _fused_forward_kernel(src_ref, t_ref, label_ref, slab_ref, out_ref, *,
                          layout, B, S, D, H, depth):
    Dh = D // H
    BS = B * S
    N = B * H * S                      # rows of the block-diag attention problem
    scale = 1.0 / math.sqrt(Dh)

    # ---- slab access: static, sublane-aligned views into the single param DMA --
    def get(name):
        r0, nr, nc = layout[name]
        return slab_ref[r0:r0 + nr, 0:nc]

    def dense(x, wname, bname):
        return jnp.dot(x, get(wname), preferred_element_type=jnp.float32) + get(bname)

    def ln(x, gname, bname):
        mu = jnp.mean(x, axis=-1, keepdims=True)
        var = jnp.mean((x - mu) ** 2, axis=-1, keepdims=True)
        return (x - mu) * jax.lax.rsqrt(var + EPS) * get(gname) + get(bname)

    def silu(x):
        return x * jax.nn.sigmoid(x)

    def erf_poly(x):
        # Abramowitz & Stegun 7.1.26 (|abs err| < 1.5e-7) — matches torch's exact
        # erf GELU to f32 precision using only VPU/EUP-friendly ops.
        a1, a2, a3 = 0.254829592, -0.284496736, 1.421413741
        a4, a5, pp = -1.453152027, 1.061405429, 0.3275911
        sgn = jnp.where(x < 0.0, -1.0, 1.0)
        ax = jnp.abs(x)
        tt = 1.0 / (1.0 + pp * ax)
        poly = ((((a5 * tt + a4) * tt + a3) * tt + a2) * tt + a1) * tt
        return sgn * (1.0 - poly * jnp.exp(-ax * ax))

    def gelu(x):
        # TODO(synk): exact-erf GELU approximated by a 1.5e-7-accurate polynomial
        # (lax.erf lowering is not relied upon inside Mosaic).
        return 0.5 * x * (1.0 + erf_poly(x * (1.0 / math.sqrt(2.0))))

    def expand_tokens(x_bd):
        # (B, D) -> (B*S, D): each batch row repeated S times (single broadcast).
        d = x_bd.shape[1]
        return jnp.broadcast_to(x_bd[:, None, :], (B, S, d)).reshape(BS, d)

    def tile_batch(x_sd):
        # (S, D) -> (B*S, D): whole block repeated B times.
        return x_sd if B == 1 else jnp.concatenate([x_sd] * B, axis=0)

    # ---- input embedding + positional encoding (in_b folded into pe host-side) --
    src = src_ref[...].reshape(BS, INPUT_DIM)
    x = jnp.dot(src, get("in_w"), preferred_element_type=jnp.float32)
    x = x + tile_batch(get("pe_in")[:S])                                     # (BS, D)

    # ---- time embedding: Fourier feats -> MLP(SiLU) -> Linear -> LayerNorm -----
    proj = (2.0 * math.pi) * t_ref[...] * get("rff_w")                        # (B, D/2)
    t_feat = jnp.concatenate([jnp.sin(proj), jnp.cos(proj)], axis=-1)         # (B, D)
    te = silu(dense(t_feat, "t_w1", "t_b1"))
    te = dense(te, "t_w2", "t_b2")
    te = ln(te, "t_ln_g", "t_ln_b")                                           # (B, D)
    t_tok = expand_tokens(te)                                                 # (BS, D)

    # ---- label embedding via one-hot matmul (gather-free) -----------------------
    classes = jax.lax.broadcasted_iota(jnp.int32, (1, NUM_CLASSES), 1)
    onehot = (label_ref[...] == classes).astype(jnp.float32)                  # (B, C)
    cond = jnp.dot(onehot, get("label_emb"), preferred_element_type=jnp.float32)  # (B, D)

    # ---- block-diagonal attention mask: groups of S rows share (head, batch) ----
    assert S & (S - 1) == 0, "S must be a power of two for the shift-based mask"
    shift = S.bit_length() - 1
    rg = jax.lax.broadcasted_iota(jnp.int32, (N, N), 0) >> shift
    cg = jax.lax.broadcasted_iota(jnp.int32, (N, N), 1) >> shift
    attn_mask = jnp.where(rg == cg, 0.0, -1e30).astype(jnp.float32)           # (N, N)

    def self_attention(h_n, l):
        qkv = dense(h_n, f"qkv_w_{l}", f"qkv_b_{l}")                          # (BS, 3D)

        def stack_heads(base):
            # (BS, D) head-interleaved columns -> (H*BS, Dh), rows ordered (head, b, s)
            return jnp.concatenate(
                [qkv[:, base + hd * Dh: base + (hd + 1) * Dh] for hd in range(H)],
                axis=0)

        q = stack_heads(0)                                                    # (N, Dh)
        k = stack_heads(D)
        v = stack_heads(2 * D)
        s = jax.lax.dot_general(q, k, (((1,), (1,)), ((), ())),
                                preferred_element_type=jnp.float32) * scale   # (N, N)
        s = s + attn_mask
        m = jnp.max(s, axis=-1, keepdims=True)
        p = jnp.exp(s - m)
        p = p / jnp.sum(p, axis=-1, keepdims=True)
        o = jnp.dot(p, v, preferred_element_type=jnp.float32)                 # (N, Dh)
        o = jnp.concatenate([o[hd * BS:(hd + 1) * BS, :] for hd in range(H)], axis=1)
        return dense(o, f"o_w_{l}", f"o_b_{l}")                               # (BS, D)

    # ---- transformer blocks (statically unrolled over depth) --------------------
    # TODO(synk): BasicTransformerBlock internals assumed (pre-LN self-attn,
    # single-token cross-attn, GELU FF, time token added each block, eval dropout).
    h = x
    for l in range(depth):
        h = h + t_tok
        h = h + self_attention(ln(h, f"ln1_g_{l}", f"ln1_b_{l}"), l)
        # Cross-attention against one label token: softmax over a single key == 1,
        # so the output is exactly V @ W_o (folded host-side into cross_w/cross_b).
        h = h + expand_tokens(dense(cond, f"cross_w_{l}", f"cross_b_{l}"))
        ff = dense(ln(h, f"ln3_g_{l}", f"ln3_b_{l}"), f"ff_w1_{l}", f"ff_b1_{l}")
        ff = dense(gelu(ff), f"ff_w2_{l}", f"ff_b2_{l}")
        h = h + ff

    # ---- final norm + output heads ----------------------------------------------
    h = ln(h, "norm_g", "norm_b")
    # var_emb = h.detach(): identical values in the forward pass.
    h1 = silu(dense(h, "head1_w", "head1_b"))                                 # (BS, 2D)
    out = dense(h1, "out_w2p", "out_b2")                                      # (BS, 3)
    var = silu(dense(h1, "var_w2p", "var_b2"))                                # (BS, D)
    var = dense(var, "var_w3", "var_b3")                                      # (BS, 3)

    res = jnp.concatenate(
        [out.reshape(B, S, INPUT_DIM), var.reshape(B, S, INPUT_DIM)], axis=1)  # (B, 2S, 3)
    out_ref[...] = res.astype(out_ref.dtype)


# ----------------------------- forward wrapper --------------------------------
def make_forward(layout):
    """Returns a jit-able forward(slab, src, t, label) with the static slab layout
    captured by closure (so jit never traces the layout metadata)."""

    def forward(slab, src, t, label):
        B, S, _ = src.shape
        kernel = functools.partial(
            _fused_forward_kernel, layout=layout,
            B=B, S=S, D=D_MODEL, H=NHEAD, depth=DEPTH)
        return pl.pallas_call(
            kernel,
            out_shape=jax.ShapeDtypeStruct((B, 2 * S, INPUT_DIM), jnp.float32),
        )(src.astype(jnp.float32),
          t.reshape(B, 1).astype(jnp.float32),
          label.reshape(B, 1).astype(jnp.int32),
          slab)

    return forward


# ----------------------------- parameter init ---------------------------------
def sinusoidal_pe(max_len, d):
    pos = jnp.arange(max_len, dtype=jnp.float32)[:, None]
    div = jnp.exp(jnp.arange(0, d, 2, dtype=jnp.float32) * (-math.log(10000.0) / d))
    pe = jnp.zeros((max_len, d), dtype=jnp.float32)
    pe = pe.at[:, 0::2].set(jnp.sin(pos * div))
    pe = pe.at[:, 1::2].set(jnp.cos(pos * div))
    return pe


def _dense_init(key, fan_in, fan_out):
    kw, kb = jax.random.split(key)
    std = 1.0 / math.sqrt(fan_in)
    w = jax.random.normal(kw, (fan_in, fan_out), jnp.float32) * std
    b = jax.random.normal(kb, (fan_out,), jnp.float32) * 0.01
    return w, b


def init_params(key, d=D_MODEL):
    keys = iter(jax.random.split(key, 128))
    p = {}
    p["in_w"], p["in_b"] = _dense_init(next(keys), INPUT_DIM, d)
    p["label_emb"] = jax.random.normal(next(keys), (NUM_CLASSES, d), jnp.float32) * 0.02
    p["pe"] = sinusoidal_pe(MAX_SEQ_LEN, d)
    p["rff_w"] = jax.random.normal(next(keys), (d // 2,), jnp.float32)
    p["t_w1"], p["t_b1"] = _dense_init(next(keys), d, d)
    p["t_w2"], p["t_b2"] = _dense_init(next(keys), d, d)
    p["t_ln_g"], p["t_ln_b"] = jnp.ones((d,), jnp.float32), jnp.zeros((d,), jnp.float32)

    blocks = []
    for _ in range(DEPTH):
        bp = {}
        for lname in ("ln1", "ln2", "ln3"):
            bp[f"{lname}_g"] = jnp.ones((d,), jnp.float32)
            bp[f"{lname}_b"] = jnp.zeros((d,), jnp.float32)
        for attn in ("attn1", "attn2"):
            ap = {}
            for name in ("q", "k", "v", "o"):
                ap[f"w{name}"], ap[f"b{name}"] = _dense_init(next(keys), d, d)
            bp[attn] = ap
        bp["ff_w1"], bp["ff_b1"] = _dense_init(next(keys), d, FF_MULT * d)
        bp["ff_w2"], bp["ff_b2"] = _dense_init(next(keys), FF_MULT * d, d)
        blocks.append(bp)
    p["blocks"] = blocks

    p["norm_g"], p["norm_b"] = jnp.ones((d,), jnp.float32), jnp.zeros((d,), jnp.float32)
    p["out_w1"], p["out_b1"] = _dense_init(next(keys), d, d)
    p["out_w2"], p["out_b2"] = _dense_init(next(keys), d, INPUT_DIM)
    p["var_w1"], p["var_b1"] = _dense_init(next(keys), d, d)
    p["var_w2"], p["var_b2"] = _dense_init(next(keys), d, d)
    p["var_w3"], p["var_b3"] = _dense_init(next(keys), d, INPUT_DIM)
    return p


# ----------------------------- slab packing ------------------------------------
class _SlabPacker:
    """Packs every parameter into one (rows, 128) f32 slab; each tensor starts on
    an 8-row boundary so in-kernel static slices are sublane-aligned."""

    def __init__(self, lanes=128):
        self.lanes = lanes
        self.rows = 0
        self.layout = {}
        self.items = []

    def add(self, name, arr):
        arr = jnp.asarray(arr, jnp.float32)
        if arr.ndim == 1:
            arr = arr.reshape(1, -1)
        nr, nc = arr.shape
        assert nc <= self.lanes, (name, arr.shape)
        self.layout[name] = (self.rows, nr, nc)
        self.items.append((self.rows, arr))
        self.rows += ((nr + 7) // 8) * 8

    def finalize(self):
        total = max(((self.rows + 7) // 8) * 8, 8)
        slab = jnp.zeros((total, self.lanes), jnp.float32)
        for r0, arr in self.items:
            slab = slab.at[r0:r0 + arr.shape[0], 0:arr.shape[1]].set(arr)
        return slab, self.layout


def pack_params(p, d=D_MODEL):
    """Fuse / fold / stack module parameters and pack them into a single slab.

    Host-side folds (all bit-exact algebra):
      * input-embedding bias folded into the positional encoding ("pe_in"),
      * QKV weights fused, out/var first head layers fused,
      * cross-attention (single cond token) collapsed to W_v @ W_o,
      * out_w2 / var_w2 zero-padded to (2D, .) so h1 needs no lane slice.
    ln2 and the cross-attention Q/K projections are provably dead (Sk = 1) and
    are not shipped to the kernel.
    """
    pk = _SlabPacker()
    pk.add("pe_in", p["pe"] + p["in_b"][None, :])
    pk.add("in_w", p["in_w"])
    pk.add("rff_w", p["rff_w"])
    pk.add("label_emb", p["label_emb"])
    pk.add("t_w1", p["t_w1"]); pk.add("t_b1", p["t_b1"])
    pk.add("t_w2", p["t_w2"]); pk.add("t_b2", p["t_b2"])
    pk.add("t_ln_g", p["t_ln_g"]); pk.add("t_ln_b", p["t_ln_b"])

    for l, bp in enumerate(p["blocks"]):
        a1, a2 = bp["attn1"], bp["attn2"]
        pk.add(f"ln1_g_{l}", bp["ln1_g"]); pk.add(f"ln1_b_{l}", bp["ln1_b"])
        pk.add(f"ln3_g_{l}", bp["ln3_g"]); pk.add(f"ln3_b_{l}", bp["ln3_b"])
        pk.add(f"qkv_w_{l}", jnp.concatenate([a1["wq"], a1["wk"], a1["wv"]], axis=1))
        pk.add(f"qkv_b_{l}", jnp.concatenate([a1["bq"], a1["bk"], a1["bv"]]))
        pk.add(f"o_w_{l}", a1["wo"]); pk.add(f"o_b_{l}", a1["bo"])
        pk.add(f"cross_w_{l}", a2["wv"] @ a2["wo"])
        pk.add(f"cross_b_{l}", a2["bv"] @ a2["wo"] + a2["bo"])
        pk.add(f"ff_w1_{l}", bp["ff_w1"]); pk.add(f"ff_b1_{l}", bp["ff_b1"])
        pk.add(f"ff_w2_{l}", bp["ff_w2"]); pk.add(f"ff_b2_{l}", bp["ff_b2"])

    pk.add("norm_g", p["norm_g"]); pk.add("norm_b", p["norm_b"])
    pk.add("head1_w", jnp.concatenate([p["out_w1"], p["var_w1"]], axis=1))
    pk.add("head1_b", jnp.concatenate([p["out_b1"], p["var_b1"]]))
    pk.add("out_w2p", jnp.concatenate(
        [p["out_w2"], jnp.zeros((d, INPUT_DIM), jnp.float32)], axis=0))
    pk.add("out_b2", p["out_b2"])
    pk.add("var_w2p", jnp.concatenate(
        [jnp.zeros((d, d), jnp.float32), p["var_w2"]], axis=0))
    pk.add("var_b2", p["var_b2"])
    pk.add("var_w3", p["var_w3"]); pk.add("var_b3", p["var_b3"])
    return pk.finalize()


# ----------------------------- main -------------------------------------------
if __name__ == "__main__":
    key = jax.random.PRNGKey(0)
    k_src, k_t, k_lab, k_param = jax.random.split(key, 4)

    B, S = 2, MAX_SEQ_LEN
    src = jax.random.normal(k_src, (B, S, INPUT_DIM), jnp.float32)
    t = jax.random.uniform(k_t, (B,), jnp.float32) * 1000.0
    label = jax.random.randint(k_lab, (B,), 0, NUM_CLASSES)

    params = init_params(k_param)
    slab, layout = pack_params(params)

    fwd = jax.jit(make_forward(layout))
    out = jax.block_until_ready(fwd(slab, src, t, label))

    assert out.shape == (B, 2 * S, INPUT_DIM), out.shape
    assert bool(jnp.all(jnp.isfinite(out)))
    print("KERNEL_OK")
</pallas_src>

<mosaic_0001>
module attributes {stable_mosaic.version = 11 : i64} {
  func.func @_fused_forward_kernel(%arg0: memref<2x8x3xf32, #tpu.memory_space<vmem>>, %arg1: memref<2x1xf32, #tpu.memory_space<vmem>>, %arg2: memref<2x1xi32, #tpu.memory_space<vmem>>, %arg3: memref<1024x128xf32, #tpu.memory_space<vmem>>, %arg4: memref<2x16x3xf32, #tpu.memory_space<vmem>>) attributes {dimension_semantics = [], scalar_prefetch = 0 : i64, scratch_operands = 0 : i64, tpu.core_type = #tpu.core_type<tc>} {
    %c0 = arith.constant 0 : index
    %c0_0 = arith.constant 0 : index
    %c0_1 = arith.constant 0 : index
    %0 = vector.load %arg0[%c0, %c0_0, %c0_1] : memref<2x8x3xf32, #tpu.memory_space<vmem>>, vector<2x8x3xf32>
    %1 = vector.shape_cast %0 : vector<2x8x3xf32> to vector<16x3xf32>
    %c8 = arith.constant 8 : index
    %c0_2 = arith.constant 0 : index
    %2 = vector.load %arg3[%c8, %c0_2] : memref<1024x128xf32, #tpu.memory_space<vmem>>, vector<3x32xf32>
    %cst = arith.constant dense<0.000000e+00> : vector<16x32xf32>
    %3 = tpu.matmul %1, %2, %cst {dimension_numbers = #tpu.dot_dimension_numbers<[1], [0], [0], [1], [0, 0, 1, 1], [], []>} : vector<16x3xf32>, vector<3x32xf32>, vector<16x32xf32> -> vector<16x32xf32>
    %c0_3 = arith.constant 0 : index
    %c0_4 = arith.constant 0 : index
    %4 = vector.load %arg3[%c0_3, %c0_4] : memref<1024x128xf32, #tpu.memory_space<vmem>>, vector<8x32xf32>
    %5 = tpu.concatenate %4, %4 in 0 : vector<8x32xf32>, vector<8x32xf32> -> vector<16x32xf32>
    %6 = arith.addf %3, %5 : vector<16x32xf32>
    %c0_5 = arith.constant 0 : index
    %c0_6 = arith.constant 0 : index
    %7 = vector.load %arg1[%c0_5, %c0_6] : memref<2x1xf32, #tpu.memory_space<vmem>>, vector<2x1xf32>
    %cst_7 = arith.constant 6.28318548 : f32
    %8 = vector.broadcast %cst_7 : f32 to vector<2x1xf32>
    %9 = arith.mulf %8, %7 : vector<2x1xf32>
    %c16 = arith.constant 16 : index
    %c0_8 = arith.constant 0 : index
    %10 = vector.load %arg3[%c16, %c0_8] : memref<1024x128xf32, #tpu.memory_space<vmem>>, vector<1x16xf32>
    %11 = vector.broadcast %9 : vector<2x1xf32> to vector<2x16xf32>
    %12 = vector.broadcast %10 : vector<1x16xf32> to vector<2x16xf32>
    %13 = arith.mulf %11, %12 : vector<2x16xf32>
    %14 = math.sin %13 : vector<2x16xf32>
    %15 = math.cos %13 : vector<2x16xf32>
    %16 = tpu.concatenate %14, %15 in 1 : vector<2x16xf32>, vector<2x16xf32> -> vector<2x32xf32>
    %c32 = arith.constant 32 : index
    %c0_9 = arith.constant 0 : index
    %17 = vector.load %arg3[%c32, %c0_9] : memref<1024x128xf32, #tpu.memory_space<vmem>>, vector<32x32xf32>
    %cst_10 = arith.constant dense<0.000000e+00> : vector<2x32xf32>
    %18 = tpu.matmul %16, %17, %cst_10 {dimension_numbers = #tpu.dot_dimension_numbers<[1], [0], [0], [1], [0, 0, 1, 1], [], []>} : vector<2x32xf32>, vector<32x32xf32>, vector<2x32xf32> -> vector<2x32xf32>
    %c64 = arith.constant 64 : index
    %c0_11 = arith.constant 0 : index
    %19 = vector.load %arg3[%c64, %c0_11] : memref<1024x128xf32, #tpu.memory_space<vmem>>, vector<1x32xf32>
    %20 = vector.broadcast %19 : vector<1x32xf32> to vector<2x32xf32>
    %21 = arith.addf %18, %20 : vector<2x32xf32>
    %22 = arith.negf %21 : vector<2x32xf32>
    %23 = math.exp %22 : vector<2x32xf32>
    %cst_12 = arith.constant 1.000000e+00 : f32
    %24 = vector.broadcast %cst_12 : f32 to vector<2x32xf32>
    %25 = arith.addf %24, %23 : vector<2x32xf32>
    %26 = arith.divf %24, %25 : vector<2x32xf32>
    %27 = arith.mulf %21, %26 : vector<2x32xf32>
    %c72 = arith.constant 72 : index
    %c0_13 = arith.constant 0 : index
    %28 = vector.load %arg3[%c72, %c0_13] : memref<1024x128xf32, #tpu.memory_space<vmem>>, vector<32x32xf32>
    %cst_14 = arith.constant dense<0.000000e+00> : vector<2x32xf32>
    %29 = tpu.matmul %27, %28, %cst_14 {dimension_numbers = #tpu.dot_dimension_numbers<[1], [0], [0], [1], [0, 0, 1, 1], [], []>} : vector<2x32xf32>, vector<32x32xf32>, vector<2x32xf32> -> vector<2x32xf32>
    %c104 = arith.constant 104 : index
    %c0_15 = arith.constant 0 : index
    %30 = vector.load %arg3[%c104, %c0_15] : memref<1024x128xf32, #tpu.memory_space<vmem>>, vector<1x32xf32>
    %31 = vector.broadcast %30 : vector<1x32xf32> to vector<2x32xf32>
    %32 = arith.addf %29, %31 : vector<2x32xf32>
    %cst_16 = arith.constant dense<0.000000e+00> : vector<2xf32>
    %33 = vector.multi_reduction <add>, %32, %cst_16 [1] : vector<2x32xf32> to vector<2xf32>
    %34 = vector.shape_cast %33 : vector<2xf32> to vector<2x1xf32>
    %cst_17 = arith.constant 3.200000e+01 : f32
    %35 = vector.broadcast %cst_17 : f32 to vector<2x1xf32>
    %36 = arith.divf %34, %35 : vector<2x1xf32>
    %37 = vector.broadcast %36 : vector<2x1xf32> to vector<2x32xf32>
    %38 = arith.subf %32, %37 : vector<2x32xf32>
    %39 = arith.mulf %38, %38 : vector<2x32xf32>
    %cst_18 = arith.constant dense<0.000000e+00> : vector<2xf32>
    %40 = vector.multi_reduction <add>, %39, %cst_18 [1] : vector<2x32xf32> to vector<2xf32>
    %41 = vector.shape_cast %40 : vector<2xf32> to vector<2x1xf32>
    %cst_19 = arith.constant 3.200000e+01 : f32
    %42 = vector.broadcast %cst_19 : f32 to vector<2x1xf32>
    %43 = arith.divf %41, %42 : vector<2x1xf32>
    %44 = vector.broadcast %36 : vector<2x1xf32> to vector<2x32xf32>
    %45 = arith.subf %32, %44 : vector<2x32xf32>
    %cst_20 = arith.constant 9.99999974E-6 : f32
    %46 = vector.broadcast %cst_20 : f32 to vector<2x1xf32>
    %47 = arith.addf %43, %46 : vector<2x1xf32>
    %48 = math.rsqrt %47 : vector<2x1xf32>
    %49 = vector.broadcast %48 : vector<2x1xf32> to vector<2x32xf32>
    %50 = arith.mulf %45, %49 : vector<2x32xf32>
    %c112 = arith.constant 112 : index
    %c0_21 = arith.constant 0 : index
    %51 = vector.load %arg3[%c112, %c0_21] : memref<1024x128xf32, #tpu.memory_space<vmem>>, vector<1x32xf32>
    %52 = vector.broadcast %51 : vector<1x32xf32> to vector<2x32xf32>
    %53 = arith.mulf %50, %52 : vector<2x32xf32>
    %c120 = arith.constant 120 : index
    %c0_22 = arith.constant 0 : index
    %54 = vector.load %arg3[%c120, %c0_22] : memref<1024x128xf32, #tpu.memory_space<vmem>>, vector<1x32xf32>
    %55 = vector.broadcast %54 : vector<1x32xf32> to vector<2x32xf32>
    %56 = arith.addf %53, %55 : vector<2x32xf32>
    %57 = vector.shape_cast %56 : vector<2x32xf32> to vector<2x1x32xf32>
    %58 = vector.shape_cast %57 : vector<2x1x32xf32> to vector<2x1x32xf32>
    %59 = vector.broadcast %58 : vector<2x1x32xf32> to vector<2x8x32xf32>
    %60 = vector.shape_cast %59 : vector<2x8x32xf32> to vector<16x32xf32>
    %61 = tpu.iota {dimensions = array<i32: 1>} : vector<1x8xi32>
    %c0_23 = arith.constant 0 : index
    %c0_24 = arith.constant 0 : index
    %62 = vector.load %arg2[%c0_23, %c0_24] : memref<2x1xi32, #tpu.memory_space<vmem>>, vector<2x1xi32>
    %63 = vector.broadcast %62 : vector<2x1xi32> to vector<2x8xi32>
    %64 = vector.broadcast %61 : vector<1x8xi32> to vector<2x8xi32>
    %65 = arith.cmpi eq, %63, %64 : vector<2x8xi32>
    %66 = arith.extui %65 : vector<2x8xi1> to vector<2x8xi32>
    %67 = arith.sitofp %66 : vector<2x8xi32> to vector<2x8xf32>
    %c24 = arith.constant 24 : index
    %c0_25 = arith.constant 0 : index
    %68 = vector.load %arg3[%c24, %c0_25] : memref<1024x128xf32, #tpu.memory_space<vmem>>, vector<8x32xf32>
    %cst_26 = arith.constant dense<0.000000e+00> : vector<2x32xf32>
    %69 = tpu.matmul %67, %68, %cst_26 {dimension_numbers = #tpu.dot_dimension_numbers<[1], [0], [0], [1], [0, 0, 1, 1], [], []>} : vector<2x8xf32>, vector<8x32xf32>, vector<2x32xf32> -> vector<2x32xf32>
    %70 = tpu.iota {dimensions = array<i32: 0>} : vector<64x64xi32>
    %c3_i32 = arith.constant 3 : i32
    %71 = vector.broadcast %c3_i32 : i32 to vector<64x64xi32>
    %72 = arith.shrsi %70, %71 : vector<64x64xi32>
    %73 = tpu.iota {dimensions = array<i32: 1>} : vector<64x64xi32>
    %c3_i32_27 = arith.constant 3 : i32
    %74 = vector.broadcast %c3_i32_27 : i32 to vector<64x64xi32>
    %75 = arith.shrsi %73, %74 : vector<64x64xi32>
    %76 = arith.cmpi eq, %72, %75 : vector<64x64xi32>
    %cst_28 = arith.constant 0.000000e+00 : f32
    %cst_29 = arith.constant -1.000000e+30 : f32
    %77 = vector.broadcast %cst_28 : f32 to vector<64x64xf32>
    %78 = vector.broadcast %cst_29 : f32 to vector<64x64xf32>
    %79 = arith.select %76, %77, %78 : vector<64x64xi1>, vector<64x64xf32>
    %80 = arith.addf %6, %60 : vector<16x32xf32>
    %cst_30 = arith.constant dense<0.000000e+00> : vector<16xf32>
    %81 = vector.multi_reduction <add>, %80, %cst_30 [1] : vector<16x32xf32> to vector<16xf32>
    %82 = vector.shape_cast %81 : vector<16xf32> to vector<16x1xf32>
    %cst_31 = arith.constant 3.200000e+01 : f32
    %83 = vector.broadcast %cst_31 : f32 to vector<16x1xf32>
    %84 = arith.divf %82, %83 : vector<16x1xf32>
    %85 = vector.broadcast %84 : vector<16x1xf32> to vector<16x32xf32>
    %86 = arith.subf %80, %85 : vector<16x32xf32>
    %87 = arith.mulf %86, %86 : vector<16x32xf32>
    %cst_32 = arith.constant dense<0.000000e+00> : vector<16xf32>
    %88 = vector.multi_reduction <add>, %87, %cst_32 [1] : vector<16x32xf32> to vector<16xf32>
    %89 = vector.shape_cast %88 : vector<16xf32> to vector<16x1xf32>
    %cst_33 = arith.constant 3.200000e+01 : f32
    %90 = vector.broadcast %cst_33 : f32 to vector<16x1xf32>
    %91 = arith.divf %89, %90 : vector<16x1xf32>
    %92 = vector.broadcast %84 : vector<16x1xf32> to vector<16x32xf32>
    %93 = arith.subf %80, %92 : vector<16x32xf32>
    %cst_34 = arith.constant 9.99999974E-6 : f32
    %94 = vector.broadcast %cst_34 : f32 to vector<16x1xf32>
    %95 = arith.addf %91, %94 : vector<16x1xf32>
    %96 = math.rsqrt %95 : vector<16x1xf32>
    %97 = vector.broadcast %96 : vector<16x1xf32> to vector<16x32xf32>
    %98 = arith.mulf %93, %97 : vector<16x32xf32>
    %c128 = arith.constant 128 : index
    %c0_35 = arith.constant 0 : index
    %99 = vector.load %arg3[%c128, %c0_35] : memref<1024x128xf32, #tpu.memory_space<vmem>>, vector<1x32xf32>
    %100 = vector.broadcast %99 : vector<1x32xf32> to vector<16x32xf32>
    %101 = arith.mulf %98, %100 : vector<16x32xf32>
    %c136 = arith.constant 136 : index
    %c0_36 = arith.constant 0 : index
    %102 = vector.load %arg3[%c136, %c0_36] : memref<1024x128xf32, #tpu.memory_space<vmem>>, vector<1x32xf32>
    %103 = vector.broadcast %102 : vector<1x32xf32> to vector<16x32xf32>
    %104 = arith.addf %101, %103 : vector<16x32xf32>
    %c160 = arith.constant 160 : index
    %c0_37 = arith.constant 0 : index
    %105 = vector.load %arg3[%c160, %c0_37] : memref<1024x128xf32, #tpu.memory_space<vmem>>, vector<32x96xf32>
    %cst_38 = arith.constant dense<0.000000e+00> : vector<16x96xf32>
    %106 = tpu.matmul %104, %105, %cst_38 {dimension_numbers = #tpu.dot_dimension_numbers<[1], [0], [0], [1], [0, 0, 1, 1], [], []>} : vector<16x32xf32>, vector<32x96xf32>, vector<16x96xf32> -> vector<16x96xf32>
    %c192 = arith.constant 192 : index
    %c0_39 = arith.constant 0 : index
    %107 = vector.load %arg3[%c192, %c0_39] : memref<1024x128xf32, #tpu.memory_space<vmem>>, vector<1x96xf32>
    %108 = vector.broadcast %107 : vector<1x96xf32> to vector<16x96xf32>
    %109 = arith.addf %106, %108 : vector<16x96xf32>
    %110 = vector.extract_strided_slice %109 {offsets = [0, 0], sizes = [16, 8], strides = [1, 1]} : vector<16x96xf32> to vector<16x8xf32>
    %111 = vector.extract_strided_slice %109 {offsets = [0, 8], sizes = [16, 8], strides = [1, 1]} : vector<16x96xf32> to vector<16x8xf32>
    %112 = vector.extract_strided_slice %109 {offsets = [0, 16], sizes = [16, 8], strides = [1, 1]} : vector<16x96xf32> to vector<16x8xf32>
    %113 = vector.extract_strided_slice %109 {offsets = [0, 24], sizes = [16, 8], strides = [1, 1]} : vector<16x96xf32> to vector<16x8xf32>
    %114 = tpu.concatenate %110, %111, %112, %113 in 0 : vector<16x8xf32>, vector<16x8xf32>, vector<16x8xf32>, vector<16x8xf32> -> vector<64x8xf32>
    %115 = vector.extract_strided_slice %109 {offsets = [0, 32], sizes = [16, 8], strides = [1, 1]} : vector<16x96xf32> to vector<16x8xf32>
    %116 = vector.extract_strided_slice %109 {offsets = [0, 40], sizes = [16, 8], strides = [1, 1]} : vector<16x96xf32> to vector<16x8xf32>
    %117 = vector.extract_strided_slice %109 {offsets = [0, 48], sizes = [16, 8], strides = [1, 1]} : vector<16x96xf32> to vector<16x8xf32>
    %118 = vector.extract_strided_slice %109 {offsets = [0, 56], sizes = [16, 8], strides = [1, 1]} : vector<16x96xf32> to vector<16x8xf32>
    %119 = tpu.concatenate %115, %116, %117, %118 in 0 : vector<16x8xf32>, vector<16x8xf32>, vector<16x8xf32>, vector<16x8xf32> -> vector<64x8xf32>
    %120 = vector.extract_strided_slice %109 {offsets = [0, 64], sizes = [16, 8], strides = [1, 1]} : vector<16x96xf32> to vector<16x8xf32>
    %121 = vector.extract_strided_slice %109 {offsets = [0, 72], sizes = [16, 8], strides = [1, 1]} : vector<16x96xf32> to vector<16x8xf32>
    %122 = vector.extract_strided_slice %109 {offsets = [0, 80], sizes = [16, 8], strides = [1, 1]} : vector<16x96xf32> to vector<16x8xf32>
    %123 = vector.extract_strided_slice %109 {offsets = [0, 88], sizes = [16, 8], strides = [1, 1]} : vector<16x96xf32> to vector<16x8xf32>
    %124 = tpu.concatenate %120, %121, %122, %123 in 0 : vector<16x8xf32>, vector<16x8xf32>, vector<16x8xf32>, vector<16x8xf32> -> vector<64x8xf32>
    %cst_40 = arith.constant dense<0.000000e+00> : vector<64x64xf32>
    %125 = tpu.matmul %114, %119, %cst_40 {dimension_numbers = #tpu.dot_dimension_numbers<[1], [1], [0], [0], [0, 0, 1, 0], [], []>} : vector<64x8xf32>, vector<64x8xf32>, vector<64x64xf32> -> vector<64x64xf32>
    %cst_41 = arith.constant 0.353553385 : f32
    %126 = vector.broadcast %cst_41 : f32 to vector<64x64xf32>
    %127 = arith.mulf %125, %126 : vector<64x64xf32>
    %128 = arith.addf %127, %79 : vector<64x64xf32>
    %cst_42 = arith.constant dense<0xFF800000> : vector<64xf32>
    %129 = vector.multi_reduction <maximumf>, %128, %cst_42 [1] : vector<64x64xf32> to vector<64xf32>
    %130 = vector.shape_cast %129 : vector<64xf32> to vector<64x1xf32>
    %131 = vector.broadcast %130 : vector<64x1xf32> to vector<64x64xf32>
    %132 = arith.subf %128, %131 : vector<64x64xf32>
    %133 = math.exp %132 : vector<64x64xf32>
    %cst_43 = arith.constant dense<0.000000e+00> : vector<64xf32>
    %134 = vector.multi_reduction <add>, %133, %cst_43 [1] : vector<64x64xf32> to vector<64xf32>
    %135 = vector.shape_cast %134 : vector<64xf32> to vector<64x1xf32>
    %136 = vector.broadcast %135 : vector<64x1xf32> to vector<64x64xf32>
    %137 = arith.divf %133, %136 : vector<64x64xf32>
    %cst_44 = arith.constant dense<0.000000e+00> : vector<64x8xf32>
    %138 = tpu.matmul %137, %124, %cst_44 {dimension_numbers = #tpu.dot_dimension_numbers<[1], [0], [0], [1], [0, 0, 1, 1], [], []>} : vector<64x64xf32>, vector<64x8xf32>, vector<64x8xf32> -> vector<64x8xf32>
    %139 = vector.extract_strided_slice %138 {offsets = [0, 0], sizes = [16, 8], strides = [1, 1]} : vector<64x8xf32> to vector<16x8xf32>
    %140 = vector.extract_strided_slice %138 {offsets = [16, 0], sizes = [16, 8], strides = [1, 1]} : vector<64x8xf32> to vector<16x8xf32>
    %141 = vector.extract_strided_slice %138 {offsets = [32, 0], sizes = [16, 8], strides = [1, 1]} : vector<64x8xf32> to vector<16x8xf32>
    %142 = vector.extract_strided_slice %138 {offsets = [48, 0], sizes = [16, 8], strides = [1, 1]} : vector<64x8xf32> to vector<16x8xf32>
    %143 = tpu.concatenate %139, %140, %141, %142 in 1 : vector<16x8xf32>, vector<16x8xf32>, vector<16x8xf32>, vector<16x8xf32> -> vector<16x32xf32>
    %c200 = arith.constant 200 : index
    %c0_45 = arith.constant 0 : index
    %144 = vector.load %arg3[%c200, %c0_45] : memref<1024x128xf32, #tpu.memory_space<vmem>>, vector<32x32xf32>
    %cst_46 = arith.constant dense<0.000000e+00> : vector<16x32xf32>
    %145 = tpu.matmul %143, %144, %cst_46 {dimension_numbers = #tpu.dot_dimension_numbers<[1], [0], [0], [1], [0, 0, 1, 1], [], []>} : vector<16x32xf32>, vector<32x32xf32>, vector<16x32xf32> -> vector<16x32xf32>
    %c232 = arith.constant 232 : index
    %c0_47 = arith.constant 0 : index
    %146 = vector.load %arg3[%c232, %c0_47] : memref<1024x128xf32, #tpu.memory_space<vmem>>, vector<1x32xf32>
    %147 = vector.broadcast %146 : vector<1x32xf32> to vector<16x32xf32>
    %148 = arith.addf %145, %147 : vector<16x32xf32>
    %149 = arith.addf %80, %148 : vector<16x32xf32>
    %c240 = arith.constant 240 : index
    %c0_48 = arith.constant 0 : index
    %150 = vector.load %arg3[%c240, %c0_48] : memref<1024x128xf32, #tpu.memory_space<vmem>>, vector<32x32xf32>
    %cst_49 = arith.constant dense<0.000000e+00> : vector<2x32xf32>
    %151 = tpu.matmul %69, %150, %cst_49 {dimension_numbers = #tpu.dot_dimension_numbers<[1], [0], [0], [1], [0, 0, 1, 1], [], []>} : vector<2x32xf32>, vector<32x32xf32>, vector<2x32xf32> -> vector<2x32xf32>
    %c272 = arith.constant 272 : index
    %c0_50 = arith.constant 0 : index
    %152 = vector.load %arg3[%c272, %c0_50] : memref<1024x128xf32, #tpu.memory_space<vmem>>, vector<1x32xf32>
    %153 = vector.broadcast %152 : vector<1x32xf32> to vector<2x32xf32>
    %154 = arith.addf %151, %153 : vector<2x32xf32>
    %155 = vector.shape_cast %154 : vector<2x32xf32> to vector<2x1x32xf32>
    %156 = vector.shape_cast %155 : vector<2x1x32xf32> to vector<2x1x32xf32>
    %157 = vector.broadcast %156 : vector<2x1x32xf32> to vector<2x8x32xf32>
    %158 = vector.shape_cast %157 : vector<2x8x32xf32> to vector<16x32xf32>
    %159 = arith.addf %149, %158 : vector<16x32xf32>
    %cst_51 = arith.constant dense<0.000000e+00> : vector<16xf32>
    %160 = vector.multi_reduction <add>, %159, %cst_51 [1] : vector<16x32xf32> to vector<16xf32>
    %161 = vector.shape_cast %160 : vector<16xf32> to vector<16x1xf32>
    %cst_52 = arith.constant 3.200000e+01 : f32
    %162 = vector.broadcast %cst_52 : f32 to vector<16x1xf32>
    %163 = arith.divf %161, %162 : vector<16x1xf32>
    %164 = vector.broadcast %163 : vector<16x1xf32> to vector<16x32xf32>
    %165 = arith.subf %159, %164 : vector<16x32xf32>
    %166 = arith.mulf %165, %165 : vector<16x32xf32>
    %cst_53 = arith.constant dense<0.000000e+00> : vector<16xf32>
    %167 = vector.multi_reduction <add>, %166, %cst_53 [1] : vector<16x32xf32> to vector<16xf32>
    %168 = vector.shape_cast %167 : vector<16xf32> to vector<16x1xf32>
    %cst_54 = arith.constant 3.200000e+01 : f32
    %169 = vector.broadcast %cst_54 : f32 to vector<16x1xf32>
    %170 = arith.divf %168, %169 : vector<16x1xf32>
    %171 = vector.broadcast %163 : vector<16x1xf32> to vector<16x32xf32>
    %172 = arith.subf %159, %171 : vector<16x32xf32>
    %cst_55 = arith.constant 9.99999974E-6 : f32
    %173 = vector.broadcast %cst_55 : f32 to vector<16x1xf32>
    %174 = arith.addf %170, %173 : vector<16x1xf32>
    %175 = math.rsqrt %174 : vector<16x1xf32>
    %176 = vector.broadcast %175 : vector<16x1xf32> to vector<16x32xf32>
    %177 = arith.mulf %172, %176 : vector<16x32xf32>
    %c144 = arith.constant 144 : index
    %c0_56 = arith.constant 0 : index
    %178 = vector.load %arg3[%c144, %c0_56] : memref<1024x128xf32, #tpu.memory_space<vmem>>, vector<1x32xf32>
    %179 = vector.broadcast %178 : vector<1x32xf32> to vector<16x32xf32>
    %180 = arith.mulf %177, %179 : vector<16x32xf32>
    %c152 = arith.constant 152 : index
    %c0_57 = arith.constant 0 : index
    %181 = vector.load %arg3[%c152, %c0_57] : memref<1024x128xf32, #tpu.memory_space<vmem>>, vector<1x32xf32>
    %182 = vector.broadcast %181 : vector<1x32xf32> to vector<16x32xf32>
    %183 = arith.addf %180, %182 : vector<16x32xf32>
    %c280 = arith.constant 280 : index
    %c0_58 = arith.constant 0 : index
    %184 = vector.load %arg3[%c280, %c0_58] : memref<1024x128xf32, #tpu.memory_space<vmem>>, vector<32x128xf32>
    %cst_59 = arith.constant dense<0.000000e+00> : vector<16x128xf32>
    %185 = tpu.matmul %183, %184, %cst_59 {dimension_numbers = #tpu.dot_dimension_numbers<[1], [0], [0], [1], [0, 0, 1, 1], [], []>} : vector<16x32xf32>, vector<32x128xf32>, vector<16x128xf32> -> vector<16x128xf32>
    %c312 = arith.constant 312 : index
    %c0_60 = arith.constant 0 : index
    %186 = vector.load %arg3[%c312, %c0_60] : memref<1024x128xf32, #tpu.memory_space<vmem>>, vector<1x128xf32>
    %187 = vector.broadcast %186 : vector<1x128xf32> to vector<16x128xf32>
    %188 = arith.addf %185, %187 : vector<16x128xf32>
    %cst_61 = arith.constant 5.000000e-01 : f32
    %189 = vector.broadcast %cst_61 : f32 to vector<16x128xf32>
    %190 = arith.mulf %189, %188 : vector<16x128xf32>
    %cst_62 = arith.constant 0.707106769 : f32
    %191 = vector.broadcast %cst_62 : f32 to vector<16x128xf32>
    %192 = arith.mulf %188, %191 : vector<16x128xf32>
    %cst_63 = arith.constant 0.000000e+00 : f32
    %193 = vector.broadcast %cst_63 : f32 to vector<16x128xf32>
    %194 = arith.cmpf olt, %192, %193 : vector<16x128xf32>
    %cst_64 = arith.constant -1.000000e+00 : f32
    %cst_65 = arith.constant 1.000000e+00 : f32
    %195 = vector.broadcast %cst_64 : f32 to vector<16x128xf32>
    %196 = vector.broadcast %cst_65 : f32 to vector<16x128xf32>
    %197 = arith.select %194, %195, %196 : vector<16x128xi1>, vector<16x128xf32>
    %198 = math.absf %192 : vector<16x128xf32>
    %cst_66 = arith.constant 0.327591091 : f32
    %199 = vector.broadcast %cst_66 : f32 to vector<16x128xf32>
    %200 = arith.mulf %199, %198 : vector<16x128xf32>
    %cst_67 = arith.constant 1.000000e+00 : f32
    %201 = vector.broadcast %cst_67 : f32 to vector<16x128xf32>
    %202 = arith.addf %201, %200 : vector<16x128xf32>
    %cst_68 = arith.constant 1.000000e+00 : f32
    %203 = vector.broadcast %cst_68 : f32 to vector<16x128xf32>
    %204 = arith.divf %203, %202 : vector<16x128xf32>
    %cst_69 = arith.constant 1.06140542 : f32
    %205 = vector.broadcast %cst_69 : f32 to vector<16x128xf32>
    %206 = arith.mulf %205, %204 : vector<16x128xf32>
    %cst_70 = arith.constant -1.45315206 : f32
    %207 = vector.broadcast %cst_70 : f32 to vector<16x128xf32>
    %208 = arith.addf %206, %207 : vector<16x128xf32>
    %209 = arith.mulf %208, %204 : vector<16x128xf32>
    %cst_71 = arith.constant 1.42141378 : f32
    %210 = vector.broadcast %cst_71 : f32 to vector<16x128xf32>
    %211 = arith.addf %209, %210 : vector<16x128xf32>
    %212 = arith.mulf %211, %204 : vector<16x128xf32>
    %cst_72 = arith.constant -0.284496725 : f32
    %213 = vector.broadcast %cst_72 : f32 to vector<16x128xf32>
    %214 = arith.addf %212, %213 : vector<16x128xf32>
    %215 = arith.mulf %214, %204 : vector<16x128xf32>
    %cst_73 = arith.constant 0.254829586 : f32
    %216 = vector.broadcast %cst_73 : f32 to vector<16x128xf32>
    %217 = arith.addf %215, %216 : vector<16x128xf32>
    %218 = arith.mulf %217, %204 : vector<16x128xf32>
    %cst_74 = arith.constant 0.000000e+00 : f32
    %219 = vector.broadcast %cst_74 : f32 to vector<16x128xf32>
    %220 = arith.subf %219, %198 : vector<16x128xf32>
    %221 = arith.mulf %220, %198 : vector<16x128xf32>
    %222 = math.exp %221 : vector<16x128xf32>
    %223 = arith.mulf %218, %222 : vector<16x128xf32>
    %cst_75 = arith.constant 1.000000e+00 : f32
    %224 = vector.broadcast %cst_75 : f32 to vector<16x128xf32>
    %225 = arith.subf %224, %223 : vector<16x128xf32>
    %226 = arith.mulf %197, %225 : vector<16x128xf32>
    %cst_76 = arith.constant 1.000000e+00 : f32
    %227 = vector.broadcast %cst_76 : f32 to vector<16x128xf32>
    %228 = arith.addf %227, %226 : vector<16x128xf32>
    %229 = arith.mulf %190, %228 : vector<16x128xf32>
    %c320 = arith.constant 320 : index
    %c0_77 = arith.constant 0 : index
    %230 = vector.load %arg3[%c320, %c0_77] : memref<1024x128xf32, #tpu.memory_space<vmem>>, vector<128x32xf32>
    %cst_78 = arith.constant dense<0.000000e+00> : vector<16x32xf32>
    %231 = tpu.matmul %229, %230, %cst_78 {dimension_numbers = #tpu.dot_dimension_numbers<[1], [0], [0], [1], [0, 0, 1, 1], [], []>} : vector<16x128xf32>, vector<128x32xf32>, vector<16x32xf32> -> vector<16x32xf32>
    %c448 = arith.constant 448 : index
    %c0_79 = arith.constant 0 : index
    %232 = vector.load %arg3[%c448, %c0_79] : memref<1024x128xf32, #tpu.memory_space<vmem>>, vector<1x32xf32>
    %233 = vector.broadcast %232 : vector<1x32xf32> to vector<16x32xf32>
    %234 = arith.addf %231, %233 : vector<16x32xf32>
    %235 = arith.addf %159, %234 : vector<16x32xf32>
    %236 = arith.addf %235, %60 : vector<16x32xf32>
    %cst_80 = arith.constant dense<0.000000e+00> : vector<16xf32>
    %237 = vector.multi_reduction <add>, %236, %cst_80 [1] : vector<16x32xf32> to vector<16xf32>
    %238 = vector.shape_cast %237 : vector<16xf32> to vector<16x1xf32>
    %cst_81 = arith.constant 3.200000e+01 : f32
    %239 = vector.broadcast %cst_81 : f32 to vector<16x1xf32>
    %240 = arith.divf %238, %239 : vector<16x1xf32>
    %241 = vector.broadcast %240 : vector<16x1xf32> to vector<16x32xf32>
    %242 = arith.subf %236, %241 : vector<16x32xf32>
    %243 = arith.mulf %242, %242 : vector<16x32xf32>
    %cst_82 = arith.constant dense<0.000000e+00> : vector<16xf32>
    %244 = vector.multi_reduction <add>, %243, %cst_82 [1] : vector<16x32xf32> to vector<16xf32>
    %245 = vector.shape_cast %244 : vector<16xf32> to vector<16x1xf32>
    %cst_83 = arith.constant 3.200000e+01 : f32
    %246 = vector.broadcast %cst_83 : f32 to vector<16x1xf32>
    %247 = arith.divf %245, %246 : vector<16x1xf32>
    %248 = vector.broadcast %240 : vector<16x1xf32> to vector<16x32xf32>
    %249 = arith.subf %236, %248 : vector<16x32xf32>
    %cst_84 = arith.constant 9.99999974E-6 : f32
    %250 = vector.broadcast %cst_84 : f32 to vector<16x1xf32>
    %251 = arith.addf %247, %250 : vector<16x1xf32>
    %252 = math.rsqrt %251 : vector<16x1xf32>
    %253 = vector.broadcast %252 : vector<16x1xf32> to vector<16x32xf32>
    %254 = arith.mulf %249, %253 : vector<16x32xf32>
    %c456 = arith.constant 456 : index
    %c0_85 = arith.constant 0 : index
    %255 = vector.load %arg3[%c456, %c0_85] : memref<1024x128xf32, #tpu.memory_space<vmem>>, vector<1x32xf32>
    %256 = vector.broadcast %255 : vector<1x32xf32> to vector<16x32xf32>
    %257 = arith.mulf %254, %256 : vector<16x32xf32>
    %c464 = arith.constant 464 : index
    %c0_86 = arith.constant 0 : index
    %258 = vector.load %arg3[%c464, %c0_86] : memref<1024x128xf32, #tpu.memory_space<vmem>>, vector<1x32xf32>
    %259 = vector.broadcast %258 : vector<1x32xf32> to vector<16x32xf32>
    %260 = arith.addf %257, %259 : vector<16x32xf32>
    %c488 = arith.constant 488 : index
    %c0_87 = arith.constant 0 : index
    %261 = vector.load %arg3[%c488, %c0_87] : memref<1024x128xf32, #tpu.memory_space<vmem>>, vector<32x96xf32>
    %cst_88 = arith.constant dense<0.000000e+00> : vector<16x96xf32>
    %262 = tpu.matmul %260, %261, %cst_88 {dimension_numbers = #tpu.dot_dimension_numbers<[1], [0], [0], [1], [0, 0, 1, 1], [], []>} : vector<16x32xf32>, vector<32x96xf32>, vector<16x96xf32> -> vector<16x96xf32>
    %c520 = arith.constant 520 : index
    %c0_89 = arith.constant 0 : index
    %263 = vector.load %arg3[%c520, %c0_89] : memref<1024x128xf32, #tpu.memory_space<vmem>>, vector<1x96xf32>
    %264 = vector.broadcast %263 : vector<1x96xf32> to vector<16x96xf32>
    %265 = arith.addf %262, %264 : vector<16x96xf32>
    %266 = vector.extract_strided_slice %265 {offsets = [0, 0], sizes = [16, 8], strides = [1, 1]} : vector<16x96xf32> to vector<16x8xf32>
    %267 = vector.extract_strided_slice %265 {offsets = [0, 8], sizes = [16, 8], strides = [1, 1]} : vector<16x96xf32> to vector<16x8xf32>
    %268 = vector.extract_strided_slice %265 {offsets = [0, 16], sizes = [16, 8], strides = [1, 1]} : vector<16x96xf32> to vector<16x8xf32>
    %269 = vector.extract_strided_slice %265 {offsets = [0, 24], sizes = [16, 8], strides = [1, 1]} : vector<16x96xf32> to vector<16x8xf32>
    %270 = tpu.concatenate %266, %267, %268, %269 in 0 : vector<16x8xf32>, vector<16x8xf32>, vector<16x8xf32>, vector<16x8xf32> -> vector<64x8xf32>
    %271 = vector.extract_strided_slice %265 {offsets = [0, 32], sizes = [16, 8], strides = [1, 1]} : vector<16x96xf32> to vector<16x8xf32>
    %272 = vector.extract_strided_slice %265 {offsets = [0, 40], sizes = [16, 8], strides = [1, 1]} : vector<16x96xf32> to vector<16x8xf32>
    %273 = vector.extract_strided_slice %265 {offsets = [0, 48], sizes = [16, 8], strides = [1, 1]} : vector<16x96xf32> to vector<16x8xf32>
    %274 = vector.extract_strided_slice %265 {offsets = [0, 56], sizes = [16, 8], strides = [1, 1]} : vector<16x96xf32> to vector<16x8xf32>
    %275 = tpu.concatenate %271, %272, %273, %274 in 0 : vector<16x8xf32>, vector<16x8xf32>, vector<16x8xf32>, vector<16x8xf32> -> vector<64x8xf32>
    %276 = vector.extract_strided_slice %265 {offsets = [0, 64], sizes = [16, 8], strides = [1, 1]} : vector<16x96xf32> to vector<16x8xf32>
    %277 = vector.extract_strided_slice %265 {offsets = [0, 72], sizes = [16, 8], strides = [1, 1]} : vector<16x96xf32> to vector<16x8xf32>
    %278 = vector.extract_strided_slice %265 {offsets = [0, 80], sizes = [16, 8], strides = [1, 1]} : vector<16x96xf32> to vector<16x8xf32>
    %279 = vector.extract_strided_slice %265 {offsets = [0, 88], sizes = [16, 8], strides = [1, 1]} : vector<16x96xf32> to vector<16x8xf32>
    %280 = tpu.concatenate %276, %277, %278, %279 in 0 : vector<16x8xf32>, vector<16x8xf32>, vector<16x8xf32>, vector<16x8xf32> -> vector<64x8xf32>
    %cst_90 = arith.constant dense<0.000000e+00> : vector<64x64xf32>
    %281 = tpu.matmul %270, %275, %cst_90 {dimension_numbers = #tpu.dot_dimension_numbers<[1], [1], [0], [0], [0, 0, 1, 0], [], []>} : vector<64x8xf32>, vector<64x8xf32>, vector<64x64xf32> -> vector<64x64xf32>
    %cst_91 = arith.constant 0.353553385 : f32
    %282 = vector.broadcast %cst_91 : f32 to vector<64x64xf32>
    %283 = arith.mulf %281, %282 : vector<64x64xf32>
    %284 = arith.addf %283, %79 : vector<64x64xf32>
    %cst_92 = arith.constant dense<0xFF800000> : vector<64xf32>
    %285 = vector.multi_reduction <maximumf>, %284, %cst_92 [1] : vector<64x64xf32> to vector<64xf32>
    %286 = vector.shape_cast %285 : vector<64xf32> to vector<64x1xf32>
    %287 = vector.broadcast %286 : vector<64x1xf32> to vector<64x64xf32>
    %288 = arith.subf %284, %287 : vector<64x64xf32>
    %289 = math.exp %288 : vector<64x64xf32>
    %cst_93 = arith.constant dense<0.000000e+00> : vector<64xf32>
    %290 = vector.multi_reduction <add>, %289, %cst_93 [1] : vector<64x64xf32> to vector<64xf32>
    %291 = vector.shape_cast %290 : vector<64xf32> to vector<64x1xf32>
    %292 = vector.broadcast %291 : vector<64x1xf32> to vector<64x64xf32>
    %293 = arith.divf %289, %292 : vector<64x64xf32>
    %cst_94 = arith.constant dense<0.000000e+00> : vector<64x8xf32>
    %294 = tpu.matmul %293, %280, %cst_94 {dimension_numbers = #tpu.dot_dimension_numbers<[1], [0], [0], [1], [0, 0, 1, 1], [], []>} : vector<64x64xf32>, vector<64x8xf32>, vector<64x8xf32> -> vector<64x8xf32>
    %295 = vector.extract_strided_slice %294 {offsets = [0, 0], sizes = [16, 8], strides = [1, 1]} : vector<64x8xf32> to vector<16x8xf32>
    %296 = vector.extract_strided_slice %294 {offsets = [16, 0], sizes = [16, 8], strides = [1, 1]} : vector<64x8xf32> to vector<16x8xf32>
    %297 = vector.extract_strided_slice %294 {offsets = [32, 0], sizes = [16, 8], strides = [1, 1]} : vector<64x8xf32> to vector<16x8xf32>
    %298 = vector.extract_strided_slice %294 {offsets = [48, 0], sizes = [16, 8], strides = [1, 1]} : vector<64x8xf32> to vector<16x8xf32>
    %299 = tpu.concatenate %295, %296, %297, %298 in 1 : vector<16x8xf32>, vector<16x8xf32>, vector<16x8xf32>, vector<16x8xf32> -> vector<16x32xf32>
    %c528 = arith.constant 528 : index
    %c0_95 = arith.constant 0 : index
    %300 = vector.load %arg3[%c528, %c0_95] : memref<1024x128xf32, #tpu.memory_space<vmem>>, vector<32x32xf32>
    %cst_96 = arith.constant dense<0.000000e+00> : vector<16x32xf32>
    %301 = tpu.matmul %299, %300, %cst_96 {dimension_numbers = #tpu.dot_dimension_numbers<[1], [0], [0], [1], [0, 0, 1, 1], [], []>} : vector<16x32xf32>, vector<32x32xf32>, vector<16x32xf32> -> vector<16x32xf32>
    %c560 = arith.constant 560 : index
    %c0_97 = arith.constant 0 : index
    %302 = vector.load %arg3[%c560, %c0_97] : memref<1024x128xf32, #tpu.memory_space<vmem>>, vector<1x32xf32>
    %303 = vector.broadcast %302 : vector<1x32xf32> to vector<16x32xf32>
    %304 = arith.addf %301, %303 : vector<16x32xf32>
    %305 = arith.addf %236, %304 : vector<16x32xf32>
    %c568 = arith.constant 568 : index
    %c0_98 = arith.constant 0 : index
    %306 = vector.load %arg3[%c568, %c0_98] : memref<1024x128xf32, #tpu.memory_space<vmem>>, vector<32x32xf32>
    %cst_99 = arith.constant dense<0.000000e+00> : vector<2x32xf32>
    %307 = tpu.matmul %69, %306, %cst_99 {dimension_numbers = #tpu.dot_dimension_numbers<[1], [0], [0], [1], [0, 0, 1, 1], [], []>} : vector<2x32xf32>, vector<32x32xf32>, vector<2x32xf32> -> vector<2x32xf32>
    %c600 = arith.constant 600 : index
    %c0_100 = arith.constant 0 : index
    %308 = vector.load %arg3[%c600, %c0_100] : memref<1024x128xf32, #tpu.memory_space<vmem>>, vector<1x32xf32>
    %309 = vector.broadcast %308 : vector<1x32xf32> to vector<2x32xf32>
    %310 = arith.addf %307, %309 : vector<2x32xf32>
    %311 = vector.shape_cast %310 : vector<2x32xf32> to vector<2x1x32xf32>
    %312 = vector.shape_cast %311 : vector<2x1x32xf32> to vector<2x1x32xf32>
    %313 = vector.broadcast %312 : vector<2x1x32xf32> to vector<2x8x32xf32>
    %314 = vector.shape_cast %313 : vector<2x8x32xf32> to vector<16x32xf32>
    %315 = arith.addf %305, %314 : vector<16x32xf32>
    %cst_101 = arith.constant dense<0.000000e+00> : vector<16xf32>
    %316 = vector.multi_reduction <add>, %315, %cst_101 [1] : vector<16x32xf32> to vector<16xf32>
    %317 = vector.shape_cast %316 : vector<16xf32> to vector<16x1xf32>
    %cst_102 = arith.constant 3.200000e+01 : f32
    %318 = vector.broadcast %cst_102 : f32 to vector<16x1xf32>
    %319 = arith.divf %317, %318 : vector<16x1xf32>
    %320 = vector.broadcast %319 : vector<16x1xf32> to vector<16x32xf32>
    %321 = arith.subf %315, %320 : vector<16x32xf32>
    %322 = arith.mulf %321, %321 : vector<16x32xf32>
    %cst_103 = arith.constant dense<0.000000e+00> : vector<16xf32>
    %323 = vector.multi_reduction <add>, %322, %cst_103 [1] : vector<16x32xf32> to vector<16xf32>
    %324 = vector.shape_cast %323 : vector<16xf32> to vector<16x1xf32>
    %cst_104 = arith.constant 3.200000e+01 : f32
    %325 = vector.broadcast %cst_104 : f32 to vector<16x1xf32>
    %326 = arith.divf %324, %325 : vector<16x1xf32>
    %327 = vector.broadcast %319 : vector<16x1xf32> to vector<16x32xf32>
    %328 = arith.subf %315, %327 : vector<16x32xf32>
    %cst_105 = arith.constant 9.99999974E-6 : f32
    %329 = vector.broadcast %cst_105 : f32 to vector<16x1xf32>
    %330 = arith.addf %326, %329 : vector<16x1xf32>
    %331 = math.rsqrt %330 : vector<16x1xf32>
    %332 = vector.broadcast %331 : vector<16x1xf32> to vector<16x32xf32>
    %333 = arith.mulf %328, %332 : vector<16x32xf32>
    %c472 = arith.constant 472 : index
    %c0_106 = arith.constant 0 : index
    %334 = vector.load %arg3[%c472, %c0_106] : memref<1024x128xf32, #tpu.memory_space<vmem>>, vector<1x32xf32>
    %335 = vector.broadcast %334 : vector<1x32xf32> to vector<16x32xf32>
    %336 = arith.mulf %333, %335 : vector<16x32xf32>
    %c480 = arith.constant 480 : index
    %c0_107 = arith.constant 0 : index
    %337 = vector.load %arg3[%c480, %c0_107] : memref<1024x128xf32, #tpu.memory_space<vmem>>, vector<1x32xf32>
    %338 = vector.broadcast %337 : vector<1x32xf32> to vector<16x32xf32>
    %339 = arith.addf %336, %338 : vector<16x32xf32>
    %c608 = arith.constant 608 : index
    %c0_108 = arith.constant 0 : index
    %340 = vector.load %arg3[%c608, %c0_108] : memref<1024x128xf32, #tpu.memory_space<vmem>>, vector<32x128xf32>
    %cst_109 = arith.constant dense<0.000000e+00> : vector<16x128xf32>
    %341 = tpu.matmul %339, %340, %cst_109 {dimension_numbers = #tpu.dot_dimension_numbers<[1], [0], [0], [1], [0, 0, 1, 1], [], []>} : vector<16x32xf32>, vector<32x128xf32>, vector<16x128xf32> -> vector<16x128xf32>
    %c640 = arith.constant 640 : index
    %c0_110 = arith.constant 0 : index
    %342 = vector.load %arg3[%c640, %c0_110] : memref<1024x128xf32, #tpu.memory_space<vmem>>, vector<1x128xf32>
    %343 = vector.broadcast %342 : vector<1x128xf32> to vector<16x128xf32>
    %344 = arith.addf %341, %343 : vector<16x128xf32>
    %cst_111 = arith.constant 5.000000e-01 : f32
    %345 = vector.broadcast %cst_111 : f32 to vector<16x128xf32>
    %346 = arith.mulf %345, %344 : vector<16x128xf32>
    %cst_112 = arith.constant 0.707106769 : f32
    %347 = vector.broadcast %cst_112 : f32 to vector<16x128xf32>
    %348 = arith.mulf %344, %347 : vector<16x128xf32>
    %cst_113 = arith.constant 0.000000e+00 : f32
    %349 = vector.broadcast %cst_113 : f32 to vector<16x128xf32>
    %350 = arith.cmpf olt, %348, %349 : vector<16x128xf32>
    %cst_114 = arith.constant -1.000000e+00 : f32
    %cst_115 = arith.constant 1.000000e+00 : f32
    %351 = vector.broadcast %cst_114 : f32 to vector<16x128xf32>
    %352 = vector.broadcast %cst_115 : f32 to vector<16x128xf32>
    %353 = arith.select %350, %351, %352 : vector<16x128xi1>, vector<16x128xf32>
    %354 = math.absf %348 : vector<16x128xf32>
    %cst_116 = arith.constant 0.327591091 : f32
    %355 = vector.broadcast %cst_116 : f32 to vector<16x128xf32>
    %356 = arith.mulf %355, %354 : vector<16x128xf32>
    %cst_117 = arith.constant 1.000000e+00 : f32
    %357 = vector.broadcast %cst_117 : f32 to vector<16x128xf32>
    %358 = arith.addf %357, %356 : vector<16x128xf32>
    %cst_118 = arith.constant 1.000000e+00 : f32
    %359 = vector.broadcast %cst_118 : f32 to vector<16x128xf32>
    %360 = arith.divf %359, %358 : vector<16x128xf32>
    %cst_119 = arith.constant 1.06140542 : f32
    %361 = vector.broadcast %cst_119 : f32 to vector<16x128xf32>
    %362 = arith.mulf %361, %360 : vector<16x128xf32>
    %cst_120 = arith.constant -1.45315206 : f32
    %363 = vector.broadcast %cst_120 : f32 to vector<16x128xf32>
    %364 = arith.addf %362, %363 : vector<16x128xf32>
    %365 = arith.mulf %364, %360 : vector<16x128xf32>
    %cst_121 = arith.constant 1.42141378 : f32
    %366 = vector.broadcast %cst_121 : f32 to vector<16x128xf32>
    %367 = arith.addf %365, %366 : vector<16x128xf32>
    %368 = arith.mulf %367, %360 : vector<16x128xf32>
    %cst_122 = arith.constant -0.284496725 : f32
    %369 = vector.broadcast %cst_122 : f32 to vector<16x128xf32>
    %370 = arith.addf %368, %369 : vector<16x128xf32>
    %371 = arith.mulf %370, %360 : vector<16x128xf32>
    %cst_123 = arith.constant 0.254829586 : f32
    %372 = vector.broadcast %cst_123 : f32 to vector<16x128xf32>
    %373 = arith.addf %371, %372 : vector<16x128xf32>
    %374 = arith.mulf %373, %360 : vector<16x128xf32>
    %cst_124 = arith.constant 0.000000e+00 : f32
    %375 = vector.broadcast %cst_124 : f32 to vector<16x128xf32>
    %376 = arith.subf %375, %354 : vector<16x128xf32>
    %377 = arith.mulf %376, %354 : vector<16x128xf32>
    %378 = math.exp %377 : vector<16x128xf32>
    %379 = arith.mulf %374, %378 : vector<16x128xf32>
    %cst_125 = arith.constant 1.000000e+00 : f32
    %380 = vector.broadcast %cst_125 : f32 to vector<16x128xf32>
    %381 = arith.subf %380, %379 : vector<16x128xf32>
    %382 = arith.mulf %353, %381 : vector<16x128xf32>
    %cst_126 = arith.constant 1.000000e+00 : f32
    %383 = vector.broadcast %cst_126 : f32 to vector<16x128xf32>
    %384 = arith.addf %383, %382 : vector<16x128xf32>
    %385 = arith.mulf %346, %384 : vector<16x128xf32>
    %c648 = arith.constant 648 : index
    %c0_127 = arith.constant 0 : index
    %386 = vector.load %arg3[%c648, %c0_127] : memref<1024x128xf32, #tpu.memory_space<vmem>>, vector<128x32xf32>
    %cst_128 = arith.constant dense<0.000000e+00> : vector<16x32xf32>
    %387 = tpu.matmul %385, %386, %cst_128 {dimension_numbers = #tpu.dot_dimension_numbers<[1], [0], [0], [1], [0, 0, 1, 1], [], []>} : vector<16x128xf32>, vector<128x32xf32>, vector<16x32xf32> -> vector<16x32xf32>
    %c776 = arith.constant 776 : index
    %c0_129 = arith.constant 0 : index
    %388 = vector.load %arg3[%c776, %c0_129] : memref<1024x128xf32, #tpu.memory_space<vmem>>, vector<1x32xf32>
    %389 = vector.broadcast %388 : vector<1x32xf32> to vector<16x32xf32>
    %390 = arith.addf %387, %389 : vector<16x32xf32>
    %391 = arith.addf %315, %390 : vector<16x32xf32>
    %cst_130 = arith.constant dense<0.000000e+00> : vector<16xf32>
    %392 = vector.multi_reduction <add>, %391, %cst_130 [1] : vector<16x32xf32> to vector<16xf32>
    %393 = vector.shape_cast %392 : vector<16xf32> to vector<16x1xf32>
    %cst_131 = arith.constant 3.200000e+01 : f32
    %394 = vector.broadcast %cst_131 : f32 to vector<16x1xf32>
    %395 = arith.divf %393, %394 : vector<16x1xf32>
    %396 = vector.broadcast %395 : vector<16x1xf32> to vector<16x32xf32>
    %397 = arith.subf %391, %396 : vector<16x32xf32>
    %398 = arith.mulf %397, %397 : vector<16x32xf32>
    %cst_132 = arith.constant dense<0.000000e+00> : vector<16xf32>
    %399 = vector.multi_reduction <add>, %398, %cst_132 [1] : vector<16x32xf32> to vector<16xf32>
    %400 = vector.shape_cast %399 : vector<16xf32> to vector<16x1xf32>
    %cst_133 = arith.constant 3.200000e+01 : f32
    %401 = vector.broadcast %cst_133 : f32 to vector<16x1xf32>
    %402 = arith.divf %400, %401 : vector<16x1xf32>
    %403 = vector.broadcast %395 : vector<16x1xf32> to vector<16x32xf32>
    %404 = arith.subf %391, %403 : vector<16x32xf32>
    %cst_134 = arith.constant 9.99999974E-6 : f32
    %405 = vector.broadcast %cst_134 : f32 to vector<16x1xf32>
    %406 = arith.addf %402, %405 : vector<16x1xf32>
    %407 = math.rsqrt %406 : vector<16x1xf32>
    %408 = vector.broadcast %407 : vector<16x1xf32> to vector<16x32xf32>
    %409 = arith.mulf %404, %408 : vector<16x32xf32>
    %c784 = arith.constant 784 : index
    %c0_135 = arith.constant 0 : index
    %410 = vector.load %arg3[%c784, %c0_135] : memref<1024x128xf32, #tpu.memory_space<vmem>>, vector<1x32xf32>
    %411 = vector.broadcast %410 : vector<1x32xf32> to vector<16x32xf32>
    %412 = arith.mulf %409, %411 : vector<16x32xf32>
    %c792 = arith.constant 792 : index
    %c0_136 = arith.constant 0 : index
    %413 = vector.load %arg3[%c792, %c0_136] : memref<1024x128xf32, #tpu.memory_space<vmem>>, vector<1x32xf32>
    %414 = vector.broadcast %413 : vector<1x32xf32> to vector<16x32xf32>
    %415 = arith.addf %412, %414 : vector<16x32xf32>
    %c800 = arith.constant 800 : index
    %c0_137 = arith.constant 0 : index
    %416 = vector.load %arg3[%c800, %c0_137] : memref<1024x128xf32, #tpu.memory_space<vmem>>, vector<32x64xf32>
    %cst_138 = arith.constant dense<0.000000e+00> : vector<16x64xf32>
    %417 = tpu.matmul %415, %416, %cst_138 {dimension_numbers = #tpu.dot_dimension_numbers<[1], [0], [0], [1], [0, 0, 1, 1], [], []>} : vector<16x32xf32>, vector<32x64xf32>, vector<16x64xf32> -> vector<16x64xf32>
    %c832 = arith.constant 832 : index
    %c0_139 = arith.constant 0 : index
    %418 = vector.load %arg3[%c832, %c0_139] : memref<1024x128xf32, #tpu.memory_space<vmem>>, vector<1x64xf32>
    %419 = vector.broadcast %418 : vector<1x64xf32> to vector<16x64xf32>
    %420 = arith.addf %417, %419 : vector<16x64xf32>
    %421 = arith.negf %420 : vector<16x64xf32>
    %422 = math.exp %421 : vector<16x64xf32>
    %cst_140 = arith.constant 1.000000e+00 : f32
    %423 = vector.broadcast %cst_140 : f32 to vector<16x64xf32>
    %424 = arith.addf %423, %422 : vector<16x64xf32>
    %425 = arith.divf %423, %424 : vector<16x64xf32>
    %426 = arith.mulf %420, %425 : vector<16x64xf32>
    %c840 = arith.constant 840 : index
    %c0_141 = arith.constant 0 : index
    %427 = vector.load %arg3[%c840, %c0_141] : memref<1024x128xf32, #tpu.memory_space<vmem>>, vector<64x3xf32>
    %cst_142 = arith.constant dense<0.000000e+00> : vector<16x3xf32>
    %428 = tpu.matmul %426, %427, %cst_142 {dimension_numbers = #tpu.dot_dimension_numbers<[1], [0], [0], [1], [0, 0, 1, 1], [], []>} : vector<16x64xf32>, vector<64x3xf32>, vector<16x3xf32> -> vector<16x3xf32>
    %c904 = arith.constant 904 : index
    %c0_143 = arith.constant 0 : index
    %429 = vector.load %arg3[%c904, %c0_143] : memref<1024x128xf32, #tpu.memory_space<vmem>>, vector<1x3xf32>
    %430 = vector.broadcast %429 : vector<1x3xf32> to vector<16x3xf32>
    %431 = arith.addf %428, %430 : vector<16x3xf32>
    %c912 = arith.constant 912 : index
    %c0_144 = arith.constant 0 : index
    %432 = vector.load %arg3[%c912, %c0_144] : memref<1024x128xf32, #tpu.memory_space<vmem>>, vector<64x32xf32>
    %cst_145 = arith.constant dense<0.000000e+00> : vector<16x32xf32>
    %433 = tpu.matmul %426, %432, %cst_145 {dimension_numbers = #tpu.dot_dimension_numbers<[1], [0], [0], [1], [0, 0, 1, 1], [], []>} : vector<16x64xf32>, vector<64x32xf32>, vector<16x32xf32> -> vector<16x32xf32>
    %c976 = arith.constant 976 : index
    %c0_146 = arith.constant 0 : index
    %434 = vector.load %arg3[%c976, %c0_146] : memref<1024x128xf32, #tpu.memory_space<vmem>>, vector<1x32xf32>
    %435 = vector.broadcast %434 : vector<1x32xf32> to vector<16x32xf32>
    %436 = arith.addf %433, %435 : vector<16x32xf32>
    %437 = arith.negf %436 : vector<16x32xf32>
    %438 = math.exp %437 : vector<16x32xf32>
    %cst_147 = arith.constant 1.000000e+00 : f32
    %439 = vector.broadcast %cst_147 : f32 to vector<16x32xf32>
    %440 = arith.addf %439, %438 : vector<16x32xf32>
    %441 = arith.divf %439, %440 : vector<16x32xf32>
    %442 = arith.mulf %436, %441 : vector<16x32xf32>
    %c984 = arith.constant 984 : index
    %c0_148 = arith.constant 0 : index
    %443 = vector.load %arg3[%c984, %c0_148] : memref<1024x128xf32, #tpu.memory_space<vmem>>, vector<32x3xf32>
    %cst_149 = arith.constant dense<0.000000e+00> : vector<16x3xf32>
    %444 = tpu.matmul %442, %443, %cst_149 {dimension_numbers = #tpu.dot_dimension_numbers<[1], [0], [0], [1], [0, 0, 1, 1], [], []>} : vector<16x32xf32>, vector<32x3xf32>, vector<16x3xf32> -> vector<16x3xf32>
    %c1016 = arith.constant 1016 : index
    %c0_150 = arith.constant 0 : index
    %445 = vector.load %arg3[%c1016, %c0_150] : memref<1024x128xf32, #tpu.memory_space<vmem>>, vector<1x3xf32>
    %446 = vector.broadcast %445 : vector<1x3xf32> to vector<16x3xf32>
    %447 = arith.addf %444, %446 : vector<16x3xf32>
    %448 = vector.shape_cast %431 : vector<16x3xf32> to vector<2x8x3xf32>
    %449 = vector.shape_cast %447 : vector<16x3xf32> to vector<2x8x3xf32>
    %450 = tpu.concatenate %448, %449 in 1 : vector<2x8x3xf32>, vector<2x8x3xf32> -> vector<2x16x3xf32>
    %c0_151 = arith.constant 0 : index
    %c0_152 = arith.constant 0 : index
    %c0_153 = arith.constant 0 : index
    %451 = vector.load %arg4[%c0_151, %c0_152, %c0_153] : memref<2x16x3xf32, #tpu.memory_space<vmem>>, vector<2x16x3xf32>
    tpu.vector_store %arg4[%c0_151, %c0_152, %c0_153], %450 {strides = array<i32>} : memref<2x16x3xf32, #tpu.memory_space<vmem>>, vector<2x16x3xf32>,
    return
  }
}

</mosaic_0001>

<bundles_post_ra>
// kernel: forward.1
= control target key start
LH: loop header
LB: loop body
LE: loop exit
PB: predicated region body
PF: predicated region fallthrough
CT: control target
= control target key end

     0   :  { %9 = vsyncpa [#allocation3], 0  ;;  %s4486_s15 = smov [#allocation2]   ;;  %s5020_s0 = inlined_call_operand.vmem [shape: f32[2,8,3], index: 0, kind: input, shape index: {}]   ;;  %s5021_s1 = inlined_call_operand.vmem [shape: f32[2,1], index: 1, kind: input, shape index: {}]   ;;  %s5022_s2 = inlined_call_operand.vmem [shape: s32[2,1], index: 2, kind: input, shape index: {}]   ;;  %s5023_s3 = inlined_call_operand.hbm [shape: f32[1024,128], index: 3, kind: input, shape index: {}]   ;;  %s5024_s4 = inlined_call_operand.vmem [shape: f32[2,16,3], index: 4, kind: output, shape index: {}]  }
   0x1   :  { %s21_s16 = sshll.u32 %s4486_s15, 4  ;;  %s4462_s19 = scalar_lea.hbm %s5023_s3, 16384  ;;  %s22_s16 = int_to_ptr.vmem [resolvable:$true] %s21_s16 }
   0x2   :  { %p4463_p0 = scmp.ne.s32.totalorder %s5023_s3, %s4462_s19  ;;  %p4466_p1 = scmp.lt.u32.totalorder %s4462_s19, %s5023_s3 }
   0x4   :  { %p4468_p2 = pnand %p4466_p1, %p4463_p0 }
   0x6   :  { %4471 = shalt.err (!%p4468_p2)
}
   0x7   :  { %s4472_s24 = scalar_lea.vmem %s22_s16, 16384  ;;  %p4477_p4 = scmp.lt.s32.totalorder %s22_s16, %s22_s16 }
   0x8   :  { %p4473_p3 = scmp.ne.s32.totalorder %s22_s16, %s4472_s24  ;;  %p4478_p5 = scmp.lt.s32.totalorder %s4472_s24, %s4472_s24 }
   0xa   :  { %p4479_p6 = por %p4478_p5, %p4477_p4 }
   0xc   :  { %p4480_p7 = pnand %p4479_p6, %p4473_p3 }
   0xe   :  { %4483 = shalt.err (!%p4480_p7)
}
   0xf   :  { %s4487_s25 = smov 128   ;;  %s4488_s26 = smov 8  }
  0x10   :  { %27 = dma.hbm_to_vmem [thread:$0]  %s5023_s3, 16384, %s22_s16, [#allocation3], %s4487_s25, %s4487_s25, %s4488_s26  }
  0x11   :  { %4484 = dma.done.wait [#allocation3], 16384  }
  0x12   :  { %4485 = vsyncadd [#allocation3], 4294950912  ;;  %v4489_v0 = vmov 0   ;;  %v121_v1 = vld [vmem:[%s5021_s1] sm:$0x3]  ;;  %v348_v4 = vld [vmem:[#allocation2 + $0x28] sm:$0xff] }
  0x13   :  { %4254 = vset.pattern.permute.xlu0 %v4489_v0  ;;  %4255 = vset.pattern.permute.xlu1 %v4489_v0  ;;  %v122_v2 = vmul.f32 6.2831855, %v121_v1  ;;  %v347_v3 = vld [vmem:[#allocation2 + $0x20] sm:$0xff]  ;;  %v349_v5 = vld [vmem:[#allocation2 + $0x30] sm:$0xff]  ;;  %v4490_v6 = vmov 0.0|0.0   ;;  %v350_v8 = vld [vmem:[#allocation2 + $0x38] sm:$0xff] }
  0x14   :  { %3963 = vmatprep.subr.bf16.mxu1 %v4490_v6  ;;  %v3964_v7 = vpack.c.bf16 %v348_v4, %v347_v3  ;;  %v3967_v9 = vpack.c.bf16 %v350_v8, %v349_v5  ;;  %v3292_v10 = vld [vmem:[#allocation2 + $0x10] ss:$0 sm:$0xff]  ;;  %v4491_v23 = vmov 683565275   ;;  %v4492_v25 = vmov 2475754826  }
  0x15   :  { %126 = vperm.xlu0 %4254, %v122_v2   ;;  %v4493_v28 = vmov 2131351028   ;;  %v4494_v31 = vmov 2102212464   ;;  %v4495_v34 = vmov 920167782  }
  0x16   :  { %3965 = vmatpush3.bf16.msra.mxu1 %v3964_v7  ;;  %v4496_v37 = vmov 1326507024   ;;  %vm4497_vm9 = vmmov 0   ;;  %s4499_s1 = smov 16   ;;  %s4502_s8 = smov 120  }
  0x17   :  { %3966 = vmatprep.subr.bf16.mxu1 %v4490_v6  ;;  %s4503_s9 = smov 104   ;;  %s4504_s12 = smov 96  }
  0x18   :  { %s4507_s13 = smov 24  }
  0x1a   :  { %3968 = vmatpush3.bf16.msra.mxu1 %v3967_v9 }
  0x94   :  { %v127_v11 = vpop.permute.xlu0 %126 }
  0x95   :  { %v4552_v12 = vmul.f32 %v3292_v10, %v127_v11 }
  0x97   :  { %v137_v13 = vand.u32 2139095040, %v4552_v12  ;;  %v134_v17 = vand.u32 2147483647, %v4552_v12  ;;  %vm136_vm7 = vcmp.lt.s32.totalorder %v4552_v12, 0 }
  0x99   :  { %v138_v14 = vshrl.u32 %v137_v13, 23  ;;  %v141_v20 = vand.u32 8388607, %v134_v17  ;;  %vm135_vm8 = vcmp.le.f32.partialorder %v134_v17, 0.7853982 }
  0x9b   :  { %v3293_v15 = vadd.s32 4294967169, %v138_v14  ;;  %v142_v39 = vor.u32 8388608, %v141_v20 }
  0x9d   :  { %v144_v16 = vadd.s32 1, %v3293_v15  ;;  %v182_v53 = vshll.u32 %v142_v39, 8 }
  0x9f   :  { %vm145_vm0 = vcmp.gt.s32.totalorder %v144_v16, 0 }
  0xa0   :  { %v146_v18 = vsel %vm145_vm0, %v144_v16, 0  ;;  %vm226_vm0 = vweird.f32 %v4552_v12 }
  0xa1   :  { %v148_v19 = vand.u32 31, %v146_v18  ;;  %v147_v22 = vshrl.u32 %v146_v18, 5 }
  0xa3   :  { %v149_v21 = vsub.s32 32, %v148_v19  ;;  %v151_v24 = vshll.u32 %v4491_v23, %v148_v19  ;;  %v154_v26 = vshll.u32 %v4492_v25, %v148_v19  ;;  %v157_v30 = vshll.u32 %v4493_v28, %v148_v19 }
  0xa4   :  { %v160_v33 = vshll.u32 %v4494_v31, %v148_v19  ;;  %v163_v36 = vshll.u32 %v4495_v34, %v148_v19  ;;  %vm166_vm1 = vcmp.lt.s32.totalorder %v147_v22, 1  ;;  %vm169_vm2 = vcmp.lt.s32.totalorder %v147_v22, 4 }
  0xa5   :  { %v152_v27 = vshrl.u32 %v4492_v25, %v149_v21  ;;  %v155_v29 = vshrl.u32 %v4493_v28, %v149_v21  ;;  %v158_v32 = vshrl.u32 %v4494_v31, %v149_v21  ;;  %v161_v35 = vshrl.u32 %v4495_v34, %v149_v21 }
  0xa6   :  { %v164_v38 = vshrl.u32 %v4496_v37, %v149_v21  ;;  %v150_v48 = vshrl.u32 %v4491_v23, %v149_v21  ;;  %vm168_vm3 = vcmp.lt.s32.totalorder %v147_v22, 3  ;;  %vm167_vm4 = vcmp.lt.s32.totalorder %v147_v22, 2 }
  0xa7   :  { %v153_v40 = vor.u32 %v152_v27, %v151_v24  ;;  %v156_v41 = vor.u32 %v155_v29, %v154_v26  ;;  %v159_v42 = vor.u32 %v158_v32, %v157_v30  ;;  %v162_v43 = vor.u32 %v161_v35, %v160_v33 }
  0xa8   :  { %v165_v44 = vor.u32 %v164_v38, %v163_v36  ;;  %v4498_v34 = vmov 0.0  }
  0xa9   :  { %v171_v45 = vsel %vm169_vm2, %v159_v42, 2102212464  ;;  %v174_v46 = vsel %vm166_vm1, %v153_v40, %v156_v41  ;;  %v178_v47 = vsel %vm166_vm1, %v156_v41, %v159_v42  ;;  %v175_v49 = vsel %vm169_vm2, %v162_v43, 920167782  ;;  %3614 = vmatprep.mubr.msk.f32.mxu1 %vm4497_vm9, %v4498_v34  ;;  %3628 = vmatprep.subr.mxu1 %v4498_v34 }
  0xaa   :  { %v179_v50 = vsel %vm169_vm2, %v165_v44, 1326507024  ;;  %v176_v51 = vsel %vm168_vm3, %v159_v42, %v175_v49  ;;  %v170_v54 = vsel %vm166_vm1, %v150_v48, %v153_v40  ;;  %v172_v55 = vsel %vm168_vm3, %v156_v41, %v171_v45 }
  0xab   :  { %v180_v52 = vsel %vm168_vm3, %v162_v43, %v179_v50  ;;  %v177_v56 = vsel %vm167_vm4, %v174_v46, %v176_v51  ;;  %v173_v62 = vsel %vm167_vm4, %v170_v54, %v172_v55  ;;  %vm345_vm1 = vcmask 130048   ;;  %v33_v50 = vld [vmem:[#allocation2 + $0x8] sm:$0x7]  ;;  %v439_v55 = vld [vmem:[#allocation2 + $0x58] sm:$0xff] }
  0xac   :  { %v181_v57 = vsel %vm167_vm4, %v178_v47, %v180_v52  ;;  %v4561_v60 = vmul.u32.u64.low %v182_v53, %v177_v56  ;;  %v4562_v61 = vmul.u32.u64.high %v182_v53, %v177_v56, %v4561_v60  ;;  %v189_v0 = vmul.u32 %v182_v53, %v173_v62  ;;  %v437_v51 = vld [vmem:[#allocation2 + $0x48] sm:$0xff]  ;;  %v438_v52 = vld [vmem:[#allocation2 + $0x50] sm:$0xff]  ;;  %v440_v56 = vld [vmem:[#allocation2 + $0x60] sm:$0xff] }
  0xad   :  { %v4558_v58 = vmul.u32.u64.low %v182_v53, %v181_v57  ;;  %v4559_v59 = vmul.u32.u64.high %v182_v53, %v181_v57, %v4558_v58  ;;  %vm356_vm2 = vcmask 261120   ;;  %vm42_vm3 = vcmask 1042432   ;;  %v32_v53 = vld [vmem:[%s5020_s0 + $0x8] sm:$0xff] }
  0xae   :  { %v192_v63 = vadd.s32 1, %v4562_v61  ;;  %3601 = vmatprep.subr.msk.mxu0 %vm42_vm3, %v33_v50  ;;  %vm35_vm4 = vcmask 23552   ;;  %v3970_v54 = vpack.c.bf16 %v438_v52, %v437_v51  ;;  %v3973_v57 = vpack.c.bf16 %v440_v56, %v439_v55  ;;  %v3301_v58 = vld [vmem:[#allocation2 + $0x40] ss:$0 sm:$0xff] }
  0xaf   :  { %vm191_vm5 = vc.u32 %v4559_v59, %v4561_v60  ;;  %v190_v14 = vadd.s32 %v4561_v60, %v4559_v59  ;;  %3602 = vmatpush3.msk.msra.mxu0 %vm42_vm3, %v33_v50  ;;  %v739_v56 = vld [vmem:[#allocation2 + $0xa0] sm:$0xff] }
  0xb0   :  { %v193_v1 = vsel %vm191_vm5, %v192_v63, %v4562_v61  ;;  %3969 = vmatprep.subr.bf16.mxu0 %v4490_v6  ;;  %vm519_vm5 = vcmask 254976  }
  0xb1   :  { %v194_v2 = vadd.s32 %v193_v1, %v189_v0 }
  0xb3   :  { %v195_v3 = vadd.s32 536870912, %v194_v2 }
  0xb5   :  { %v196_v4 = vshrl.u32 %v195_v3, 30 }
  0xb7   :  { %v197_v5 = vshll.u32 %v196_v4, 30  ;;  %v220_v27 = vsub.s32 4, %v196_v4 }
  0xb9   :  { %v198_v7 = vsub.s32 %v194_v2, %v197_v5  ;;  %v221_v30 = vsel %vm136_vm7, %v220_v27, %v196_v4  ;;  %v3304_v5 = vld [vmem:[#allocation2 + $0x68] ss:$0 sm:$0xff]  ;;  %v3306_v27 = vld [vmem:[#allocation2 + $0x70] ss:$0 sm:$0xff] }
  0xba   :  { %v223_v32 = vsel %vm135_vm8, 0, %v221_v30 }
  0xbb   :  { %v200_v8 = vsub.s32 0, %v198_v7  ;;  %v227_v33 = vadd.s32 3, %v223_v32  ;;  %v331_v36 = vand.u32 3, %v223_v32 }
  0xbd   :  { %v3294_v9 = vmin.u32 %v200_v8, %v198_v7  ;;  %v228_v35 = vand.u32 3, %v227_v33  ;;  %vm336_vm11 = vcmp.eq.s32.totalorder %v331_v36, 2  ;;  %vm333_vm13 = vcmp.eq.s32.totalorder %v331_v36, 0 }
  0xbe   :  { %vm332_vm15 = vcmp.lt.s32.totalorder %v331_v36, 2  ;;  %v34_v36 = vld [vmem:[#allocation2] sm:$0xff] }
  0xbf   :  { %v202_v10 = vclz %v3294_v9  ;;  %vm233_vm10 = vcmp.eq.s32.totalorder %v228_v35, 2  ;;  %vm230_vm12 = vcmp.eq.s32.totalorder %v228_v35, 0  ;;  %vm229_vm14 = vcmp.lt.s32.totalorder %v228_v35, 2 }
  0xc1   :  { %v3295_v11 = vadd.s32 4294967294, %v202_v10 }
  0xc3   :  { %vm3296_vm6 = vcmp.lt.s32.totalorder %v3295_v11, 0 }
  0xc4   :  { %v205_v13 = vsel %vm3296_vm6, 0, %v3295_v11  ;;  %vm589_vm6 = vcmask 64512  }
  0xc5   :  { %v206_v15 = vsub.s32 32, %v205_v13  ;;  %v210_v16 = vsub.s32 4294967266, %v205_v13  ;;  %v207_v18 = vshll.u32 %v198_v7, %v205_v13 }
  0xc7   :  { %v208_v19 = vshrl.u32 %v190_v14, %v206_v15  ;;  %v211_v20 = vadd.s32 127, %v210_v16 }
  0xc9   :  { %v209_v21 = vor.u32 %v208_v19, %v207_v18  ;;  %v212_v22 = vshll.u32 %v211_v20, 23 }
  0xcb   :  { %v213_v23 = vor.u32 4788187, %v212_v22  ;;  %v216_v25 = vcvt.s32.f32 %v209_v21  ;;  %v4500_v21 = vmov 1966171168  }
  0xcc   :  { %v548_v22 = vunpack.c.l.s4 %v4500_v21 }
  0xcd   :  { %v214_v24 = vand.u32 2147483647, %v213_v23  ;;  %v550_v23 = vlaneseq }
  0xcf   :  { %v217_v26 = vmul.f32 %v216_v25, %v214_v24  ;;  %v549_v24 = vunpack.c.0.s8 %v548_v22  ;;  %v4595_v25 = vshrl.u32 %v550_v23, 7  ;;  %v581_v22 = vld [vmem:[%s5022_s2] sm:$0x3]  ;;  %s4506_s2 = smov 64  }
  0xd1   :  { %v218_v28 = vxor.u32 2147483648, %v217_v26  ;;  %v4602_v35 = vsub.s32 0, %v4595_v25 }
  0xd3   :  { %v219_v29 = vsel %vm136_vm7, %v218_v28, %v217_v26 }
  0xd4   :  { %v222_v31 = vsel %vm135_vm8, %v4552_v12, %v219_v29  ;;  %v31_v12 = vld [vmem:[%s5020_s0] sm:$0xff]  ;;  %v3307_v29 = vld [vmem:[#allocation2 + $0x78] ss:$0 sm:$0xff]  ;;  %s4501_s0 = smov 112   ;;  %vm4659_vm8 = vmpackc.low %vm589_vm6, %vm589_vm6 }
  0xd5   :  { %4336 = vcosq.f32 %v222_v31  ;;  %3603 = vmatprep.mubr.msk.f32.mxu0 %vm35_vm4, %v31_v12 }
  0xd6   :  { %4338 = vsinq.f32 %v222_v31  ;;  %3604 = vmatmul.mubr.msk.f32.vlgmr.msra.gmra.mrb[0].mxu0 %vm35_vm4, %v32_v53  ;;  %v4598_v31 = vsub.s32 %v549_v24, %v4595_v25  ;;  %v588_v24 = vld [vmem:[#allocation2 + $0x18] sm:$0xff] }
  0xd7   :  { %3971 = vmatpush3.bf16.msra.mxu0 %v3970_v54  ;;  %3625 = vmatprep.mubr.msk.f32.mxu0 %vm4497_vm9, %v4498_v34 }
  0xd8   :  { %3972 = vmatprep.subr.bf16.mxu0 %v4490_v6 }
  0xdb   :  { %3974 = vmatpush3.bf16.msra.mxu0 %v3973_v57  ;;  %v740_v57 = vld [vmem:[#allocation2 + $0xa8] sm:$0xff] }
  0xdf   :  { %v4337_v37 = vpop.eup %4336 }
  0xe0   :  { %v4339_v38 = vpop.eup %4338  ;;  %v234_v39 = vxor.u32 2147483648, %v4337_v37 }
  0xe1   :  { %v231_v17 = vxor.u32 2147483648, %v4339_v38 }
  0xe2   :  { %v338_v40 = vsel %vm336_vm11, %v234_v39, %v4339_v38  ;;  %v235_v41 = vsel %vm233_vm10, %v234_v39, %v4339_v38 }
  0xe3   :  { %v335_v42 = vsel %vm333_vm13, %v4337_v37, %v231_v17  ;;  %v232_v43 = vsel %vm230_vm12, %v4337_v37, %v231_v17 }
  0xe4   :  { %v339_v44 = vsel %vm332_vm15, %v335_v42, %v338_v40  ;;  %v236_v45 = vsel %vm229_vm14, %v232_v43, %v235_v41  ;;  %vm1012_vm14 = vcmask 523264  }
  0xe5   :  { %v340_v46 = vsel %vm226_vm0, nan, %v339_v44  ;;  %v237_v47 = vsel %vm226_vm0, nan, %v236_v45 }
  0xe6   :  { %342 = vrot.lane.b32.xlu0 %v340_v46, %s4499_s1 }
 0x158   :  { %v343_v48 = vpop.permute.xlu0 %342 }
 0x159   :  { %v346_v49 = vsel %vm345_vm1, %v237_v47, %v343_v48 }
 0x15a   :  { %3615 = vmatmul.mubr.msk.f32.vlgmr.msra.gmra.mrb[0].mxu1 %vm356_vm2, %v346_v49 }
 0x15b   :  { %3630 = vmatprep.mubr.msk.f32.mxu1 %vm4497_vm9, %v4498_v34  ;;  %3629 = vmatpush3.msra.mxu1 %v588_v24 }
 0x1a9   :  { %v3605_v3 = vpop.f32.mrb[0].mxu0 }
 0x1aa   :  { %v112_v4 = vpop.f32.mrb[1].mxu0  ;;  %v118_v41 = vadd.f32 %v3605_v3, %v34_v36 }
 0x1ab   :  { %v113_v39 = vadd.f32 %v112_v4, %v34_v36 }
 0x22d   :  { %v426_v59 = vpop.f32.mrb[0].mxu1 }
 0x22e   :  { %v427_v60 = vadd.f32 %v3301_v58, %v426_v59  ;;  %v3616_v61 = vpop.f32.mrb[1].mxu1  ;;  %v3975_v58 = vpack.c.bf16 %v740_v57, %v739_v56  ;;  %v741_v59 = vld [vmem:[#allocation2 + $0xb0] sm:$0xff] }
 0x230   :  { %v3303_v62 = vmul.f32 -1.442695, %v427_v60  ;;  %3976 = vmatprep.subr.bf16.mxu0 %v3975_v58 }
 0x232   :  { %4340 = vpow2.f32 %v3303_v62 }
 0x23c   :  { %v4341_v63 = vpop.eup %4340 }
 0x23d   :  { %v433_v0 = vadd.f32 1.0, %v4341_v63 }
 0x23f   :  { %4342 = vrcp.f32 %v433_v0 }
 0x249   :  { %v4343_v1 = vpop.eup %4342 }
 0x24a   :  { %v436_v2 = vmul.f32 %v4343_v1, %v427_v60  ;;  %v742_v60 = vld [vmem:[#allocation2 + $0xb8] sm:$0xff] }
 0x24b   :  { %v3979_v61 = vpack.c.bf16 %v742_v60, %v741_v59 }
 0x24c   :  { %3626 = vmatmul.mubr.msk.f32.vlgmr.msra.gmra.mrb[2].mxu0 %vm356_vm2, %v436_v2 }
 0x24d   :  { %3978 = vmatpush3.bf16.msra.mxu0 %v3975_v58 }
 0x24e   :  { %3980 = vmatprep.subr.bf16.mxu0 %v3979_v61 }
 0x251   :  { %3982 = vmatpush3.bf16.msra.mxu0 %v3979_v61 }
 0x31f   :  { %v515_v7 = vpop.f32.mrb[2].mxu0 }
 0x320   :  { %v516_v8 = vadd.f32 %v3304_v5, %v515_v7  ;;  %v3627_v9 = vpop.f32.mrb[3].mxu0  ;;  %v3310_v5 = vld [vmem:[#allocation2 + $0x80] ss:$0 sm:$0xff] }
 0x322   :  { %v520_v10 = vsel %vm519_vm5, %v516_v8, 0.0 }
 0x323   :  { %521 = vadd.xlane.f32.xlu1 %v520_v10 }
 0x3b0   :  { %v522_v11 = vpop.xlane.xlu1 %521 }
 0x3b1   :  { %v524_v13 = vmul.f32 0.03125, %v522_v11 }
 0x3b3   :  { %v525_v14 = vsub.f32 %v516_v8, %v524_v13  ;;  %v3311_v8 = vld [vmem:[#allocation2 + $0x88] ss:$0 sm:$0xff] }
 0x3b5   :  { %v526_v15 = vmul.f32 %v525_v14, %v525_v14 }
 0x3b7   :  { %v527_v16 = vsel %vm519_vm5, %v526_v15, 0.0 }
 0x3b8   :  { %528 = vadd.xlane.f32.xlu1 %v527_v16  ;;  %v3312_v16 = vld [vmem:[#allocation2 + $0xc0] ss:$0 sm:$0xff] }
 0x445   :  { %v529_v18 = vpop.xlane.xlu1 %528 }
 0x446   :  { %v530_v19 = vmul.f32 0.03125, %v529_v18 }
 0x448   :  { %v531_v20 = vadd.f32 1e-05, %v530_v19 }
 0x44a   :  { %4344 = vrsqrt.f32 %v531_v20 }
 0x454   :  { %v4345_v26 = vpop.eup %4344 }
 0x455   :  { %v533_v28 = vmul.f32 %v4345_v26, %v525_v14 }
 0x457   :  { %v539_v30 = vmul.f32 %v3306_v27, %v533_v28 }
 0x459   :  { %v545_v32 = vadd.f32 %v3307_v29, %v539_v30 }
 0x45b   :  { %v553_v33 = vrot.slane %v545_v32, %v4598_v31 }
 0x45d   :  { %v561_v37 = vrot.slane %v553_v33, %v4598_v31  ;;  %v554_v38 = vcombine.high %v553_v33, %v553_v33 }
 0x45f   :  { %v4606_v17 = vrot.slane %v561_v37, %v4602_v35  ;;  %v568_v40 = vrot.slane %v554_v38, %v4598_v31 }
 0x461   :  { %v4610_v42 = vadd.f32 %v4606_v17, %v113_v39  ;;  %v4613_v43 = vrot.slane %v568_v40, %v4602_v35  ;;  %v580_v39 = vand.u32 127, %v550_v23 }
 0x463   :  { %v699_v44 = vsel %vm356_vm2, %v4610_v42, 0.0  ;;  %v4618_v45 = vadd.f32 %v4613_v43, %v118_v41 }
 0x464   :  { %700 = vadd.xlane.f32.xlu0 %v699_v44 }
 0x465   :  { %v702_v46 = vsel %vm356_vm2, %v4618_v45, 0.0 }
 0x466   :  { %703 = vadd.xlane.f32.xlu1 %v702_v46 }
 0x4f1   :  { %v701_v47 = vpop.xlane.xlu0 %700 }
 0x4f2   :  { %v705_v48 = vmul.f32 0.03125, %v701_v47 }
 0x4f3   :  { %v704_v49 = vpop.xlane.xlu1 %703 }
 0x4f4   :  { %v707_v50 = vsub.f32 %v4610_v42, %v705_v48  ;;  %v706_v12 = vmul.f32 0.03125, %v704_v49 }
 0x4f6   :  { %v708_v51 = vsub.f32 %v4618_v45, %v706_v12  ;;  %v709_v52 = vmul.f32 %v707_v50, %v707_v50 }
 0x4f8   :  { %v711_v53 = vsel %vm356_vm2, %v709_v52, 0.0  ;;  %v710_v54 = vmul.f32 %v708_v51, %v708_v51 }
 0x4f9   :  { %712 = vadd.xlane.f32.xlu1 %v711_v53 }
 0x4fa   :  { %v714_v55 = vsel %vm356_vm2, %v710_v54, 0.0 }
 0x4fd   :  { %715 = vadd.xlane.f32.xlu1 %v714_v55 }
 0x586   :  { %v713_v62 = vpop.xlane.xlu1 %712 }
 0x587   :  { %v717_v63 = vmul.f32 0.03125, %v713_v62  ;;  %v665_v62 = vadd.s32 8, %v4595_v25 }
 0x589   :  { %v719_v0 = vadd.f32 1e-05, %v717_v63  ;;  %v680_v63 = vshra.s32 %v580_v39, 3 }
 0x58a   :  { %v716_v1 = vpop.xlane.xlu1 %715 }
 0x58b   :  { %4346 = vrsqrt.f32 %v719_v0  ;;  %v718_v2 = vmul.f32 0.03125, %v716_v1  ;;  %v673_v0 = vshra.s32 %v665_v62, 3  ;;  %v667_v1 = vadd.s32 24, %v4595_v25 }
 0x58d   :  { %v720_v3 = vadd.f32 1e-05, %v718_v2  ;;  %v672_v2 = vshra.s32 %v4595_v25, 3  ;;  %vm682_vm10 = vcmp.eq.s32.totalorder %v673_v0, %v680_v63 }
 0x58f   :  { %4348 = vrsqrt.f32 %v720_v3  ;;  %v666_v3 = vadd.s32 16, %v4595_v25  ;;  %vm681_vm11 = vcmp.eq.s32.totalorder %v672_v2, %v680_v63 }
 0x595   :  { %v4347_v4 = vpop.eup %4346 }
 0x596   :  { %v723_v7 = vmul.f32 %v4347_v4, %v707_v50  ;;  %v675_v4 = vshra.s32 %v667_v1, 3 }
 0x598   :  { %v730_v9 = vmul.f32 %v3310_v5, %v723_v7  ;;  %v669_v7 = vadd.s32 40, %v4595_v25  ;;  %vm684_vm12 = vcmp.eq.s32.totalorder %v675_v4, %v680_v63 }
 0x599   :  { %v4349_v10 = vpop.eup %4348 }
 0x59a   :  { %v724_v11 = vmul.f32 %v4349_v10, %v708_v51  ;;  %v737_v13 = vadd.f32 %v3311_v8, %v730_v9  ;;  %v4505_v10 = vmov -1e+30  }
 0x59c   :  { %v731_v14 = vmul.f32 %v3310_v5, %v724_v11  ;;  %3641 = vmatprep.mubr.msk.f32.mxu0 %vm356_vm2, %v737_v13  ;;  %v674_v5 = vshra.s32 %v666_v3, 3  ;;  %v4694_v11 = vsel %vm682_vm10, 0.0, %v4505_v10  ;;  %v4696_v13 = vsel %vm681_vm11, 0.0, %v4505_v10 }
 0x59e   :  { %v738_v15 = vadd.f32 %v3311_v8, %v731_v14  ;;  %v668_v8 = vadd.s32 32, %v4595_v25  ;;  %vm683_vm13 = vcmp.eq.s32.totalorder %v674_v5, %v680_v63 }
 0x5a0   :  { %3642 = vmatmul.mubr.msk.f32.vlgmr.msra.gmra.mrb[4].mxu0 %vm356_vm2, %v738_v15 }
 0x673   :  { %v3643_v18 = vpop.f32.mrb[4].mxu0 }
 0x674   :  { %v820_v19 = vpop.f32.mrb[5].mxu0  ;;  %v826_v21 = vadd.f32 %v3643_v18, %v3312_v16  ;;  %v671_v18 = vadd.s32 56, %v4595_v25 }
 0x675   :  { %v821_v20 = vadd.f32 %v3312_v16, %v820_v19  ;;  %v677_v16 = vshra.s32 %v669_v7, 3 }
 0x677   :  { %835 = vrot.lane.b32.xlu0 %v821_v20, %s4501_s0  ;;  %831 = vrot.lane.b32.xlu1 %v821_v20, %s4502_s8  ;;  %v4637_v26 = vpack.i.bf16 %v826_v21, %v821_v20  ;;  %vm686_vm15 = vcmp.eq.s32.totalorder %v677_v16, %v680_v63 }
 0x67b   :  { %833 = vrot.lane.b32.xlu1 %v826_v21, %s4502_s8 }
 0x67f   :  { %837 = vrot.lane.b32.xlu1 %v826_v21, %s4501_s0 }
 0x683   :  { %839 = vrot.lane.b32.xlu1 %v821_v20, %s4503_s9 }
 0x687   :  { %841 = vrot.lane.b32.xlu1 %v826_v21, %s4503_s9 }
 0x68b   :  { %583 = vperm.xlu1 %4255, %v581_v22  }
 0x68f   :  { %4257 = vrot.lane.b32.xlu1 %v4637_v26, %s4504_s12 }
 0x6e9   :  { %v832_v27 = vpop.permute.xlu1 %831  ;;  %v836_v30 = vpop.permute.xlu0 %835 }
 0x6ed   :  { %v834_v28 = vpop.permute.xlu1 %833 }
 0x6ee   :  { %v4641_v29 = vpack.i.bf16 %v834_v28, %v832_v27 }
 0x6f0   :  { %4262 = vrot.lane.b32.xlu0 %v4641_v29, %s4504_s12 }
 0x6f1   :  { %v838_v32 = vpop.permute.xlu1 %837 }
 0x6f2   :  { %v4645_v33 = vpack.i.bf16 %v838_v32, %v836_v30 }
 0x6f4   :  { %4267 = vrot.lane.b32.xlu1 %v4645_v33, %s4504_s12 }
 0x6f5   :  { %v840_v36 = vpop.permute.xlu1 %839 }
 0x6f9   :  { %v842_v37 = vpop.permute.xlu1 %841 }
 0x6fa   :  { %v4649_v38 = vpack.i.bf16 %v842_v37, %v840_v36 }
 0x6fc   :  { %4272 = vrot.lane.b32.xlu0 %v4649_v38, %s4504_s12 }
 0x70a   :  { %v584_v40 = vpop.permute.xlu1 %583 }
 0x70b   :  { %vm585_vm7 = vcmp.eq.s32.totalorder %v584_v40, %v580_v39  ;;  %v679_v39 = vshra.s32 %v671_v18, 3 }
 0x70c   :  { %v3308_v41 = vsel %vm585_vm7, 1.0, %v4498_v34  ;;  %vm1282_vm7 = vcmask 195584  }
 0x70d   :  { %3631 = vmatmul.mubr.msk.f32.vlgmr.msra.gmra.mrb[2].mxu1 %vm589_vm6, %v3308_v41  ;;  %vm688_vm3 = vcmp.eq.s32.totalorder %v679_v39, %v680_v63 }
 0x70e   :  { %3660 = vmatprep.mubr.msk.f32.mxu1 %vm589_vm6, %v821_v20  ;;  %v4258_v44 = vpop.permute.xlu1 %4257  ;;  %v676_v20 = vshra.s32 %v668_v8, 3 }
 0x70f   :  { %v4260_v46 = vunpack.i.h.bf16 %v4258_v44  ;;  %v4259_v47 = vunpack.i.l.bf16 %v4258_v44 }
 0x710   :  { %vm685_vm0 = vcmp.eq.s32.totalorder %v676_v20, %v680_v63 }
 0x711   :  { %v3983_v49 = vpack.c.bf16 %v4260_v46, %v4259_v47 }
 0x713   :  { %3985 = vmatprep.subr.msk.bf16.mxu1 %vm4659_vm8, %v3983_v49 }
 0x714   :  { %3988 = vmatpush3.bf16.xpose.msk.msra.mxu1 %vm4659_vm8, %v3983_v49  ;;  %v4710_v49 = vsel %vm686_vm15, 0.0, %v4505_v10 }
 0x762   :  { %v4263_v23 = vpop.permute.xlu0 %4262 }
 0x763   :  { %v4265_v50 = vunpack.i.h.bf16 %v4263_v23  ;;  %v4264_v12 = vunpack.i.l.bf16 %v4263_v23 }
 0x765   :  { %v3989_v51 = vpack.c.bf16 %v4265_v50, %v4264_v12 }
 0x766   :  { %v4268_v52 = vpop.permute.xlu1 %4267 }
 0x767   :  { %v4270_v53 = vunpack.i.h.bf16 %v4268_v52  ;;  %v4269_v54 = vunpack.i.l.bf16 %v4268_v52  ;;  %3991 = vmatprep.subr.msk.bf16.mxu1 %vm4659_vm8, %v3989_v51 }
 0x768   :  { %3994 = vmatpush3.bf16.xpose.msk.msra.mxu1 %vm4659_vm8, %v3989_v51  ;;  %v4713_v51 = vsel %vm685_vm0, 0.0, %v4505_v10 }
 0x769   :  { %v3995_v55 = vpack.c.bf16 %v4270_v53, %v4269_v54 }
 0x76b   :  { %3997 = vmatprep.subr.msk.bf16.mxu1 %vm4659_vm8, %v3995_v55 }
 0x76e   :  { %v4273_v56 = vpop.permute.xlu0 %4272 }
 0x76f   :  { %v4275_v57 = vunpack.i.h.bf16 %v4273_v56  ;;  %v4274_v58 = vunpack.i.l.bf16 %v4273_v56 }
 0x770   :  { %4000 = vmatpush3.bf16.xpose.msk.msra.mxu1 %vm4659_vm8, %v3995_v55 }
 0x771   :  { %v4001_v59 = vpack.c.bf16 %v4275_v57, %v4274_v58  ;;  %v4718_v57 = vsel %vm688_vm3, 0.0, %v4505_v10 }
 0x773   :  { %4003 = vmatprep.subr.msk.bf16.mxu1 %vm4659_vm8, %v4001_v59 }
 0x778   :  { %4006 = vmatpush3.bf16.xpose.msk.msra.mxu1 %vm4659_vm8, %v4001_v59 }
 0x77f   :  { %3661 = vmatmul.mubr.msk.f32.vlgmr.msra.gmra.mrb[4].mxu1 %vm589_vm6, %v826_v21  ;;  %v670_v21 = vadd.s32 48, %v4595_v25 }
 0x780   :  { %3663 = vmatprep.mubr.msk.f32.mxu1 %vm589_vm6, %v832_v27 }
 0x781   :  { %v678_v25 = vshra.s32 %v670_v21, 3 }
 0x783   :  { %3664 = vmatmul.mubr.msk.f32.gmra.mrb[6].mxu1 %vm589_vm6, %v834_v28  ;;  %v4702_v28 = vsel %vm684_vm12, 0.0, %v4505_v10  ;;  %vm687_vm5 = vcmp.eq.s32.totalorder %v678_v25, %v680_v63 }
 0x784   :  { %3666 = vmatprep.mubr.msk.f32.mxu1 %vm589_vm6, %v836_v30  ;;  %v4704_v30 = vsel %vm683_vm13, 0.0, %v4505_v10  ;;  %v4721_v62 = vsel %vm687_vm5, 0.0, %v4505_v10 }
 0x787   :  { %3667 = vmatmul.mubr.msk.f32.gmra.mrb[8].mxu1 %vm589_vm6, %v838_v32 }
 0x788   :  { %3669 = vmatprep.mubr.msk.f32.mxu1 %vm589_vm6, %v840_v36 }
 0x78b   :  { %3670 = vmatmul.mubr.msk.f32.gmra.mrb[10].mxu1 %vm589_vm6, %v842_v37 }
 0x7e0   :  { %v4686_v60 = vpop.f32.mrb[2].mxu1 }
 0x7e1   :  { %v3632_v61 = vpop.f32.mrb[3].mxu1 }
 0x852   :  { %v3662_v9 = vpop.f32.mrb[4].mxu1 }
 0x853   :  { %v997_v14 = vmul.f32 0.35355338, %v3662_v9  ;;  %v957_v15 = vpop.f32.mrb[5].mxu1 }
 0x854   :  { %v996_v19 = vmul.f32 0.35355338, %v957_v15 }
 0x855   :  { %v1005_v22 = vadd.f32 %v997_v14, %v4694_v11 }
 0x856   :  { %v3665_v24 = vpop.f32.mrb[6].mxu1  ;;  %v1004_v27 = vadd.f32 %v996_v19, %v4696_v13 }
 0x857   :  { %v999_v32 = vmul.f32 0.35355338, %v3665_v24  ;;  %v967_v36 = vpop.f32.mrb[7].mxu1  ;;  %v1016_v37 = vsel %vm1012_vm14, %v1005_v22, -inf }
 0x858   :  { %v998_v40 = vmul.f32 0.35355338, %v967_v36  ;;  %1017 = vmax.xlane.f32.xlu0 %v1016_v37  ;;  %v1013_v41 = vsel %vm1012_vm14, %v1004_v27, -inf }
 0x859   :  { %1014 = vmax.xlane.f32.xlu1 %v1013_v41  ;;  %v1007_v44 = vadd.f32 %v999_v32, %v4702_v28 }
 0x85a   :  { %v3668_v46 = vpop.f32.mrb[8].mxu1  ;;  %v1006_v47 = vadd.f32 %v998_v40, %v4704_v30 }
 0x85b   :  { %v1001_v23 = vmul.f32 0.35355338, %v3668_v46  ;;  %v977_v50 = vpop.f32.mrb[9].mxu1  ;;  %v1022_v12 = vsel %vm1012_vm14, %v1007_v44, -inf }
 0x85c   :  { %v1000_v52 = vmul.f32 0.35355338, %v977_v50  ;;  %v1019_v53 = vsel %vm1012_vm14, %v1006_v47, -inf }
 0x85d   :  { %1023 = vmax.xlane.f32.xlu1 %v1022_v12  ;;  %1020 = vmax.xlane.f32.xlu0 %v1019_v53  ;;  %v1009_v54 = vadd.f32 %v1001_v23, %v4710_v49 }
 0x85e   :  { %v3671_v55 = vpop.f32.mrb[10].mxu1  ;;  %v1008_v56 = vadd.f32 %v1000_v52, %v4713_v51 }
 0x85f   :  { %v1003_v58 = vmul.f32 0.35355338, %v3671_v55  ;;  %v987_v59 = vpop.f32.mrb[11].mxu1  ;;  %v1028_v61 = vsel %vm1012_vm14, %v1009_v54, -inf }
 0x860   :  { %v1002_v0 = vmul.f32 0.35355338, %v987_v59  ;;  %v1025_v1 = vsel %vm1012_vm14, %v1008_v56, -inf }
 0x861   :  { %1029 = vmax.xlane.f32.xlu1 %v1028_v61  ;;  %1026 = vmax.xlane.f32.xlu0 %v1025_v1  ;;  %v1011_v63 = vadd.f32 %v1003_v58, %v4718_v57 }
 0x862   :  { %v1010_v2 = vadd.f32 %v1002_v0, %v4721_v62 }
 0x863   :  { %v1034_v3 = vsel %vm1012_vm14, %v1011_v63, -inf }
 0x864   :  { %v1031_v4 = vsel %vm1012_vm14, %v1010_v2, -inf }
 0x865   :  { %1035 = vmax.xlane.f32.xlu1 %v1034_v3  ;;  %1032 = vmax.xlane.f32.xlu0 %v1031_v4 }
 0x87b   :  { %4277 = vrot.lane.b32.xlu0 %v4637_v26, %s4506_s2 }
 0x8e5   :  { %v1018_v5 = vpop.xlane.xlu0 %1017 }
 0x8e6   :  { %v1038_v7 = vsub.f32 %v1005_v22, %v1018_v5  ;;  %v1015_v8 = vpop.xlane.xlu1 %1014 }
 0x8e7   :  { %v1037_v9 = vsub.f32 %v1004_v27, %v1015_v8 }
 0x8e8   :  { %v1047_v10 = vmul.f32 1.442695, %v1038_v7 }
 0x8e9   :  { %v1045_v14 = vmul.f32 1.442695, %v1037_v9 }
 0x8ea   :  { %4350 = vpow2.f32 %v1047_v10  ;;  %v1024_v15 = vpop.xlane.xlu1 %1023  ;;  %v1021_v16 = vpop.xlane.xlu0 %1020 }
 0x8eb   :  { %4352 = vpow2.f32 %v1045_v14  ;;  %v1040_v18 = vsub.f32 %v1007_v44, %v1024_v15  ;;  %v1039_v19 = vsub.f32 %v1006_v47, %v1021_v16 }
 0x8ed   :  { %v1051_v20 = vmul.f32 1.442695, %v1040_v18  ;;  %v1049_v21 = vmul.f32 1.442695, %v1039_v19 }
 0x8ee   :  { %v1030_v24 = vpop.xlane.xlu1 %1029  ;;  %v1027_v32 = vpop.xlane.xlu0 %1026 }
 0x8ef   :  { %4354 = vpow2.f32 %v1051_v20  ;;  %v1042_v36 = vsub.f32 %v1009_v54, %v1030_v24  ;;  %v1041_v37 = vsub.f32 %v1008_v56, %v1027_v32 }
 0x8f0   :  { %4356 = vpow2.f32 %v1049_v21 }
 0x8f1   :  { %v1055_v26 = vmul.f32 1.442695, %v1042_v36  ;;  %v1053_v22 = vmul.f32 1.442695, %v1041_v37 }
 0x8f2   :  { %v1036_v39 = vpop.xlane.xlu1 %1035  ;;  %v1033_v27 = vpop.xlane.xlu0 %1032 }
 0x8f3   :  { %4358 = vpow2.f32 %v1055_v26  ;;  %v1044_v40 = vsub.f32 %v1011_v63, %v1036_v39  ;;  %v1043_v41 = vsub.f32 %v1010_v2, %v1033_v27 }
 0x8f4   :  { %v4730_v25 = vpop.eup %4350  ;;  %4360 = vpow2.f32 %v1053_v22 }
 0x8f5   :  { %v4353_v44 = vpop.eup %4352  ;;  %v1059_v46 = vmul.f32 1.442695, %v1044_v40  ;;  %v1057_v47 = vmul.f32 1.442695, %v1043_v41  ;;  %v1064_v23 = vsel %vm1012_vm14, %v4730_v25, 0.0 }
 0x8f6   :  { %1065 = vadd.xlane.f32.xlu1 %v1064_v23  ;;  %v4278_v50 = vpop.permute.xlu0 %4277  ;;  %v1061_v12 = vsel %vm1012_vm14, %v4353_v44, 0.0 }
 0x8f7   :  { %4362 = vpow2.f32 %v1059_v46  ;;  %v4280_v52 = vunpack.i.h.bf16 %v4278_v50  ;;  %v4279_v53 = vunpack.i.l.bf16 %v4278_v50  ;;  %1062 = vadd.xlane.f32.xlu0 %v1061_v12 }
 0x8f8   :  { %4364 = vpow2.f32 %v1057_v47 }
 0x8f9   :  { %v4735_v54 = vpop.eup %4354  ;;  %v4007_v55 = vpack.c.bf16 %v4280_v52, %v4279_v53 }
 0x8fa   :  { %v4737_v56 = vpop.eup %4356  ;;  %v1070_v58 = vsel %vm1012_vm14, %v4735_v54, 0.0 }
 0x8fb   :  { %1071 = vadd.xlane.f32.xlu1 %v1070_v58  ;;  %v1067_v59 = vsel %vm1012_vm14, %v4737_v56, 0.0  ;;  %4008 = vmatprep.subr.bf16.mxu0 %v4007_v55 }
 0x8fc   :  { %1068 = vadd.xlane.f32.xlu0 %v1067_v59  ;;  %4010 = vmatpush3.bf16.msra.mxu0 %v4007_v55  ;;  %v1286_v59 = vld [vmem:[#allocation2 + $0xd0] sm:$0xff] }
 0x8fd   :  { %v4743_v61 = vpop.eup %4358 }
 0x8fe   :  { %v4361_v0 = vpop.eup %4360  ;;  %v1076_v1 = vsel %vm1012_vm14, %v4743_v61, 0.0 }
 0x8ff   :  { %1077 = vadd.xlane.f32.xlu1 %v1076_v1  ;;  %v1073_v63 = vsel %vm1012_vm14, %v4361_v0, 0.0  ;;  %v1287_v1 = vld [vmem:[#allocation2 + $0xd8] sm:$0xff] }
 0x900   :  { %1074 = vadd.xlane.f32.xlu0 %v1073_v63  ;;  %v1288_v63 = vld [vmem:[#allocation2 + $0xe0] sm:$0xff] }
 0x901   :  { %v4748_v2 = vpop.eup %4362 }
 0x902   :  { %v1082_v3 = vsel %vm1012_vm14, %v4748_v2, 0.0  ;;  %v4365_v4 = vpop.eup %4364 }
 0x903   :  { %1083 = vadd.xlane.f32.xlu1 %v1082_v3  ;;  %v1079_v5 = vsel %vm1012_vm14, %v4365_v4, 0.0  ;;  %v4027_v3 = vpack.c.bf16 %v1288_v63, %v1287_v1 }
 0x907   :  { %1080 = vadd.xlane.f32.xlu1 %v1079_v5 }
 0x916   :  { %4287 = vrot.lane.b32.xlu0 %v4645_v33, %s4506_s2 }
 0x918   :  { %4282 = vrot.lane.b32.xlu1 %v4641_v29, %s4506_s2 }
 0x91a   :  { %4292 = vrot.lane.b32.xlu0 %v4649_v38, %s4506_s2 }
 0x983   :  { %v1066_v7 = vpop.xlane.xlu1 %1065 }
 0x984   :  { %v1063_v8 = vpop.xlane.xlu0 %1062 }
 0x985   :  { %4366 = vrcp.f32 %v1063_v8 }
 0x986   :  { %4368 = vrcp.f32 %v1066_v7 }
 0x988   :  { %v1072_v9 = vpop.xlane.xlu1 %1071 }
 0x989   :  { %v1069_v10 = vpop.xlane.xlu0 %1068 }
 0x98a   :  { %4370 = vrcp.f32 %v1069_v10 }
 0x98b   :  { %4372 = vrcp.f32 %v1072_v9 }
 0x98c   :  { %v1078_v14 = vpop.xlane.xlu1 %1077 }
 0x98d   :  { %v1075_v15 = vpop.xlane.xlu0 %1074 }
 0x98e   :  { %4374 = vrcp.f32 %v1075_v15 }
 0x98f   :  { %v4367_v16 = vpop.eup %4366  ;;  %4376 = vrcp.f32 %v1078_v14 }
 0x990   :  { %v1084_v18 = vpop.xlane.xlu1 %1083  ;;  %v1086_v19 = vmul.f32 %v4367_v16, %v4353_v44  ;;  %v4369_v40 = vpop.eup %4368 }
 0x991   :  { %v4288_v20 = vpop.permute.xlu0 %4287  ;;  %v1088_v44 = vmul.f32 %v4369_v40, %v4730_v25 }
 0x992   :  { %3688 = vmatprep.mubr.msk.f32.mxu0 %vm1012_vm14, %v1086_v19  ;;  %v4290_v24 = vunpack.i.h.bf16 %v4288_v20  ;;  %v4289_v29 = vunpack.i.l.bf16 %v4288_v20  ;;  %v1377_v19 = vld [vmem:[#allocation2 + $0xf0] sm:$0xff]  ;;  %v1378_v20 = vld [vmem:[#allocation2 + $0xf8] sm:$0xff] }
 0x994   :  { %v1081_v33 = vpop.xlane.xlu1 %1080  ;;  %v4015_v26 = vpack.c.bf16 %v4290_v24, %v4289_v29  ;;  %v4371_v41 = vpop.eup %4370 }
 0x995   :  { %v4293_v38 = vpop.permute.xlu0 %4292  ;;  %4378 = vrcp.f32 %v1081_v33  ;;  %v4373_v46 = vpop.eup %4372  ;;  %v1090_v47 = vmul.f32 %v4371_v41, %v4737_v56 }
 0x996   :  { %v4295_v22 = vunpack.i.h.bf16 %v4293_v38  ;;  %v4294_v39 = vunpack.i.l.bf16 %v4293_v38  ;;  %4380 = vrcp.f32 %v1084_v18  ;;  %v1092_v50 = vmul.f32 %v4373_v46, %v4735_v54  ;;  %v1285_v54 = vld [vmem:[#allocation2 + $0xc8] sm:$0xff] }
 0x997   :  { %v3339_v46 = vld [vmem:[#allocation2 + $0xe8] ss:$0 sm:$0xff] }
 0x998   :  { %v4283_v21 = vpop.permute.xlu1 %4282  ;;  %v4019_v27 = vpack.c.bf16 %v4295_v22, %v4294_v39  ;;  %v4375_v23 = vpop.eup %4374  ;;  %v1380_v22 = vld [vmem:[#allocation2 + $0x108] sm:$0xff] }
 0x999   :  { %v4285_v32 = vunpack.i.h.bf16 %v4283_v21  ;;  %v4284_v36 = vunpack.i.l.bf16 %v4283_v21  ;;  %v4377_v12 = vpop.eup %4376  ;;  %v1094_v52 = vmul.f32 %v4375_v23, %v4361_v0  ;;  %v4023_v0 = vpack.c.bf16 %v1286_v59, %v1285_v54 }
 0x99a   :  { %v1096_v55 = vmul.f32 %v4377_v12, %v4743_v61 }
 0x99b   :  { %v4011_v37 = vpack.c.bf16 %v4285_v32, %v4284_v36  ;;  %v4032_v36 = vpack.c.bf16 %v1378_v20, %v1377_v19  ;;  %v1536_v19 = vld [vmem:[#allocation2 + $0x128] sm:$0xff]  ;;  %v1537_v20 = vld [vmem:[#allocation2 + $0x130] sm:$0xff] }
 0x99d   :  { %4012 = vmatprep.subr.bf16.mxu0 %v4011_v37 }
 0x99e   :  { %4014 = vmatpush3.bf16.msra.mxu0 %v4011_v37 }
 0x99f   :  { %4016 = vmatprep.subr.bf16.mxu0 %v4015_v26  ;;  %v4379_v53 = vpop.eup %4378 }
 0x9a0   :  { %v4381_v25 = vpop.eup %4380  ;;  %v1098_v58 = vmul.f32 %v4379_v53, %v4365_v4 }
 0x9a1   :  { %v1100_v56 = vmul.f32 %v4381_v25, %v4748_v2 }
 0x9a2   :  { %4018 = vmatpush3.bf16.msra.mxu0 %v4015_v26  ;;  %v1379_v26 = vld [vmem:[#allocation2 + $0x100] sm:$0xff] }
 0x9a3   :  { %4020 = vmatprep.subr.bf16.mxu0 %v4019_v27 }
 0x9a6   :  { %4022 = vmatpush3.bf16.msra.mxu0 %v4019_v27  ;;  %v4035_v27 = vpack.c.bf16 %v1380_v22, %v1379_v26  ;;  %v3344_v26 = vld [vmem:[#allocation2 + $0x90] ss:$0 sm:$0xff] }
 0x9a7   :  { %4024 = vmatprep.subr.bf16.mxu0 %v4023_v0 }
 0x9a9   :  { %3689 = vmatmul.mubr.msk.f32.vlgmr.msra.gmra.mrb[6].mxu0 %vm1012_vm14, %v1088_v44  ;;  %v3342_v44 = vld [vmem:[#allocation2 + $0x110] ss:$0 sm:$0xff] }
 0x9aa   :  { %3691 = vmatprep.mubr.msk.f32.mxu0 %vm1012_vm14, %v1090_v47  ;;  %4026 = vmatpush3.bf16.msra.mxu0 %v4023_v0 }
 0x9ab   :  { %4028 = vmatprep.subr.bf16.mxu0 %v4027_v3 }
 0x9ad   :  { %3692 = vmatmul.mubr.msk.f32.gmra.mrb[8].mxu0 %vm1012_vm14, %v1092_v50 }
 0x9ae   :  { %3694 = vmatprep.mubr.msk.f32.mxu0 %vm1012_vm14, %v1094_v52  ;;  %4030 = vmatpush3.bf16.msra.mxu0 %v4027_v3 }
 0x9af   :  { %4031 = vmatprep.subr.bf16.mxu0 %v4490_v6 }
 0x9b1   :  { %3695 = vmatmul.mubr.msk.f32.gmra.mrb[10].mxu0 %vm1012_vm14, %v1096_v55 }
 0x9b2   :  { %3697 = vmatprep.mubr.msk.f32.mxu0 %vm1012_vm14, %v1098_v58 }
 0x9b5   :  { %3698 = vmatmul.mubr.msk.f32.gmra.mrb[12].mxu0 %vm1012_vm14, %v1100_v56 }
 0xa7c   :  { %v3690_v61 = vpop.f32.mrb[6].mxu0 }
 0xa7d   :  { %v1215_v4 = vpop.f32.mrb[7].mxu0 }
 0xa80   :  { %v3693_v5 = vpop.f32.mrb[8].mxu0 }
 0xa81   :  { %1258 = vrot.lane.b32.xlu0 %v3693_v5, %s4488_s26  ;;  %v1225_v2 = vpop.f32.mrb[9].mxu0 }
 0xa82   :  { %1256 = vrot.lane.b32.xlu1 %v1225_v2, %s4488_s26 }
 0xa84   :  { %v3696_v7 = vpop.f32.mrb[10].mxu0 }
 0xa85   :  { %1266 = vrot.lane.b32.xlu0 %v3696_v7, %s4499_s1  ;;  %v1235_v8 = vpop.f32.mrb[11].mxu0 }
 0xa86   :  { %1264 = vrot.lane.b32.xlu1 %v1235_v8, %s4499_s1 }
 0xa88   :  { %v3699_v9 = vpop.f32.mrb[12].mxu0 }
 0xa89   :  { %1274 = vrot.lane.b32.xlu0 %v3699_v9, %s4507_s13  ;;  %v1245_v10 = vpop.f32.mrb[13].mxu0 }
 0xa8a   :  { %1272 = vrot.lane.b32.xlu1 %v1245_v10, %s4507_s13 }
 0xaf3   :  { %v1259_v14 = vpop.permute.xlu0 %1258 }
 0xaf4   :  { %v1257_v15 = vpop.permute.xlu1 %1256  ;;  %v1279_v24 = vsel %vm589_vm6, %v3690_v61, %v1259_v14 }
 0xaf5   :  { %v1278_v33 = vsel %vm589_vm6, %v1215_v4, %v1257_v15  ;;  %v1534_v15 = vld [vmem:[#allocation2 + $0x118] sm:$0xff] }
 0xaf7   :  { %v1267_v16 = vpop.permute.xlu0 %1266 }
 0xaf8   :  { %v1265_v18 = vpop.permute.xlu1 %1264  ;;  %v1281_v38 = vsel %vm345_vm1, %v1279_v24, %v1267_v16  ;;  %v1535_v16 = vld [vmem:[#allocation2 + $0x120] sm:$0xff] }
 0xaf9   :  { %v1280_v29 = vsel %vm345_vm1, %v1278_v33, %v1265_v18  ;;  %v4037_v18 = vpack.c.bf16 %v1535_v16, %v1534_v15  ;;  %v4041_v33 = vpack.c.bf16 %v1537_v20, %v1536_v19  ;;  %v3346_v15 = vld [vmem:[#allocation2 + $0x138] ss:$0 sm:$0xff] }
 0xafb   :  { %v1275_v21 = vpop.permute.xlu0 %1274  ;;  %4038 = vmatprep.subr.bf16.mxu1 %v4037_v18 }
 0xafc   :  { %v1273_v32 = vpop.permute.xlu1 %1272  ;;  %v1284_v39 = vsel %vm1282_vm7, %v1281_v38, %v1275_v21  ;;  %4040 = vmatpush3.bf16.msra.mxu1 %v4037_v18 }
 0xafd   :  { %v1283_v37 = vsel %vm1282_vm7, %v1280_v29, %v1273_v32  ;;  %4042 = vmatprep.subr.bf16.mxu1 %v4041_v33 }
 0xafe   :  { %3708 = vmatprep.mubr.msk.f32.mxu0 %vm356_vm2, %v1283_v37 }
 0xaff   :  { %3709 = vmatmul.mubr.msk.f32.vlgmr.msra.gmra.mrb[14].mxu0 %vm356_vm2, %v1284_v39 }
 0xb00   :  { %4033 = vmatpush3.bf16.msra.mxu0 %v4032_v36  ;;  %3719 = vmatprep.mubr.msk.f32.mxu0 %vm4497_vm9, %v4498_v34 }
 0xb01   :  { %4034 = vmatprep.subr.bf16.mxu0 %v4490_v6  ;;  %4044 = vmatpush3.bf16.msra.mxu1 %v4041_v33 }
 0xb04   :  { %4036 = vmatpush3.bf16.msra.mxu0 %v4035_v27  ;;  %v3345_v27 = vld [vmem:[#allocation2 + $0x98] ss:$0 sm:$0xff] }
 0xb07   :  { %3720 = vmatmul.mubr.msk.f32.vlgmr.msra.gmra.mrb[16].mxu0 %vm356_vm2, %v4686_v60 }
 0xbd2   :  { %v3710_v40 = vpop.f32.mrb[14].mxu0 }
 0xbd3   :  { %v1366_v41 = vpop.f32.mrb[15].mxu0  ;;  %v1372_v53 = vadd.f32 %v3710_v40, %v3339_v46 }
 0xbd4   :  { %v1367_v12 = vadd.f32 %v3339_v46, %v1366_v41 }
 0xbd5   :  { %v1376_v59 = vadd.f32 %v1372_v53, %v4618_v45  ;;  %v1681_v53 = vld [vmem:[#allocation2 + $0x158] sm:$0xff] }
 0xbd6   :  { %v1375_v58 = vadd.f32 %v1367_v12, %v4610_v42 }
 0xbda   :  { %v1455_v47 = vpop.f32.mrb[16].mxu0 }
 0xbdb   :  { %v1456_v23 = vadd.f32 %v3342_v44, %v1455_v47  ;;  %v3721_v50 = vpop.f32.mrb[17].mxu0 }
 0xbdc   :  { %v1679_v50 = vld [vmem:[#allocation2 + $0x148] sm:$0xff] }
 0xbdd   :  { %v1466_v52 = vrot.slane %v1456_v23, %v4598_v31  ;;  %v1678_v23 = vld [vmem:[#allocation2 + $0x140] sm:$0xff] }
 0xbde   :  { %v4045_v12 = vpack.c.bf16 %v1679_v50, %v1678_v23 }
 0xbdf   :  { %v1467_v55 = vcombine.high %v1466_v52, %v1466_v52  ;;  %v1474_v25 = vrot.slane %v1466_v52, %v4598_v31  ;;  %v1680_v52 = vld [vmem:[#allocation2 + $0x150] sm:$0xff] }
 0xbe0   :  { %4046 = vmatprep.subr.bf16.mxu0 %v4045_v12 }
 0xbe1   :  { %v1481_v56 = vrot.slane %v1467_v55, %v4598_v31  ;;  %v1485_v54 = vrot.slane %v1474_v25, %v4602_v35  ;;  %4048 = vmatpush3.bf16.msra.mxu0 %v4045_v12  ;;  %v4049_v55 = vpack.c.bf16 %v1681_v53, %v1680_v52  ;;  %v1682_v25 = vld [vmem:[#allocation2 + $0x160] sm:$0xff] }
 0xbe3   :  { %v4798_v0 = vadd.f32 %v1485_v54, %v1375_v58  ;;  %v1489_v1 = vrot.slane %v1481_v56, %v4602_v35  ;;  %4050 = vmatprep.subr.bf16.mxu0 %v4049_v55  ;;  %v1683_v58 = vld [vmem:[#allocation2 + $0x168] sm:$0xff]  ;;  %v1684_v54 = vld [vmem:[#allocation2 + $0x170] sm:$0xff] }
 0xbe4   :  { %v4053_v56 = vpack.c.bf16 %v1683_v58, %v1682_v25 }
 0xbe5   :  { %v1494_v63 = vsel %vm356_vm2, %v4798_v0, 0.0  ;;  %v4803_v3 = vadd.f32 %v1489_v1, %v1376_v59  ;;  %4052 = vmatpush3.bf16.msra.mxu0 %v4049_v55  ;;  %v1685_v59 = vld [vmem:[#allocation2 + $0x178] sm:$0xff] }
 0xbe6   :  { %1495 = vadd.xlane.f32.xlu1 %v1494_v63  ;;  %4054 = vmatprep.subr.bf16.mxu0 %v4053_v56  ;;  %v4057_v1 = vpack.c.bf16 %v1685_v59, %v1684_v54  ;;  %v1686_v63 = vld [vmem:[#allocation2 + $0x180] sm:$0xff] }
 0xbe7   :  { %v1497_v61 = vsel %vm356_vm2, %v4803_v3, 0.0 }
 0xbe8   :  { %1498 = vadd.xlane.f32.xlu0 %v1497_v61  ;;  %v1687_v61 = vld [vmem:[#allocation2 + $0x188] sm:$0xff] }
 0xbe9   :  { %4056 = vmatpush3.bf16.msra.mxu0 %v4053_v56 }
 0xbea   :  { %4058 = vmatprep.subr.bf16.mxu0 %v4057_v1 }
 0xbed   :  { %4060 = vmatpush3.bf16.msra.mxu0 %v4057_v1 }
 0xc73   :  { %v1496_v42 = vpop.xlane.xlu1 %1495 }
 0xc74   :  { %v1500_v4 = vmul.f32 0.03125, %v1496_v42  ;;  %v4061_v42 = vpack.c.bf16 %v1687_v61, %v1686_v63 }
 0xc75   :  { %v1499_v5 = vpop.xlane.xlu0 %1498 }
 0xc76   :  { %v1502_v2 = vsub.f32 %v4798_v0, %v1500_v4  ;;  %v1501_v45 = vmul.f32 0.03125, %v1499_v5  ;;  %4062 = vmatprep.subr.bf16.mxu0 %v4061_v42  ;;  %v1688_v4 = vld [vmem:[#allocation2 + $0x190] sm:$0xff]  ;;  %v1689_v5 = vld [vmem:[#allocation2 + $0x198] sm:$0xff] }
 0xc77   :  { %4064 = vmatpush3.bf16.msra.mxu0 %v4061_v42 }
 0xc78   :  { %v1503_v7 = vsub.f32 %v4803_v3, %v1501_v45  ;;  %v1504_v8 = vmul.f32 %v1502_v2, %v1502_v2  ;;  %v1690_v45 = vld [vmem:[#allocation2 + $0x1a0] sm:$0xff] }
 0xc7a   :  { %v1506_v9 = vsel %vm356_vm2, %v1504_v8, 0.0  ;;  %v1505_v10 = vmul.f32 %v1503_v7, %v1503_v7 }
 0xc7b   :  { %1507 = vadd.xlane.f32.xlu0 %v1506_v9  ;;  %v1692_v9 = vld [vmem:[#allocation2 + $0x1b0] sm:$0xff] }
 0xc7c   :  { %v1509_v14 = vsel %vm356_vm2, %v1505_v10, 0.0  ;;  %v1693_v10 = vld [vmem:[#allocation2 + $0x1b8] sm:$0xff] }
 0xc7d   :  { %1510 = vadd.xlane.f32.xlu1 %v1509_v14  ;;  %v4073_v14 = vpack.c.bf16 %v1693_v10, %v1692_v9  ;;  %v4508_v10 = vmov 1.0  }
 0xd08   :  { %v1508_v21 = vpop.xlane.xlu0 %1507 }
 0xd09   :  { %v1512_v24 = vmul.f32 0.03125, %v1508_v21 }
 0xd0a   :  { %v1511_v29 = vpop.xlane.xlu1 %1510 }
 0xd0b   :  { %v1514_v32 = vadd.f32 1e-05, %v1512_v24  ;;  %v1513_v36 = vmul.f32 0.03125, %v1511_v29 }
 0xd0d   :  { %4382 = vrsqrt.f32 %v1514_v32  ;;  %v1515_v38 = vadd.f32 1e-05, %v1513_v36 }
 0xd0f   :  { %4384 = vrsqrt.f32 %v1515_v38 }
 0xd17   :  { %v4383_v37 = vpop.eup %4382 }
 0xd18   :  { %v1518_v22 = vmul.f32 %v4383_v37, %v1502_v2  ;;  %v4065_v2 = vpack.c.bf16 %v1689_v5, %v1688_v4 }
 0xd19   :  { %v4385_v39 = vpop.eup %4384 }
 0xd1a   :  { %v1519_v40 = vmul.f32 %v4385_v39, %v1503_v7  ;;  %v1525_v41 = vmul.f32 %v3344_v26, %v1518_v22  ;;  %4066 = vmatprep.subr.bf16.mxu0 %v4065_v2  ;;  %v1691_v7 = vld [vmem:[#allocation2 + $0x1a8] sm:$0xff] }
 0xd1b   :  { %4068 = vmatpush3.bf16.msra.mxu0 %v4065_v2  ;;  %v4069_v8 = vpack.c.bf16 %v1691_v7, %v1690_v45 }
 0xd1c   :  { %v1526_v44 = vmul.f32 %v3344_v26, %v1519_v40  ;;  %v1532_v46 = vadd.f32 %v3345_v27, %v1525_v41 }
 0xd1d   :  { %4070 = vmatprep.subr.bf16.mxu0 %v4069_v8 }
 0xd1e   :  { %v1533_v47 = vadd.f32 %v3345_v27, %v1526_v44  ;;  %3730 = vmatprep.mubr.msk.f32.mxu1 %vm356_vm2, %v1532_v46 }
 0xd1f   :  { %4072 = vmatpush3.bf16.msra.mxu0 %v4069_v8 }
 0xd20   :  { %3731 = vmatmul.mubr.msk.f32.vlgmr.msra.gmra.mrb[12].mxu1 %vm356_vm2, %v1533_v47  ;;  %4074 = vmatprep.subr.bf16.mxu0 %v4073_v14 }
 0xd23   :  { %4076 = vmatpush3.bf16.msra.mxu0 %v4073_v14 }
 0xdf3   :  { %v3732_v16 = vpop.f32.mrb[12].mxu1 }
 0xdf4   :  { %v1621_v18 = vadd.f32 %v3732_v16, %v3346_v15  ;;  %v1615_v19 = vpop.f32.mrb[13].mxu1 }
 0xdf5   :  { %v1616_v20 = vadd.f32 %v3346_v15, %v1615_v19 }
 0xdf6   :  { %v1627_v33 = vmul.f32 0.70710677, %v1621_v18 }
 0xdf7   :  { %v1626_v21 = vmul.f32 0.70710677, %v1616_v20 }
 0xdf8   :  { %v1633_v24 = vand.u32 2147483647, %v1627_v33  ;;  %vm1629_vm10 = vcmp.lt.f32.partialorder %v1627_v33, 0.0  ;;  %v3349_v33 = vld [vmem:[#allocation2 + $0x1c0] ss:$0 sm:$0xff] }
 0xdf9   :  { %v1632_v29 = vand.u32 2147483647, %v1626_v21  ;;  %vm1628_vm11 = vcmp.lt.f32.partialorder %v1626_v21, 0.0  ;;  %v1631_v14 = vsel %vm1629_vm10, -1.0, %v4508_v10 }
 0xdfa   :  { %v1635_v32 = vmul.f32 0.3275911, %v1633_v24  ;;  %v1661_v26 = vsub.f32 0.0, %v1633_v24  ;;  %v1630_v19 = vsel %vm1628_vm11, -1.0, %v4508_v10 }
 0xdfb   :  { %v1634_v36 = vmul.f32 0.3275911, %v1632_v29  ;;  %v1660_v22 = vsub.f32 0.0, %v1632_v29 }
 0xdfc   :  { %v1637_v38 = vadd.f32 1.0, %v1635_v32  ;;  %v1663_v27 = vmul.f32 %v1661_v26, %v1633_v24  ;;  %v1624_v32 = vmul.f32 0.5, %v1616_v20 }
 0xdfd   :  { %v1636_v37 = vadd.f32 1.0, %v1634_v36  ;;  %v1662_v44 = vmul.f32 %v1660_v22, %v1632_v29 }
 0xdfe   :  { %4386 = vrcp.f32 %v1637_v38  ;;  %v1666_v23 = vmul.f32 1.442695, %v1663_v27  ;;  %v1625_v38 = vmul.f32 0.5, %v1621_v18 }
 0xdff   :  { %4388 = vrcp.f32 %v1636_v37  ;;  %v1664_v52 = vmul.f32 1.442695, %v1662_v44 }
 0xe00   :  { %4390 = vpow2.f32 %v1666_v23 }
 0xe01   :  { %4392 = vpow2.f32 %v1664_v52 }
 0xe08   :  { %v4387_v39 = vpop.eup %4386 }
 0xe09   :  { %v4389_v40 = vpop.eup %4388  ;;  %v1643_v41 = vmul.f32 1.0614054, %v4387_v39 }
 0xe0a   :  { %v1642_v46 = vmul.f32 1.0614054, %v4389_v40  ;;  %v4391_v5 = vpop.eup %4390 }
 0xe0b   :  { %v1645_v47 = vadd.f32 -1.4531521, %v1643_v41  ;;  %v4393_v45 = vpop.eup %4392 }
 0xe0c   :  { %v1644_v50 = vadd.f32 -1.4531521, %v1642_v46 }
 0xe0d   :  { %v1647_v12 = vmul.f32 %v4387_v39, %v1645_v47 }
 0xe0e   :  { %v1646_v53 = vmul.f32 %v4389_v40, %v1644_v50 }
 0xe0f   :  { %v1649_v55 = vadd.f32 1.4214138, %v1647_v12 }
 0xe10   :  { %v1648_v25 = vadd.f32 1.4214138, %v1646_v53 }
 0xe11   :  { %v1651_v58 = vmul.f32 %v4387_v39, %v1649_v55  ;;  %v1818_v55 = vld [vmem:[#allocation2 + $0x1e8] sm:$0xff] }
 0xe12   :  { %v1650_v56 = vmul.f32 %v4389_v40, %v1648_v25  ;;  %v1819_v25 = vld [vmem:[#allocation2 + $0x1f0] sm:$0xff] }
 0xe13   :  { %v1653_v54 = vadd.f32 -0.28449672, %v1651_v58  ;;  %v4077_v58 = vpack.c.bf16 %v1819_v25, %v1818_v55 }
 0xe14   :  { %v1652_v59 = vadd.f32 -0.28449672, %v1650_v56  ;;  %v1820_v56 = vld [vmem:[#allocation2 + $0x1f8] sm:$0xff] }
 0xe15   :  { %v1655_v1 = vmul.f32 %v4387_v39, %v1653_v54  ;;  %4078 = vmatprep.subr.bf16.mxu1 %v4077_v58  ;;  %v1821_v54 = vld [vmem:[#allocation2 + $0x200] sm:$0xff] }
 0xe16   :  { %v1654_v63 = vmul.f32 %v4389_v40, %v1652_v59  ;;  %4080 = vmatpush3.bf16.msra.mxu1 %v4077_v58  ;;  %v4081_v59 = vpack.c.bf16 %v1821_v54, %v1820_v56 }
 0xe17   :  { %v1657_v61 = vadd.f32 0.2548296, %v1655_v1 }
 0xe18   :  { %v1656_v42 = vadd.f32 0.2548296, %v1654_v63  ;;  %4082 = vmatprep.subr.bf16.mxu1 %v4081_v59 }
 0xe19   :  { %v1659_v4 = vmul.f32 %v4387_v39, %v1657_v61 }
 0xe1a   :  { %v1658_v2 = vmul.f32 %v4389_v40, %v1656_v42  ;;  %4084 = vmatpush3.bf16.msra.mxu1 %v4081_v59 }
 0xe1b   :  { %v1669_v7 = vmul.f32 %v4391_v5, %v1659_v4 }
 0xe1c   :  { %v1668_v8 = vmul.f32 %v4393_v45, %v1658_v2  ;;  %v3350_v45 = vld [vmem:[#allocation2 + $0x1c8] ss:$0 sm:$0xff] }
 0xe1d   :  { %v1671_v9 = vsub.f32 1.0, %v1669_v7 }
 0xe1e   :  { %v1670_v15 = vsub.f32 1.0, %v1668_v8 }
 0xe1f   :  { %v1673_v16 = vmul.f32 %v1671_v9, %v1631_v14 }
 0xe20   :  { %v1672_v24 = vmul.f32 %v1670_v15, %v1630_v19  ;;  %v3351_v15 = vld [vmem:[#allocation2 + $0x1d0] ss:$0 sm:$0xff] }
 0xe21   :  { %v1675_v29 = vadd.f32 1.0, %v1673_v16 }
 0xe22   :  { %v1674_v36 = vadd.f32 1.0, %v1672_v24 }
 0xe23   :  { %v1677_v26 = vmul.f32 %v1675_v29, %v1625_v38  ;;  %v3352_v29 = vld [vmem:[#allocation2 + $0x208] ss:$0 sm:$0xff] }
 0xe24   :  { %v1676_v37 = vmul.f32 %v1674_v36, %v1624_v32 }
 0xe26   :  { %3765 = vmatprep.mubr.f32.mxu0 %v1676_v37 }
 0xe27   :  { %3766 = vmatmul.mubr.f32.vlgmr.msra.gmra.mrb[18].mxu0 %v1677_v26 }
 0xefa   :  { %v3767_v21 = vpop.f32.mrb[18].mxu0 }
 0xefb   :  { %v1771_v22 = vadd.f32 %v3767_v21, %v3349_v33  ;;  %v1765_v39 = vpop.f32.mrb[19].mxu0 }
 0xefc   :  { %v1766_v27 = vadd.f32 %v3349_v33, %v1765_v39 }
 0xefd   :  { %v1775_v40 = vadd.f32 %v1771_v22, %v4803_v3 }
 0xefe   :  { %v1774_v41 = vadd.f32 %v1766_v27, %v4798_v0 }
 0xeff   :  { %v4818_v44 = vadd.f32 %v1775_v40, %v4613_v43 }
 0xf00   :  { %v4821_v20 = vadd.f32 %v1774_v41, %v4606_v17 }
 0xf01   :  { %v1781_v18 = vsel %vm356_vm2, %v4818_v44, 0.0 }
 0xf02   :  { %1782 = vadd.xlane.f32.xlu1 %v1781_v18  ;;  %v1778_v46 = vsel %vm356_vm2, %v4821_v20, 0.0 }
 0xf03   :  { %1779 = vadd.xlane.f32.xlu0 %v1778_v46 }
 0xf8f   :  { %v1783_v47 = vpop.xlane.xlu1 %1782 }
 0xf90   :  { %v1785_v23 = vmul.f32 0.03125, %v1783_v47  ;;  %v1780_v50 = vpop.xlane.xlu0 %1779 }
 0xf91   :  { %v1784_v3 = vmul.f32 0.03125, %v1780_v50 }
 0xf92   :  { %v1787_v0 = vsub.f32 %v4818_v44, %v1785_v23 }
 0xf93   :  { %v1786_v43 = vsub.f32 %v4821_v20, %v1784_v3 }
 0xf94   :  { %v1789_v12 = vmul.f32 %v1787_v0, %v1787_v0 }
 0xf95   :  { %v1788_v52 = vmul.f32 %v1786_v43, %v1786_v43 }
 0xf96   :  { %v1793_v17 = vsel %vm356_vm2, %v1789_v12, 0.0 }
 0xf97   :  { %1794 = vadd.xlane.f32.xlu1 %v1793_v17  ;;  %v1790_v53 = vsel %vm356_vm2, %v1788_v52, 0.0 }
 0xf98   :  { %1791 = vadd.xlane.f32.xlu0 %v1790_v53 }
0x1024   :  { %v1795_v1 = vpop.xlane.xlu1 %1794 }
0x1025   :  { %v1797_v63 = vmul.f32 0.03125, %v1795_v1  ;;  %v1792_v61 = vpop.xlane.xlu0 %1791 }
0x1026   :  { %v1796_v42 = vmul.f32 0.03125, %v1792_v61 }
0x1027   :  { %v1799_v4 = vadd.f32 1e-05, %v1797_v63 }
0x1028   :  { %v1798_v5 = vadd.f32 1e-05, %v1796_v42 }
0x1029   :  { %4394 = vrsqrt.f32 %v1799_v4 }
0x102a   :  { %4396 = vrsqrt.f32 %v1798_v5 }
0x1033   :  { %v4395_v2 = vpop.eup %4394 }
0x1034   :  { %v4397_v7 = vpop.eup %4396  ;;  %v1803_v8 = vmul.f32 %v4395_v2, %v1787_v0 }
0x1035   :  { %v1802_v9 = vmul.f32 %v4397_v7, %v1786_v43 }
0x1036   :  { %v1810_v14 = vmul.f32 %v3350_v45, %v1803_v8 }
0x1037   :  { %v1809_v16 = vmul.f32 %v3350_v45, %v1802_v9 }
0x1038   :  { %v1817_v24 = vadd.f32 %v3351_v15, %v1810_v14 }
0x1039   :  { %v1816_v19 = vadd.f32 %v3351_v15, %v1809_v16 }
0x103b   :  { %3776 = vmatprep.mubr.msk.f32.mxu1 %vm356_vm2, %v1816_v19 }
0x103c   :  { %3777 = vmatmul.mubr.msk.f32.vlgmr.msra.gmra.mrb[14].mxu1 %vm356_vm2, %v1817_v24 }
0x110f   :  { %v3778_v32 = vpop.f32.mrb[14].mxu1 }
0x1110   :  { %v1905_v36 = vadd.f32 %v3778_v32, %v3352_v29  ;;  %v1899_v38 = vpop.f32.mrb[15].mxu1 }
0x1111   :  { %v1900_v37 = vadd.f32 %v3352_v29, %v1899_v38 }
0x1112   :  { %1912 = vrot.lane.b32.xlu1 %v1905_v36, %s4502_s8 }
0x1113   :  { %1910 = vrot.lane.b32.xlu0 %v1900_v37, %s4502_s8  ;;  %3795 = vmatprep.mubr.msk.f32.mxu1 %vm589_vm6, %v1900_v37  ;;  %v4840_v26 = vpack.i.bf16 %v1905_v36, %v1900_v37 }
0x1116   :  { %1914 = vrot.lane.b32.xlu1 %v1900_v37, %s4501_s0 }
0x1117   :  { %1916 = vrot.lane.b32.xlu0 %v1905_v36, %s4501_s0 }
0x111a   :  { %1918 = vrot.lane.b32.xlu1 %v1900_v37, %s4503_s9 }
0x111b   :  { %1920 = vrot.lane.b32.xlu0 %v1905_v36, %s4503_s9 }
0x111e   :  { %4297 = vrot.lane.b32.xlu1 %v4840_v26, %s4504_s12 }
0x1184   :  { %v1913_v33 = vpop.permute.xlu1 %1912 }
0x1185   :  { %v1911_v21 = vpop.permute.xlu0 %1910 }
0x1186   :  { %v4844_v22 = vpack.i.bf16 %v1913_v33, %v1911_v21 }
0x1188   :  { %v1915_v39 = vpop.permute.xlu1 %1914  ;;  %4302 = vrot.lane.b32.xlu0 %v4844_v22, %s4504_s12 }
0x1189   :  { %v1917_v27 = vpop.permute.xlu0 %1916 }
0x118a   :  { %v4848_v40 = vpack.i.bf16 %v1917_v27, %v1915_v39 }
0x118c   :  { %v1919_v41 = vpop.permute.xlu1 %1918  ;;  %4307 = vrot.lane.b32.xlu1 %v4848_v40, %s4504_s12 }
0x118d   :  { %v1921_v18 = vpop.permute.xlu0 %1920 }
0x118e   :  { %v4852_v46 = vpack.i.bf16 %v1921_v18, %v1919_v41 }
0x1190   :  { %v4298_v47 = vpop.permute.xlu1 %4297  ;;  %4312 = vrot.lane.b32.xlu0 %v4852_v46, %s4504_s12 }
0x1191   :  { %v4300_v23 = vunpack.i.h.bf16 %v4298_v47  ;;  %v4299_v50 = vunpack.i.l.bf16 %v4298_v47 }
0x1193   :  { %v4085_v3 = vpack.c.bf16 %v4300_v23, %v4299_v50 }
0x1195   :  { %4087 = vmatprep.subr.msk.bf16.mxu1 %vm4659_vm8, %v4085_v3 }
0x1196   :  { %4090 = vmatpush3.bf16.xpose.msk.msra.mxu1 %vm4659_vm8, %v4085_v3 }
0x11fa   :  { %v4303_v0 = vpop.permute.xlu0 %4302 }
0x11fb   :  { %v4305_v43 = vunpack.i.h.bf16 %v4303_v0  ;;  %v4304_v12 = vunpack.i.l.bf16 %v4303_v0 }
0x11fd   :  { %v4091_v52 = vpack.c.bf16 %v4305_v43, %v4304_v12 }
0x11fe   :  { %v4308_v17 = vpop.permute.xlu1 %4307 }
0x11ff   :  { %v4310_v53 = vunpack.i.h.bf16 %v4308_v17  ;;  %v4309_v55 = vunpack.i.l.bf16 %v4308_v17  ;;  %4093 = vmatprep.subr.msk.bf16.mxu1 %vm4659_vm8, %v4091_v52 }
0x1200   :  { %4096 = vmatpush3.bf16.xpose.msk.msra.mxu1 %vm4659_vm8, %v4091_v52 }
0x1201   :  { %v4097_v25 = vpack.c.bf16 %v4310_v53, %v4309_v55 }
0x1202   :  { %v4313_v58 = vpop.permute.xlu0 %4312 }
0x1203   :  { %v4315_v56 = vunpack.i.h.bf16 %v4313_v58  ;;  %v4314_v54 = vunpack.i.l.bf16 %v4313_v58  ;;  %4099 = vmatprep.subr.msk.bf16.mxu1 %vm4659_vm8, %v4097_v25 }
0x1205   :  { %v4103_v59 = vpack.c.bf16 %v4315_v56, %v4314_v54 }
0x1208   :  { %4102 = vmatpush3.bf16.xpose.msk.msra.mxu1 %vm4659_vm8, %v4097_v25 }
0x1209   :  { %4105 = vmatprep.subr.msk.bf16.mxu1 %vm4659_vm8, %v4103_v59 }
0x1210   :  { %4108 = vmatpush3.bf16.xpose.msk.msra.mxu1 %vm4659_vm8, %v4103_v59 }
0x1217   :  { %3796 = vmatmul.mubr.msk.f32.vlgmr.msra.gmra.mrb[16].mxu1 %vm589_vm6, %v1905_v36 }
0x1218   :  { %3798 = vmatprep.mubr.msk.f32.mxu1 %vm589_vm6, %v1911_v21 }
0x121b   :  { %3799 = vmatmul.mubr.msk.f32.gmra.mrb[18].mxu1 %vm589_vm6, %v1913_v33 }
0x121c   :  { %3801 = vmatprep.mubr.msk.f32.mxu1 %vm589_vm6, %v1915_v39 }
0x121f   :  { %3802 = vmatmul.mubr.msk.f32.gmra.mrb[20].mxu1 %vm589_vm6, %v1917_v27 }
0x1220   :  { %3804 = vmatprep.mubr.msk.f32.mxu1 %vm589_vm6, %v1919_v41 }
0x1223   :  { %3805 = vmatmul.mubr.msk.f32.gmra.mrb[22].mxu1 %vm589_vm6, %v1921_v18 }
0x12ea   :  { %v3797_v1 = vpop.f32.mrb[16].mxu1 }
0x12eb   :  { %v2076_v63 = vmul.f32 0.35355338, %v3797_v1  ;;  %v2036_v61 = vpop.f32.mrb[17].mxu1 }
0x12ec   :  { %v2075_v42 = vmul.f32 0.35355338, %v2036_v61 }
0x12ed   :  { %v2084_v48 = vadd.f32 %v2076_v63, %v4694_v11 }
0x12ee   :  { %v3800_v4 = vpop.f32.mrb[18].mxu1  ;;  %v2083_v5 = vadd.f32 %v2075_v42, %v4696_v13 }
0x12ef   :  { %v2078_v2 = vmul.f32 0.35355338, %v3800_v4  ;;  %v2046_v45 = vpop.f32.mrb[19].mxu1  ;;  %v2094_v7 = vsel %vm1012_vm14, %v2084_v48, -inf }
0x12f0   :  { %v2077_v8 = vmul.f32 0.35355338, %v2046_v45  ;;  %2095 = vmax.xlane.f32.xlu0 %v2094_v7  ;;  %v2091_v9 = vsel %vm1012_vm14, %v2083_v5, -inf }
0x12f1   :  { %2092 = vmax.xlane.f32.xlu1 %v2091_v9  ;;  %v2086_v14 = vadd.f32 %v2078_v2, %v4702_v28 }
0x12f2   :  { %v3803_v15 = vpop.f32.mrb[20].mxu1  ;;  %v2085_v16 = vadd.f32 %v2077_v8, %v4704_v30 }
0x12f3   :  { %v2080_v19 = vmul.f32 0.35355338, %v3803_v15  ;;  %v2056_v24 = vpop.f32.mrb[21].mxu1  ;;  %v2100_v11 = vsel %vm1012_vm14, %v2086_v14, -inf }
0x12f4   :  { %v2079_v29 = vmul.f32 0.35355338, %v2056_v24  ;;  %v2097_v13 = vsel %vm1012_vm14, %v2085_v16, -inf }
0x12f5   :  { %2101 = vmax.xlane.f32.xlu1 %v2100_v11  ;;  %2098 = vmax.xlane.f32.xlu0 %v2097_v13  ;;  %v2088_v32 = vadd.f32 %v2080_v19, %v4710_v49 }
0x12f6   :  { %v3806_v36 = vpop.f32.mrb[22].mxu1  ;;  %v2087_v38 = vadd.f32 %v2079_v29, %v4713_v51 }
0x12f7   :  { %v2082_v37 = vmul.f32 0.35355338, %v3806_v36  ;;  %v2066_v33 = vpop.f32.mrb[23].mxu1  ;;  %v2106_v28 = vsel %vm1012_vm14, %v2088_v32, -inf }
0x12f8   :  { %v2081_v21 = vmul.f32 0.35355338, %v2066_v33  ;;  %v2103_v30 = vsel %vm1012_vm14, %v2087_v38, -inf }
0x12f9   :  { %2107 = vmax.xlane.f32.xlu1 %v2106_v28  ;;  %2104 = vmax.xlane.f32.xlu0 %v2103_v30  ;;  %v2090_v39 = vadd.f32 %v2082_v37, %v4718_v57 }
0x12fa   :  { %v2089_v27 = vadd.f32 %v2081_v21, %v4721_v62 }
0x12fb   :  { %v2112_v41 = vsel %vm1012_vm14, %v2090_v39, -inf }
0x12fc   :  { %v2109_v49 = vsel %vm1012_vm14, %v2089_v27, -inf }
0x12fd   :  { %2113 = vmax.xlane.f32.xlu1 %v2112_v41  ;;  %2110 = vmax.xlane.f32.xlu0 %v2109_v49 }
0x1313   :  { %4317 = vrot.lane.b32.xlu0 %v4840_v26, %s4506_s2 }
0x137d   :  { %v2096_v51 = vpop.xlane.xlu0 %2095 }
0x137e   :  { %v2116_v18 = vsub.f32 %v2084_v48, %v2096_v51  ;;  %v2093_v47 = vpop.xlane.xlu1 %2092 }
0x137f   :  { %v2115_v23 = vsub.f32 %v2083_v5, %v2093_v47 }
0x1380   :  { %v2125_v50 = vmul.f32 1.442695, %v2116_v18 }
0x1381   :  { %v2123_v3 = vmul.f32 1.442695, %v2115_v23 }
0x1382   :  { %4398 = vpow2.f32 %v2125_v50  ;;  %v2102_v0 = vpop.xlane.xlu1 %2101  ;;  %v2099_v57 = vpop.xlane.xlu0 %2098 }
0x1383   :  { %4400 = vpow2.f32 %v2123_v3  ;;  %v2118_v62 = vsub.f32 %v2086_v14, %v2102_v0  ;;  %v2117_v43 = vsub.f32 %v2085_v16, %v2099_v57 }
0x1385   :  { %v2129_v12 = vmul.f32 1.442695, %v2118_v62  ;;  %v2127_v52 = vmul.f32 1.442695, %v2117_v43 }
0x1386   :  { %v2108_v17 = vpop.xlane.xlu1 %2107  ;;  %v2105_v53 = vpop.xlane.xlu0 %2104 }
0x1387   :  { %4402 = vpow2.f32 %v2129_v12  ;;  %v2120_v55 = vsub.f32 %v2088_v32, %v2108_v17  ;;  %v2119_v25 = vsub.f32 %v2087_v38, %v2105_v53  ;;  %v2454_v12 = vld [vmem:[#allocation2 + $0x238] sm:$0xff] }
0x1388   :  { %4404 = vpow2.f32 %v2127_v52  ;;  %v2455_v52 = vld [vmem:[#allocation2 + $0x240] sm:$0xff] }
0x1389   :  { %v2133_v26 = vmul.f32 1.442695, %v2120_v55  ;;  %v2131_v58 = vmul.f32 1.442695, %v2119_v25  ;;  %v4134_v55 = vpack.c.bf16 %v2455_v52, %v2454_v12 }
0x138a   :  { %v2114_v56 = vpop.xlane.xlu1 %2113  ;;  %v2111_v54 = vpop.xlane.xlu0 %2110 }
0x138b   :  { %4406 = vpow2.f32 %v2133_v26  ;;  %v2122_v59 = vsub.f32 %v2090_v39, %v2114_v56  ;;  %v2121_v1 = vsub.f32 %v2089_v27, %v2111_v54  ;;  %v2456_v26 = vld [vmem:[#allocation2 + $0x248] sm:$0xff] }
0x138c   :  { %v4897_v63 = vpop.eup %4398  ;;  %4408 = vpow2.f32 %v2131_v58  ;;  %v2457_v58 = vld [vmem:[#allocation2 + $0x250] sm:$0xff] }
0x138d   :  { %v4401_v61 = vpop.eup %4400  ;;  %v2137_v42 = vmul.f32 1.442695, %v2122_v59  ;;  %v2135_v48 = vmul.f32 1.442695, %v2121_v1  ;;  %v2142_v4 = vsel %vm1012_vm14, %v4897_v63, 0.0  ;;  %v4137_v1 = vpack.c.bf16 %v2457_v58, %v2456_v26 }
0x138e   :  { %2143 = vadd.xlane.f32.xlu1 %v2142_v4  ;;  %v4318_v5 = vpop.permute.xlu0 %4317  ;;  %v2139_v2 = vsel %vm1012_vm14, %v4401_v61, 0.0 }
0x138f   :  { %4410 = vpow2.f32 %v2137_v42  ;;  %v4320_v45 = vunpack.i.h.bf16 %v4318_v5  ;;  %v4319_v7 = vunpack.i.l.bf16 %v4318_v5  ;;  %2140 = vadd.xlane.f32.xlu0 %v2139_v2 }
0x1390   :  { %4412 = vpow2.f32 %v2135_v48 }
0x1391   :  { %v4902_v8 = vpop.eup %4402  ;;  %v4109_v9 = vpack.c.bf16 %v4320_v45, %v4319_v7  ;;  %v2362_v45 = vld [vmem:[#allocation2 + $0x210] sm:$0xff]  ;;  %v2363_v7 = vld [vmem:[#allocation2 + $0x218] sm:$0xff] }
0x1392   :  { %v4904_v14 = vpop.eup %4404  ;;  %v2148_v15 = vsel %vm1012_vm14, %v4902_v8, 0.0 }
0x1393   :  { %2149 = vadd.xlane.f32.xlu1 %v2148_v15  ;;  %v2145_v16 = vsel %vm1012_vm14, %v4904_v14, 0.0  ;;  %4110 = vmatprep.subr.bf16.mxu0 %v4109_v9 }
0x1394   :  { %2146 = vadd.xlane.f32.xlu0 %v2145_v16  ;;  %4112 = vmatpush3.bf16.msra.mxu0 %v4109_v9  ;;  %v2364_v9 = vld [vmem:[#allocation2 + $0x220] sm:$0xff] }
0x1395   :  { %v4910_v19 = vpop.eup %4406 }
0x1396   :  { %v4912_v24 = vpop.eup %4408  ;;  %v2154_v11 = vsel %vm1012_vm14, %v4910_v19, 0.0 }
0x1397   :  { %2155 = vadd.xlane.f32.xlu1 %v2154_v11  ;;  %v2151_v29 = vsel %vm1012_vm14, %v4912_v24, 0.0 }
0x1398   :  { %2152 = vadd.xlane.f32.xlu0 %v2151_v29 }
0x1399   :  { %v4918_v13 = vpop.eup %4410 }
0x139a   :  { %v2160_v32 = vsel %vm1012_vm14, %v4918_v13, 0.0  ;;  %v4922_v36 = vpop.eup %4412 }
0x139b   :  { %2161 = vadd.xlane.f32.xlu1 %v2160_v32  ;;  %v2157_v38 = vsel %vm1012_vm14, %v4922_v36, 0.0 }
0x139f   :  { %2158 = vadd.xlane.f32.xlu1 %v2157_v38 }
0x13ae   :  { %4327 = vrot.lane.b32.xlu0 %v4848_v40, %s4506_s2 }
0x13b0   :  { %4322 = vrot.lane.b32.xlu1 %v4844_v22, %s4506_s2 }
0x13b2   :  { %4332 = vrot.lane.b32.xlu0 %v4852_v46, %s4506_s2 }
0x141b   :  { %v2144_v37 = vpop.xlane.xlu1 %2143 }
0x141c   :  { %v2141_v33 = vpop.xlane.xlu0 %2140 }
0x141d   :  { %4414 = vrcp.f32 %v2141_v33 }
0x141e   :  { %4416 = vrcp.f32 %v2144_v37 }
0x1420   :  { %v2150_v28 = vpop.xlane.xlu1 %2149 }
0x1421   :  { %v2147_v21 = vpop.xlane.xlu0 %2146 }
0x1422   :  { %4418 = vrcp.f32 %v2147_v21 }
0x1423   :  { %4420 = vrcp.f32 %v2150_v28 }
0x1424   :  { %v2156_v30 = vpop.xlane.xlu1 %2155 }
0x1425   :  { %v2153_v39 = vpop.xlane.xlu0 %2152 }
0x1426   :  { %4422 = vrcp.f32 %v2153_v39 }
0x1427   :  { %v4415_v27 = vpop.eup %4414  ;;  %4424 = vrcp.f32 %v2156_v30 }
0x1428   :  { %v2162_v41 = vpop.xlane.xlu1 %2161  ;;  %v2164_v49 = vmul.f32 %v4415_v27, %v4401_v61  ;;  %v4417_v17 = vpop.eup %4416 }
0x1429   :  { %v4328_v51 = vpop.permute.xlu0 %4327  ;;  %v2166_v25 = vmul.f32 %v4417_v17, %v4897_v63 }
0x142a   :  { %3823 = vmatprep.mubr.msk.f32.mxu0 %vm1012_vm14, %v2164_v49  ;;  %v4330_v47 = vunpack.i.h.bf16 %v4328_v51  ;;  %v4329_v22 = vunpack.i.l.bf16 %v4328_v51 }
0x142c   :  { %v2159_v40 = vpop.xlane.xlu1 %2158  ;;  %v4117_v0 = vpack.c.bf16 %v4330_v47, %v4329_v22  ;;  %v4419_v53 = vpop.eup %4418 }
0x142d   :  { %v4333_v46 = vpop.permute.xlu0 %4332  ;;  %4426 = vrcp.f32 %v2159_v40  ;;  %v4421_v56 = vpop.eup %4420  ;;  %v2168_v54 = vmul.f32 %v4419_v53, %v4904_v14  ;;  %v2365_v14 = vld [vmem:[#allocation2 + $0x228] sm:$0xff] }
0x142e   :  { %v4335_v57 = vunpack.i.h.bf16 %v4333_v46  ;;  %v4334_v62 = vunpack.i.l.bf16 %v4333_v46  ;;  %4428 = vrcp.f32 %v2162_v41  ;;  %v2170_v61 = vmul.f32 %v4421_v56, %v4902_v8 }
0x142f   :  { %v4125_v8 = vpack.c.bf16 %v2363_v7, %v2362_v45  ;;  %v4129_v15 = vpack.c.bf16 %v2365_v14, %v2364_v9 }
0x1430   :  { %v4323_v18 = vpop.permute.xlu1 %4322  ;;  %v4121_v43 = vpack.c.bf16 %v4335_v57, %v4334_v62  ;;  %v4423_v59 = vpop.eup %4422 }
0x1431   :  { %v4325_v23 = vunpack.i.h.bf16 %v4323_v18  ;;  %v4324_v50 = vunpack.i.l.bf16 %v4323_v18  ;;  %v4425_v42 = vpop.eup %4424  ;;  %v2172_v63 = vmul.f32 %v4423_v59, %v4912_v24  ;;  %4126 = vmatprep.subr.bf16.mxu1 %v4125_v8  ;;  %v3382_v18 = vld [vmem:[#allocation2 + $0x258] ss:$0 sm:$0xff] }
0x1432   :  { %v2174_v4 = vmul.f32 %v4425_v42, %v4910_v19  ;;  %4128 = vmatpush3.bf16.msra.mxu1 %v4125_v8 }
0x1433   :  { %v4113_v3 = vpack.c.bf16 %v4325_v23, %v4324_v50  ;;  %4130 = vmatprep.subr.bf16.mxu1 %v4129_v15  ;;  %v3379_v50 = vld [vmem:[#allocation2 + $0x230] ss:$0 sm:$0xff] }
0x1435   :  { %4114 = vmatprep.subr.bf16.mxu0 %v4113_v3 }
0x1436   :  { %4116 = vmatpush3.bf16.msra.mxu0 %v4113_v3  ;;  %4132 = vmatpush3.bf16.msra.mxu1 %v4129_v15 }
0x1437   :  { %4118 = vmatprep.subr.bf16.mxu0 %v4117_v0  ;;  %v4427_v48 = vpop.eup %4426 }
0x1438   :  { %v4429_v5 = vpop.eup %4428  ;;  %v2176_v2 = vmul.f32 %v4427_v48, %v4922_v36  ;;  %v2609_v48 = vld [vmem:[#allocation2 + $0x268] sm:$0xff] }
0x143a   :  { %4120 = vmatpush3.bf16.msra.mxu0 %v4117_v0 }
0x143b   :  { %4122 = vmatprep.subr.bf16.mxu0 %v4121_v43 }
0x143e   :  { %4124 = vmatpush3.bf16.msra.mxu0 %v4121_v43 }
0x143f   :  { %4133 = vmatprep.subr.bf16.mxu0 %v4490_v6 }
0x1441   :  { %3824 = vmatmul.mubr.msk.f32.vlgmr.msra.gmra.mrb[20].mxu0 %vm1012_vm14, %v2166_v25 }
0x1442   :  { %3826 = vmatprep.mubr.msk.f32.mxu0 %vm1012_vm14, %v2168_v54  ;;  %4135 = vmatpush3.bf16.msra.mxu0 %v4134_v55 }
0x1443   :  { %4136 = vmatprep.subr.bf16.mxu0 %v4490_v6  ;;  %v2178_v6 = vmul.f32 %v4429_v5, %v4918_v13  ;;  %v2610_v5 = vld [vmem:[#allocation2 + $0x270] sm:$0xff] }
0x1445   :  { %3827 = vmatmul.mubr.msk.f32.gmra.mrb[22].mxu0 %vm1012_vm14, %v2170_v61 }
0x1446   :  { %3829 = vmatprep.mubr.msk.f32.mxu0 %vm1012_vm14, %v2172_v63  ;;  %4138 = vmatpush3.bf16.msra.mxu0 %v4137_v1  ;;  %v2608_v63 = vld [vmem:[#allocation2 + $0x260] sm:$0xff] }
0x1449   :  { %3830 = vmatmul.mubr.msk.f32.gmra.mrb[24].mxu0 %vm1012_vm14, %v2174_v4  ;;  %v4139_v4 = vpack.c.bf16 %v2609_v48, %v2608_v63 }
0x144a   :  { %3832 = vmatprep.mubr.msk.f32.mxu0 %vm1012_vm14, %v2176_v2  ;;  %v2611_v2 = vld [vmem:[#allocation2 + $0x278] sm:$0xff] }
0x144b   :  { %4140 = vmatprep.subr.bf16.mxu1 %v4139_v4 }
0x144d   :  { %3833 = vmatmul.mubr.msk.f32.gmra.mrb[26].mxu0 %vm1012_vm14, %v2178_v6  ;;  %v4143_v6 = vpack.c.bf16 %v2611_v2, %v2610_v5 }
0x144e   :  { %3854 = vmatprep.mubr.msk.f32.mxu0 %vm4497_vm9, %v4498_v34 }
0x1451   :  { %3855 = vmatmul.mubr.msk.f32.vlgmr.msra.gmra.mrb[28].mxu0 %vm356_vm2, %v4686_v60 }
0x1514   :  { %v3825_v16 = vpop.f32.mrb[20].mxu0 }
0x1515   :  { %v2293_v19 = vpop.f32.mrb[21].mxu0 }
0x1518   :  { %v3828_v24 = vpop.f32.mrb[22].mxu0 }
0x1519   :  { %2336 = vrot.lane.b32.xlu0 %v3828_v24, %s4488_s26  ;;  %v2303_v11 = vpop.f32.mrb[23].mxu0 }
0x151a   :  { %2334 = vrot.lane.b32.xlu1 %v2303_v11, %s4488_s26 }
0x151c   :  { %v3831_v34 = vpop.f32.mrb[24].mxu0 }
0x151d   :  { %2344 = vrot.lane.b32.xlu0 %v3831_v34, %s4499_s1  ;;  %v2313_v60 = vpop.f32.mrb[25].mxu0 }
0x151e   :  { %2342 = vrot.lane.b32.xlu1 %v2313_v60, %s4499_s1 }
0x1520   :  { %v3834_v29 = vpop.f32.mrb[26].mxu0 }
0x1521   :  { %2352 = vrot.lane.b32.xlu0 %v3834_v29, %s4507_s13  ;;  %v2323_v13 = vpop.f32.mrb[27].mxu0  ;;  %v3385_v29 = vld [vmem:[#allocation2 + $0x1e0] ss:$0 sm:$0xff] }
0x1522   :  { %2350 = vrot.lane.b32.xlu1 %v2323_v13, %s4507_s13 }
0x1524   :  { %v2529_v32 = vpop.f32.mrb[28].mxu0 }
0x1525   :  { %v3856_v36 = vpop.f32.mrb[29].mxu0  ;;  %v2530_v47 = vadd.f32 %v3382_v18, %v2529_v32  ;;  %v2760_v18 = vld [vmem:[#allocation2 + $0x2c8] sm:$0xff] }
0x1527   :  { %v2540_v22 = vrot.slane %v2530_v47, %v4598_v31  ;;  %v2761_v47 = vld [vmem:[#allocation2 + $0x2d0] sm:$0xff] }
0x1529   :  { %v2541_v23 = vcombine.high %v2540_v22, %v2540_v22  ;;  %v2548_v3 = vrot.slane %v2540_v22, %v4598_v31  ;;  %v4163_v22 = vpack.c.bf16 %v2761_v47, %v2760_v18 }
0x152b   :  { %v2555_v46 = vrot.slane %v2541_v23, %v4598_v31  ;;  %v2559_v53 = vrot.slane %v2548_v3, %v4602_v35  ;;  %v2762_v23 = vld [vmem:[#allocation2 + $0x2d8] sm:$0xff]  ;;  %v2764_v3 = vld [vmem:[#allocation2 + $0x2e8] sm:$0xff] }
0x152d   :  { %v2563_v52 = vrot.slane %v2555_v46, %v4602_v35 }
0x158b   :  { %v2337_v38 = vpop.permute.xlu0 %2336 }
0x158c   :  { %v2335_v37 = vpop.permute.xlu1 %2334  ;;  %v2357_v39 = vsel %vm589_vm6, %v3825_v16, %v2337_v38  ;;  %v2752_v38 = vld [vmem:[#allocation2 + $0x288] sm:$0xff] }
0x158d   :  { %v2356_v21 = vsel %vm589_vm6, %v2293_v19, %v2335_v37  ;;  %v3384_v19 = vld [vmem:[#allocation2 + $0x1d8] ss:$0 sm:$0xff]  ;;  %v2753_v37 = vld [vmem:[#allocation2 + $0x290] sm:$0xff] }
0x158f   :  { %v2345_v33 = vpop.permute.xlu0 %2344 }
0x1590   :  { %v2343_v28 = vpop.permute.xlu1 %2342  ;;  %v2359_v49 = vsel %vm345_vm1, %v2357_v39, %v2345_v33  ;;  %v4147_v33 = vpack.c.bf16 %v2753_v37, %v2752_v38  ;;  %v2756_v39 = vld [vmem:[#allocation2 + $0x2a8] sm:$0xff] }
0x1591   :  { %v2358_v27 = vsel %vm345_vm1, %v2356_v21, %v2343_v28  ;;  %v2754_v28 = vld [vmem:[#allocation2 + $0x298] sm:$0xff]  ;;  %v2755_v21 = vld [vmem:[#allocation2 + $0x2a0] sm:$0xff] }
0x1592   :  { %4148 = vmatprep.subr.bf16.mxu0 %v4147_v33 }
0x1593   :  { %v2353_v30 = vpop.permute.xlu0 %2352  ;;  %4150 = vmatpush3.bf16.msra.mxu0 %v4147_v33 }
0x1594   :  { %v2351_v41 = vpop.permute.xlu1 %2350  ;;  %v2361_v40 = vsel %vm1282_vm7, %v2359_v49, %v2353_v30  ;;  %v4151_v30 = vpack.c.bf16 %v2755_v21, %v2754_v28  ;;  %v2758_v49 = vld [vmem:[#allocation2 + $0x2b8] sm:$0xff] }
0x1595   :  { %v2360_v51 = vsel %vm1282_vm7, %v2358_v27, %v2351_v41  ;;  %v2757_v27 = vld [vmem:[#allocation2 + $0x2b0] sm:$0xff] }
0x1596   :  { %3843 = vmatprep.mubr.msk.f32.mxu1 %vm356_vm2, %v2360_v51  ;;  %4152 = vmatprep.subr.bf16.mxu0 %v4151_v30  ;;  %v4155_v41 = vpack.c.bf16 %v2757_v27, %v2756_v39  ;;  %v2759_v51 = vld [vmem:[#allocation2 + $0x2c0] sm:$0xff] }
0x1597   :  { %3844 = vmatmul.mubr.msk.f32.vlgmr.msra.gmra.mrb[24].mxu1 %vm356_vm2, %v2361_v40  ;;  %4154 = vmatpush3.bf16.msra.mxu0 %v4151_v30  ;;  %v4159_v40 = vpack.c.bf16 %v2759_v51, %v2758_v49 }
0x1598   :  { %4142 = vmatpush3.bf16.msra.mxu1 %v4139_v4  ;;  %4156 = vmatprep.subr.bf16.mxu0 %v4155_v41 }
0x1599   :  { %4144 = vmatprep.subr.bf16.mxu1 %v4143_v6 }
0x159b   :  { %4158 = vmatpush3.bf16.msra.mxu0 %v4155_v41 }
0x159c   :  { %4146 = vmatpush3.bf16.msra.mxu1 %v4143_v6  ;;  %4160 = vmatprep.subr.bf16.mxu0 %v4159_v40 }
0x159f   :  { %4162 = vmatpush3.bf16.msra.mxu0 %v4159_v40 }
0x15a0   :  { %4164 = vmatprep.subr.bf16.mxu0 %v4163_v22 }
0x15a3   :  { %4166 = vmatpush3.bf16.msra.mxu0 %v4163_v22 }
0x166a   :  { %v3845_v0 = vpop.f32.mrb[24].mxu1 }
0x166b   :  { %v2449_v57 = vadd.f32 %v3845_v0, %v3379_v50  ;;  %v2443_v62 = vpop.f32.mrb[25].mxu1  ;;  %v2765_v0 = vld [vmem:[#allocation2 + $0x2f0] sm:$0xff] }
0x166c   :  { %v2444_v43 = vadd.f32 %v3379_v50, %v2443_v62  ;;  %v2763_v50 = vld [vmem:[#allocation2 + $0x2e0] sm:$0xff]  ;;  %v2766_v62 = vld [vmem:[#allocation2 + $0x2f8] sm:$0xff] }
0x166d   :  { %v2453_v12 = vadd.f32 %v2449_v57, %v4818_v44  ;;  %v4167_v46 = vpack.c.bf16 %v2763_v50, %v2762_v23  ;;  %v4171_v57 = vpack.c.bf16 %v2765_v0, %v2764_v3  ;;  %v3389_v3 = vld [vmem:[#allocation2 + $0x308] ss:$0 sm:$0xff] }
0x166e   :  { %v2452_v17 = vadd.f32 %v2444_v43, %v4821_v20  ;;  %v2767_v43 = vld [vmem:[#allocation2 + $0x300] sm:$0xff] }
0x166f   :  { %v4974_v55 = vadd.f32 %v2563_v52, %v2453_v12  ;;  %4168 = vmatprep.subr.bf16.mxu0 %v4167_v46  ;;  %v4175_v12 = vpack.c.bf16 %v2767_v43, %v2766_v62  ;;  %v3386_v52 = vld [vmem:[#allocation2 + $0x280] ss:$0 sm:$0xff] }
0x1670   :  { %v4976_v25 = vadd.f32 %v2559_v53, %v2452_v17  ;;  %4170 = vmatpush3.bf16.msra.mxu0 %v4167_v46 }
0x1671   :  { %v2571_v26 = vsel %vm356_vm2, %v4974_v55, 0.0  ;;  %4172 = vmatprep.subr.bf16.mxu0 %v4171_v57 }
0x1672   :  { %2572 = vadd.xlane.f32.xlu0 %v2571_v26  ;;  %v2568_v31 = vsel %vm356_vm2, %v4976_v25, 0.0 }
0x1673   :  { %2569 = vadd.xlane.f32.xlu1 %v2568_v31 }
0x1674   :  { %4174 = vmatpush3.bf16.msra.mxu0 %v4171_v57 }
0x1675   :  { %4176 = vmatprep.subr.bf16.mxu0 %v4175_v12 }
0x1678   :  { %4178 = vmatpush3.bf16.msra.mxu0 %v4175_v12 }
0x16ff   :  { %v2573_v58 = vpop.xlane.xlu0 %2572 }
0x1700   :  { %v2575_v44 = vmul.f32 0.03125, %v2573_v58  ;;  %v2570_v56 = vpop.xlane.xlu1 %2569 }
0x1701   :  { %v2574_v54 = vmul.f32 0.03125, %v2570_v56 }
0x1702   :  { %v2577_v20 = vsub.f32 %v4974_v55, %v2575_v44 }
0x1703   :  { %v2576_v35 = vsub.f32 %v4976_v25, %v2574_v54 }
0x1704   :  { %v2579_v59 = vmul.f32 %v2577_v20, %v2577_v20 }
0x1705   :  { %v2578_v1 = vmul.f32 %v2576_v35, %v2576_v35 }
0x1706   :  { %v2583_v61 = vsel %vm356_vm2, %v2579_v59, 0.0 }
0x1707   :  { %2584 = vadd.xlane.f32.xlu1 %v2583_v61  ;;  %v2580_v42 = vsel %vm356_vm2, %v2578_v1, 0.0 }
0x1708   :  { %2581 = vadd.xlane.f32.xlu0 %v2580_v42 }
0x1794   :  { %v2585_v45 = vpop.xlane.xlu1 %2584 }
0x1795   :  { %v2587_v7 = vmul.f32 0.03125, %v2585_v45  ;;  %v2582_v8 = vpop.xlane.xlu0 %2581 }
0x1796   :  { %v2586_v9 = vmul.f32 0.03125, %v2582_v8 }
0x1797   :  { %v2589_v14 = vadd.f32 1e-05, %v2587_v7 }
0x1798   :  { %v2588_v15 = vadd.f32 1e-05, %v2586_v9 }
0x1799   :  { %4430 = vrsqrt.f32 %v2589_v14 }
0x179a   :  { %4432 = vrsqrt.f32 %v2588_v15 }
0x17a3   :  { %v4431_v16 = vpop.eup %4430 }
0x17a4   :  { %v4433_v24 = vpop.eup %4432  ;;  %v2593_v11 = vmul.f32 %v4431_v16, %v2577_v20 }
0x17a5   :  { %v2592_v34 = vmul.f32 %v4433_v24, %v2576_v35 }
0x17a6   :  { %v2600_v60 = vmul.f32 %v3384_v19, %v2593_v11 }
0x17a7   :  { %v2599_v13 = vmul.f32 %v3384_v19, %v2592_v34 }
0x17a8   :  { %v2607_v36 = vadd.f32 %v3385_v29, %v2600_v60 }
0x17a9   :  { %v2606_v32 = vadd.f32 %v3385_v29, %v2599_v13 }
0x17ab   :  { %3865 = vmatprep.mubr.msk.f32.mxu1 %vm356_vm2, %v2606_v32 }
0x17ac   :  { %3866 = vmatmul.mubr.msk.f32.vlgmr.msra.gmra.mrb[26].mxu1 %vm356_vm2, %v2607_v36 }
0x187f   :  { %v3867_v17 = vpop.f32.mrb[26].mxu1 }
0x1880   :  { %v2695_v53 = vadd.f32 %v3867_v17, %v3386_v52  ;;  %v2689_v26 = vpop.f32.mrb[27].mxu1 }
0x1881   :  { %v2690_v31 = vadd.f32 %v3386_v52, %v2689_v26 }
0x1882   :  { %v2701_v58 = vmul.f32 0.70710677, %v2695_v53  ;;  %v2699_v23 = vmul.f32 0.5, %v2695_v53 }
0x1883   :  { %v2700_v44 = vmul.f32 0.70710677, %v2690_v31  ;;  %v2698_v47 = vmul.f32 0.5, %v2690_v31 }
0x1884   :  { %v2707_v56 = vand.u32 2147483647, %v2701_v58  ;;  %vm2703_vm9 = vcmp.lt.f32.partialorder %v2701_v58, 0.0 }
0x1885   :  { %v2706_v54 = vand.u32 2147483647, %v2700_v44  ;;  %vm2702_vm1 = vcmp.lt.f32.partialorder %v2700_v44, 0.0  ;;  %v2705_v27 = vsel %vm2703_vm9, -1.0, %v4508_v10 }
0x1886   :  { %v2709_v20 = vmul.f32 0.3275911, %v2707_v56  ;;  %v2735_v61 = vsub.f32 0.0, %v2707_v56  ;;  %v2704_v51 = vsel %vm2702_vm1, -1.0, %v4508_v10 }
0x1887   :  { %v2708_v35 = vmul.f32 0.3275911, %v2706_v54  ;;  %v2734_v42 = vsub.f32 0.0, %v2706_v54 }
0x1888   :  { %v2711_v59 = vadd.f32 1.0, %v2709_v20  ;;  %v2737_v48 = vmul.f32 %v2735_v61, %v2707_v56  ;;  %v2892_v61 = vld [vmem:[#allocation2 + $0x330] sm:$0xff] }
0x1889   :  { %v2710_v1 = vadd.f32 1.0, %v2708_v35  ;;  %v2736_v2 = vmul.f32 %v2734_v42, %v2706_v54  ;;  %v2893_v42 = vld [vmem:[#allocation2 + $0x338] sm:$0xff] }
0x188a   :  { %4434 = vrcp.f32 %v2711_v59  ;;  %v2740_v7 = vmul.f32 1.442695, %v2737_v48  ;;  %v2891_v59 = vld [vmem:[#allocation2 + $0x328] sm:$0xff] }
0x188b   :  { %4436 = vrcp.f32 %v2710_v1  ;;  %v2738_v14 = vmul.f32 1.442695, %v2736_v2 }
0x188c   :  { %4438 = vpow2.f32 %v2740_v7 }
0x188d   :  { %4440 = vpow2.f32 %v2738_v14 }
0x1894   :  { %v4435_v63 = vpop.eup %4434 }
0x1895   :  { %v4437_v4 = vpop.eup %4436  ;;  %v2717_v5 = vmul.f32 1.0614054, %v4435_v63 }
0x1896   :  { %v2716_v6 = vmul.f32 1.0614054, %v4437_v4  ;;  %v4439_v37 = vpop.eup %4438 }
0x1897   :  { %v2719_v45 = vadd.f32 -1.4531521, %v2717_v5  ;;  %v4441_v28 = vpop.eup %4440 }
0x1898   :  { %v2718_v8 = vadd.f32 -1.4531521, %v2716_v6 }
0x1899   :  { %v2721_v9 = vmul.f32 %v4435_v63, %v2719_v45 }
0x189a   :  { %v2720_v15 = vmul.f32 %v4437_v4, %v2718_v8  ;;  %v3390_v8 = vld [vmem:[#allocation2 + $0x310] ss:$0 sm:$0xff] }
0x189b   :  { %v2723_v16 = vadd.f32 1.4214138, %v2721_v9 }
0x189c   :  { %v2722_v19 = vadd.f32 1.4214138, %v2720_v15 }
0x189d   :  { %v2725_v24 = vmul.f32 %v4435_v63, %v2723_v16 }
0x189e   :  { %v2724_v11 = vmul.f32 %v4437_v4, %v2722_v19  ;;  %v3391_v19 = vld [vmem:[#allocation2 + $0x318] ss:$0 sm:$0xff] }
0x189f   :  { %v2727_v34 = vadd.f32 -0.28449672, %v2725_v24 }
0x18a0   :  { %v2726_v60 = vadd.f32 -0.28449672, %v2724_v11 }
0x18a1   :  { %v2729_v29 = vmul.f32 %v4435_v63, %v2727_v34 }
0x18a2   :  { %v2728_v13 = vmul.f32 %v4437_v4, %v2726_v60  ;;  %v2994_v60 = vld [vmem:[#allocation2 + $0x348] sm:$0xff] }
0x18a3   :  { %v2731_v32 = vadd.f32 0.2548296, %v2729_v29  ;;  %v2995_v29 = vld [vmem:[#allocation2 + $0x350] sm:$0xff] }
0x18a4   :  { %v2730_v36 = vadd.f32 0.2548296, %v2728_v13  ;;  %v4187_v13 = vpack.c.bf16 %v2995_v29, %v2994_v60  ;;  %v3405_v29 = vld [vmem:[#allocation2 + $0x3f8] ss:$0 sm:$0xff] }
0x18a5   :  { %v2733_v38 = vmul.f32 %v4435_v63, %v2731_v32  ;;  %v4183_v63 = vpack.c.bf16 %v2893_v42, %v2892_v61  ;;  %v2996_v32 = vld [vmem:[#allocation2 + $0x358] sm:$0xff]  ;;  %v3397_v61 = vld [vmem:[#allocation2 + $0x388] ss:$0 sm:$0xff] }
0x18a6   :  { %v2732_v33 = vmul.f32 %v4437_v4, %v2730_v36  ;;  %v2997_v36 = vld [vmem:[#allocation2 + $0x360] sm:$0xff] }
0x18a7   :  { %v2743_v21 = vmul.f32 %v4439_v37, %v2733_v38  ;;  %v4191_v38 = vpack.c.bf16 %v2997_v36, %v2996_v32  ;;  %v2998_v37 = vld [vmem:[#allocation2 + $0x368] sm:$0xff] }
0x18a8   :  { %v2742_v30 = vmul.f32 %v4441_v28, %v2732_v33  ;;  %v2999_v33 = vld [vmem:[#allocation2 + $0x370] sm:$0xff] }
0x18a9   :  { %v2745_v39 = vsub.f32 1.0, %v2743_v21  ;;  %v4195_v28 = vpack.c.bf16 %v2999_v33, %v2998_v37  ;;  %v3000_v21 = vld [vmem:[#allocation2 + $0x378] sm:$0xff] }
0x18aa   :  { %v2744_v41 = vsub.f32 1.0, %v2742_v30  ;;  %v3001_v30 = vld [vmem:[#allocation2 + $0x380] sm:$0xff] }
0x18ab   :  { %v2747_v49 = vmul.f32 %v2745_v39, %v2705_v27  ;;  %v4199_v39 = vpack.c.bf16 %v3001_v30, %v3000_v21  ;;  %v3088_v27 = vld [vmem:[#allocation2 + $0x390] sm:$0xff] }
0x18ac   :  { %v2746_v40 = vmul.f32 %v2744_v41, %v2704_v51  ;;  %v3089_v41 = vld [vmem:[#allocation2 + $0x398] sm:$0xff]  ;;  %v3392_v51 = vld [vmem:[#allocation2 + $0x340] ss:$0 sm:$0xff] }
0x18ad   :  { %v2749_v18 = vadd.f32 1.0, %v2747_v49  ;;  %v4203_v49 = vpack.c.bf16 %v3089_v41, %v3088_v27 }
0x18ae   :  { %v2748_v22 = vadd.f32 1.0, %v2746_v40 }
0x18af   :  { %v2751_v46 = vmul.f32 %v2749_v18, %v2699_v23 }
0x18b0   :  { %v2750_v50 = vmul.f32 %v2748_v22, %v2698_v47 }
0x18b2   :  { %3900 = vmatprep.mubr.f32.mxu0 %v2750_v50 }
0x18b3   :  { %3901 = vmatmul.mubr.f32.vlgmr.msra.gmra.mrb[30].mxu0 %v2751_v46 }
0x1986   :  { %v3902_v0 = vpop.f32.mrb[30].mxu0 }
0x1987   :  { %v2845_v57 = vadd.f32 %v3902_v0, %v3389_v3  ;;  %v2839_v62 = vpop.f32.mrb[31].mxu0 }
0x1988   :  { %v2840_v43 = vadd.f32 %v3389_v3, %v2839_v62 }
0x1989   :  { %v2849_v12 = vadd.f32 %v2845_v57, %v4974_v55 }
0x198a   :  { %v2848_v52 = vadd.f32 %v2840_v43, %v4976_v25  ;;  %v2890_v25 = vld [vmem:[#allocation2 + $0x320] sm:$0xff] }
0x198b   :  { %v2853_v10 = vsel %vm356_vm2, %v2849_v12, 0.0  ;;  %v4179_v1 = vpack.c.bf16 %v2891_v59, %v2890_v25  ;;  %v3090_v43 = vld [vmem:[#allocation2 + $0x3a0] sm:$0xff]  ;;  %v3192_v25 = vld [vmem:[#allocation2 + $0x3e8] sm:$0xff]  ;;  %v3193_v59 = vld [vmem:[#allocation2 + $0x3f0] sm:$0xff] }
0x198c   :  { %2854 = vadd.xlane.f32.xlu1 %v2853_v10  ;;  %v2850_v17 = vsel %vm356_vm2, %v2848_v52, 0.0 }
0x198d   :  { %2851 = vadd.xlane.f32.xlu0 %v2850_v17  ;;  %4180 = vmatprep.subr.bf16.mxu1 %v4179_v1 }
0x198e   :  { %4182 = vmatpush3.bf16.msra.mxu1 %v4179_v1  ;;  %v4223_v1 = vpack.c.bf16 %v3193_v59, %v3192_v25 }
0x198f   :  { %4184 = vmatprep.subr.bf16.mxu1 %v4183_v63 }
0x1992   :  { %4186 = vmatpush3.bf16.msra.mxu1 %v4183_v63 }
0x1993   :  { %4188 = vmatprep.subr.bf16.mxu1 %v4187_v13 }
0x1a19   :  { %v2855_v53 = vpop.xlane.xlu1 %2854 }
0x1a1a   :  { %v2857_v26 = vmul.f32 0.03125, %v2855_v53  ;;  %v2852_v31 = vpop.xlane.xlu0 %2851 }
0x1a1b   :  { %v2856_v58 = vmul.f32 0.03125, %v2852_v31  ;;  %v3093_v31 = vld [vmem:[#allocation2 + $0x3b8] sm:$0xff] }
0x1a1c   :  { %v2859_v44 = vsub.f32 %v2849_v12, %v2857_v26  ;;  %v3091_v12 = vld [vmem:[#allocation2 + $0x3a8] sm:$0xff]  ;;  %v3092_v26 = vld [vmem:[#allocation2 + $0x3b0] sm:$0xff] }
0x1a1d   :  { %v2858_v56 = vsub.f32 %v2848_v52, %v2856_v58  ;;  %v4207_v53 = vpack.c.bf16 %v3091_v12, %v3090_v43  ;;  %v4211_v58 = vpack.c.bf16 %v3093_v31, %v3092_v26 }
0x1a1e   :  { %v2861_v54 = vmul.f32 %v2859_v44, %v2859_v44 }
0x1a1f   :  { %v2860_v20 = vmul.f32 %v2858_v56, %v2858_v56 }
0x1a20   :  { %v2865_v35 = vsel %vm356_vm2, %v2861_v54, 0.0 }
0x1a21   :  { %2866 = vadd.xlane.f32.xlu1 %v2865_v35  ;;  %v2862_v55 = vsel %vm356_vm2, %v2860_v20, 0.0  ;;  %v3190_v20 = vld [vmem:[#allocation2 + $0x3d8] sm:$0xff]  ;;  %v3191_v35 = vld [vmem:[#allocation2 + $0x3e0] sm:$0xff] }
0x1a22   :  { %2863 = vadd.xlane.f32.xlu0 %v2862_v55  ;;  %v4219_v55 = vpack.c.bf16 %v3191_v35, %v3190_v20 }
0x1a24   :  { %4220 = vmatprep.subr.bf16.mxu0 %v4219_v55 }
0x1a25   :  { %4222 = vmatpush3.bf16.msra.mxu0 %v4219_v55 }
0x1a26   :  { %4224 = vmatprep.subr.bf16.mxu0 %v4223_v1 }
0x1a29   :  { %4226 = vmatpush3.bf16.msra.mxu0 %v4223_v1 }
0x1aae   :  { %v2867_v48 = vpop.xlane.xlu1 %2866 }
0x1aaf   :  { %v2869_v4 = vmul.f32 0.03125, %v2867_v48  ;;  %v2864_v5 = vpop.xlane.xlu0 %2863 }
0x1ab0   :  { %v2868_v2 = vmul.f32 0.03125, %v2864_v5  ;;  %v3400_v5 = vld [vmem:[#allocation2 + $0x3d0] ss:$0 sm:$0xff] }
0x1ab1   :  { %v2871_v6 = vadd.f32 1e-05, %v2869_v4 }
0x1ab2   :  { %v2870_v45 = vadd.f32 1e-05, %v2868_v2 }
0x1ab3   :  { %4442 = vrsqrt.f32 %v2871_v6 }
0x1ab4   :  { %4444 = vrsqrt.f32 %v2870_v45 }
0x1abd   :  { %v4443_v7 = vpop.eup %4442 }
0x1abe   :  { %v4445_v9 = vpop.eup %4444  ;;  %v2875_v14 = vmul.f32 %v4443_v7, %v2859_v44  ;;  %v3094_v44 = vld [vmem:[#allocation2 + $0x3c0] sm:$0xff] }
0x1abf   :  { %v2874_v15 = vmul.f32 %v4445_v9, %v2858_v56  ;;  %v3095_v56 = vld [vmem:[#allocation2 + $0x3c8] sm:$0xff] }
0x1ac0   :  { %v2882_v16 = vmul.f32 %v3390_v8, %v2875_v14  ;;  %v4215_v54 = vpack.c.bf16 %v3095_v56, %v3094_v44 }
0x1ac1   :  { %v2881_v24 = vmul.f32 %v3390_v8, %v2874_v15 }
0x1ac2   :  { %v2889_v34 = vadd.f32 %v3391_v19, %v2882_v16 }
0x1ac3   :  { %v2888_v11 = vadd.f32 %v3391_v19, %v2881_v24 }
0x1ac5   :  { %3911 = vmatprep.mubr.msk.f32.mxu1 %vm356_vm2, %v2888_v11 }
0x1ac6   :  { %3912 = vmatmul.mubr.msk.f32.vlgmr.msra.gmra.mrb[28].mxu1 %vm356_vm2, %v2889_v34 }
0x1ac7   :  { %4190 = vmatpush3.bf16.msra.mxu1 %v4187_v13 }
0x1ac8   :  { %4192 = vmatprep.subr.bf16.mxu1 %v4191_v38 }
0x1acb   :  { %4194 = vmatpush3.bf16.msra.mxu1 %v4191_v38 }
0x1acc   :  { %4196 = vmatprep.subr.bf16.mxu1 %v4195_v28 }
0x1acf   :  { %4198 = vmatpush3.bf16.msra.mxu1 %v4195_v28 }
0x1ad0   :  { %4200 = vmatprep.subr.bf16.mxu1 %v4199_v39 }
0x1ad3   :  { %4202 = vmatpush3.bf16.msra.mxu1 %v4199_v39 }
0x1ad4   :  { %4204 = vmatprep.subr.bf16.mxu1 %v4203_v49 }
0x1b99   :  { %v3913_v40 = vpop.f32.mrb[28].mxu1 }
0x1b9a   :  { %v2977_v18 = vadd.f32 %v3913_v40, %v3392_v51  ;;  %v2971_v47 = vpop.f32.mrb[29].mxu1 }
0x1b9b   :  { %v2972_v22 = vadd.f32 %v3392_v51, %v2971_v47 }
0x1b9c   :  { %v3396_v23 = vmul.f32 -1.442695, %v2977_v18 }
0x1b9d   :  { %v3395_v50 = vmul.f32 -1.442695, %v2972_v22 }
0x1b9e   :  { %4446 = vpow2.f32 %v3396_v23 }
0x1b9f   :  { %4448 = vpow2.f32 %v3395_v50 }
0x1ba8   :  { %v4447_v46 = vpop.eup %4446 }
0x1ba9   :  { %v4449_v3 = vpop.eup %4448  ;;  %v2987_v0 = vadd.f32 1.0, %v4447_v46 }
0x1baa   :  { %v2986_v57 = vadd.f32 1.0, %v4449_v3 }
0x1bab   :  { %4450 = vrcp.f32 %v2987_v0 }
0x1bac   :  { %4452 = vrcp.f32 %v2986_v57 }
0x1bb5   :  { %v4451_v62 = vpop.eup %4450 }
0x1bb6   :  { %v4453_v52 = vpop.eup %4452  ;;  %v2993_v17 = vmul.f32 %v4451_v62, %v2977_v18 }
0x1bb7   :  { %v2992_v10 = vmul.f32 %v4453_v52, %v2972_v22 }
0x1bb9   :  { %3930 = vmatprep.mubr.msk.f32.mxu1 %vm1012_vm14, %v2992_v10 }
0x1bba   :  { %3931 = vmatmul.mubr.msk.f32.vlgmr.msra.gmra.mrb[30].mxu1 %vm1012_vm14, %v2993_v17 }
0x1bbb   :  { %4206 = vmatpush3.bf16.msra.mxu1 %v4203_v49  ;;  %3949 = vmatprep.mubr.msk.f32.mxu1 %vm1012_vm14, %v2992_v10 }
0x1bbc   :  { %4208 = vmatprep.subr.bf16.mxu1 %v4207_v53 }
0x1bbf   :  { %4210 = vmatpush3.bf16.msra.mxu1 %v4207_v53 }
0x1bc0   :  { %4212 = vmatprep.subr.bf16.mxu1 %v4211_v58 }
0x1bc3   :  { %4214 = vmatpush3.bf16.msra.mxu1 %v4211_v58 }
0x1bc4   :  { %4216 = vmatprep.subr.bf16.mxu1 %v4215_v54 }
0x1bc7   :  { %4218 = vmatpush3.bf16.msra.mxu1 %v4215_v54 }
0x1bca   :  { %3950 = vmatmul.mubr.msk.f32.vlgmr.msra.gmra.mrb[32].mxu1 %vm1012_vm14, %v2993_v17 }
0x1c8d   :  { %v3932_v42 = vpop.f32.mrb[30].mxu1 }
0x1c8e   :  { %v3085_v63 = vadd.f32 %v3932_v42, %v3397_v61  ;;  %v3079_v48 = vpop.f32.mrb[31].mxu1 }
0x1c8f   :  { %v3080_v4 = vadd.f32 %v3397_v61, %v3079_v48 }
0x1c90   :  { %3282 = vst.msk [vmem:[%s5024_s4 + $0x10] sm:$0xff] %vm35_vm4, %v3085_v63 }
0x1c91   :  { %3280 = vst.msk [vmem:[%s5024_s4] sm:$0xff] %vm35_vm4, %v3080_v4 }
0x1c9d   :  { %v3951_v2 = vpop.f32.mrb[32].mxu1 }
0x1c9e   :  { %v3173_v6 = vadd.f32 %v3951_v2, %v3400_v5  ;;  %v3167_v45 = vpop.f32.mrb[33].mxu1 }
0x1c9f   :  { %v3168_v7 = vadd.f32 %v3400_v5, %v3167_v45 }
0x1ca0   :  { %v3404_v8 = vmul.f32 -1.442695, %v3173_v6 }
0x1ca1   :  { %v3403_v9 = vmul.f32 -1.442695, %v3168_v7 }
0x1ca2   :  { %4454 = vpow2.f32 %v3404_v8 }
0x1ca3   :  { %4456 = vpow2.f32 %v3403_v9 }
0x1cac   :  { %v4455_v14 = vpop.eup %4454 }
0x1cad   :  { %v4457_v15 = vpop.eup %4456  ;;  %v3183_v16 = vadd.f32 1.0, %v4455_v14 }
0x1cae   :  { %v3182_v19 = vadd.f32 1.0, %v4457_v15 }
0x1caf   :  { %4458 = vrcp.f32 %v3183_v16 }
0x1cb0   :  { %4460 = vrcp.f32 %v3182_v19 }
0x1cb9   :  { %v4459_v24 = vpop.eup %4458 }
0x1cba   :  { %v4461_v11 = vpop.eup %4460  ;;  %v3189_v60 = vmul.f32 %v4459_v24, %v3173_v6 }
0x1cbb   :  { %v3188_v34 = vmul.f32 %v4461_v11, %v3168_v7 }
0x1cbd   :  { %3960 = vmatprep.mubr.msk.f32.mxu0 %vm356_vm2, %v3188_v34 }
0x1cbe   :  { %3961 = vmatmul.mubr.msk.f32.vlgmr.msra.gmra.mrb[32].mxu0 %vm356_vm2, %v3189_v60 }
0x1d91   :  { %v3962_v13 = vpop.f32.mrb[32].mxu0 }
0x1d92   :  { %v3277_v32 = vadd.f32 %v3962_v13, %v3405_v29  ;;  %v3271_v36 = vpop.f32.mrb[33].mxu0 }
0x1d93   :  { %v3272_v38 = vadd.f32 %v3405_v29, %v3271_v36 }
0x1d94   :  { %3283 = vst.msk [vmem:[%s5024_s4 + $0x18] sm:$0xff] %vm35_vm4, %v3277_v32 }
0x1d95   :  { %3281 = vst.msk [vmem:[%s5024_s4 + $0x8] sm:$0xff] %vm35_vm4, %v3272_v38 }
0x1d96   :  { %3288 = vsyncpa [#allocation3], 1 }

</bundles_post_ra>
